<compile_context>
chip_gen: v7x
topology: tpu7x:2x2x1
jax: 0.10.0
libtpu: 0.0.40
codegen_flags: <defaults>
</compile_context>

<pallas_src>
import jax
import jax.numpy as jnp
from jax.experimental import pallas as pl
from jax.experimental.pallas import tpu as pltpu

# ---------------------------------------------------------------------------
# Synthetic VOICE_PARAMETER_RANGES / VOICE_KEYS (the real ones are external).
# ---------------------------------------------------------------------------
VOICE_PARAMETER_RANGES = {
    "osc_wave":    range(0, 8),
    "osc_coarse":  range(0, 16),
    "env_attack":  range(0, 12),
    "env_decay":   range(0, 12),
    "env_sustain": range(0, 10),
    "env_release": range(0, 12),
    "lfo_rate":    range(0, 14),
    "feedback":    range(0, 8),
}
VOICE_KEYS = list(VOICE_PARAMETER_RANGES.keys())
MAX_VALUE = max(max(r) for r in VOICE_PARAMETER_RANGES.values()) + 1   # 16
N_PARAMS = len(VOICE_PARAMETER_RANGES)                                 # 8

HIDDEN = 32
LATENT = 8
BATCH = 2

_OUT_LANES = 128
# rows: S*B x-hat rows (time-major) + 3*B rows for mu/sigma/z, padded to 8.
_OUT_ROWS = -(-(N_PARAMS * BATCH + 3 * BATCH) // 8) * 8                # 24


# ---------------------------------------------------------------------------
# In-kernel math helpers (guaranteed-lowerable primitives only, all f32).
# ---------------------------------------------------------------------------
def _sigmoid(x):
    # exact identity sigma(x) = 0.5*(tanh(x/2)+1): keeps the transcendental on the EUP.
    return 0.5 * (jnp.tanh(0.5 * x) + 1.0)


def _erf(x):
    # Abramowitz & Stegun 7.1.26, |err| < 1.5e-7 (avoids relying on lax.erf lowering).
    a1, a2, a3, a4, a5 = 0.254829592, -0.284496736, 1.421413741, -1.453152027, 1.061405429
    p = 0.3275911
    sgn = jnp.where(x >= 0.0, 1.0, -1.0)
    ax = jnp.abs(x)
    t = 1.0 / (1.0 + p * ax)
    poly = ((((a5 * t + a4) * t + a3) * t + a2) * t + a1) * t
    return sgn * (1.0 - poly * jnp.exp(-ax * ax))


def _gelu(x):
    # erf-based GELU, matching torch nn.GELU().
    return 0.5 * x * (1.0 + _erf(x * 0.7071067811865476))


# ---------------------------------------------------------------------------
# The single fused forward kernel.
# ---------------------------------------------------------------------------
# TODO(synk): nn.Dropout(0.4) treated as eval-mode identity (no train-time masking).
def _net_fwd_kernel(ids_ref, eps_ref, w_big_ref, w_small_ref, b_slab_ref, out_ref):
    f32, bf16 = jnp.float32, jnp.bfloat16
    H, L, V, S = HIDDEN, LATENT, MAX_VALUE, N_PARAMS
    B = eps_ref.shape[0]
    G = 4 * H                                   # per-gate lane width (4 fused directions) = 128

    # ---- unpack the packed weight/bias slabs (static, 16-row-aligned slices) ----
    wih_e = w_big_ref[0:2 * H, :]               # (2H, 16H) bf16  encoder input weights
    whh_e = w_big_ref[2 * H:6 * H, :]           # (4H, 16H) bf16  encoder recurrent weights
    wih_d = w_big_ref[6 * H:7 * H, :]           # (H,  16H) bf16  decoder input weights (4-dir padded)
    whh_d = w_big_ref[7 * H:11 * H, :]          # (4H, 16H) bf16  decoder recurrent weights

    emb_w = w_small_ref[0:V, 0:H]               # (V, H)    bf16
    wqz   = w_small_ref[16:16 + H, 0:2 * L]     # (H, 2L)   bf16
    wl    = w_small_ref[48:48 + H, 0:V]         # (H, V)    bf16
    wz2x  = w_small_ref[80:80 + H + L, 0:H]     # (H+L, H)  bf16

    b_e   = b_slab_ref[0:1, :]                  # (1, 16H)  f32
    b_d   = b_slab_ref[1:2, :]                  # (1, 16H)  f32
    bqz   = b_slab_ref[2:3, 0:2 * L]            # (1, 2L)
    bz2x  = b_slab_ref[3:4, 0:H]                # (1, H)
    bl    = b_slab_ref[4:5, 0:V]                # (1, V)
    mask  = b_slab_ref[8:8 + S * B, 0:V]        # (S*B, V) f32, time-major (row = t*B+b)

    # ---- embedding lookup as one-hot @ table (gather-free, runs on the MXU) -----
    ids = ids_ref[...]                                                 # (S*B, 1) int32, row = t*B+b
    onehot = (ids == jax.lax.broadcasted_iota(jnp.int32, (S * B, V), 1))
    onehot = onehot.astype(f32).astype(bf16)
    emb_tm = jnp.dot(onehot, emb_w, preferred_element_type=f32)        # (S*B, H) f32

    # ---- encoder input projection hoisted out of the recurrence -----------------
    # gates column layout : [ i(4 dirs) | f(4 dirs) | g(4 dirs) | o(4 dirs) ]
    # h/c column layout   : [ enc1_fwd | enc1_rev | enc2_fwd | enc2_rev ]
    emb_rev = jnp.concatenate(
        [emb_tm[(S - 1 - t) * B:(S - t) * B, :] for t in range(S)], axis=0)
    xx_all = jnp.concatenate([emb_tm, emb_rev], axis=1).astype(bf16)   # (S*B, 2H)
    ig_e = jnp.dot(xx_all, wih_e, preferred_element_type=f32) + b_e    # (S*B, 16H)

    # ---- encoder recurrence: only the h@Whh dot is on the serial critical path --
    h_e = jnp.zeros((B, G), f32)
    c_e = jnp.zeros((B, G), f32)
    for t in range(S):                                                 # unrolled, S = 8
        gates = ig_e[t * B:(t + 1) * B, :] + jnp.dot(
            h_e.astype(bf16), whh_e, preferred_element_type=f32)       # (B, 16H)
        gi = _sigmoid(gates[:, 0 * G:1 * G])                           # whole-128-lane slices
        gf = _sigmoid(gates[:, 1 * G:2 * G])
        gg = jnp.tanh(gates[:, 2 * G:3 * G])
        go = _sigmoid(gates[:, 3 * G:4 * G])
        c_e = gf * c_e + gi * gg
        h_e = go * jnp.tanh(c_e)
    # h_e now holds every direction's final hidden state (reverse dirs processed
    # x[S-1]..x[0], matching torch's h_n for the backward direction).

    # ---- VAE head: theta -> q_z linear -> clamp/exp -> reparameterized sample ---
    theta = (_gelu(0.5 * (h_e[:, 0:H] + h_e[:, H:2 * H]))              # gelu(mean(h_enc1))
             + 0.5 * (h_e[:, 2 * H:3 * H] + h_e[:, 3 * H:4 * H]))      # + mean(h_enc2)
    qz = jnp.dot(theta.astype(bf16), wqz, preferred_element_type=f32) + bqz
    mu = qz[:, 0:L]
    sigma = jnp.exp(0.5 * jnp.clip(qz[:, L:2 * L], -5.0, 3.0))
    z = mu + sigma * eps_ref[...]

    # ---- decoder input and its gate projection, both hoisted --------------------
    emb_shift = jnp.concatenate(
        [jnp.zeros((B, H), f32), emb_tm[0:(S - 1) * B, :]], axis=0)    # (S*B, H) shift-right
    z_tm = jnp.concatenate([z] * S, axis=0)                            # (S*B, L), row t*B+b -> z[b]
    xz = jnp.concatenate([emb_shift, z_tm], axis=1).astype(bf16)       # (S*B, H+L)
    xdec = jnp.dot(xz, wz2x, preferred_element_type=f32) + bz2x        # (S*B, H)
    ig_d = jnp.dot(xdec.astype(bf16), wih_d, preferred_element_type=f32) + b_d   # (S*B, 16H)

    # ---- decoder recurrence: dec1+dec2 fused, padded to 4 dirs (128-lane gates) -
    # h/c column layout: [ dec1 | dec2 | zero-pad | zero-pad ]
    h_d = jnp.zeros((B, G), f32)
    c_d = jnp.zeros((B, G), f32)
    ys = []
    for t in range(S):
        gates = ig_d[t * B:(t + 1) * B, :] + jnp.dot(
            h_d.astype(bf16), whh_d, preferred_element_type=f32)       # (B, 16H)
        gi = _sigmoid(gates[:, 0 * G:1 * G])
        gf = _sigmoid(gates[:, 1 * G:2 * G])
        gg = jnp.tanh(gates[:, 2 * G:3 * G])
        go = _sigmoid(gates[:, 3 * G:4 * G])
        c_d = gf * c_d + gi * gg
        h_d = go * jnp.tanh(c_d)                                       # cols: [y1 | y2 | 0 | 0]
        ys.append(h_d)

    # ---- epilogue on the whole block: gelu(y1)*x_dec + y2, logits, masked_fill --
    y_all = jnp.concatenate(ys, axis=0)                                # (S*B, 4H) time-major
    xh = _gelu(y_all[:, 0:H]) * xdec + y_all[:, H:2 * H]               # (S*B, H)
    logits = jnp.dot(xh.astype(bf16), wl, preferred_element_type=f32) + bl     # (S*B, V)
    xhat = jnp.where(mask > 0.5, logits, -1000000000.0)

    # ---- single lane-dense store of the packed output slab ----------------------
    small = jnp.concatenate([mu, sigma, z], axis=0)                    # (3B, L)
    rows = [
        jnp.concatenate([xhat, jnp.zeros((S * B, _OUT_LANES - V), f32)], axis=1),
        jnp.concatenate([small, jnp.zeros((3 * B, _OUT_LANES - L), f32)], axis=1),
    ]
    pad_rows = out_ref.shape[0] - (S * B + 3 * B)
    if pad_rows:
        rows.append(jnp.zeros((pad_rows, _OUT_LANES), f32))
    out_ref[...] = jnp.concatenate(rows, axis=0)


# ---------------------------------------------------------------------------
# One-time parameter preprocessing: fuse LSTM directions along the gate axis
# and pack everything into three contiguous VMEM slabs.
# ---------------------------------------------------------------------------
def _fuse_lstm_dirs(dir_params, input_slots, n_slots, H):
    """Fuse several LSTM directions into one weight set.

    Returns:
      wih: (n_slots*H, n_dir*4H)  input weights; each direction reads only the
           rows of its input slot (zeros elsewhere).
      whh: (n_dir*H, n_dir*4H)    block-diagonal recurrent weights.
      b  : (1, n_dir*4H)          summed ih+hh biases.
    Columns are gate-major (all i, then f, g, o), direction-minor inside each
    gate block, so in-kernel gate slices span whole (n_dir*H)-lane blocks.
    """
    n_dir = len(dir_params)
    zH = jnp.zeros((H, H), jnp.float32)
    wih_cols, whh_cols, b_cols = [], [], []
    for g in range(4):                              # torch gate order: i, f, g, o
        for d, p in enumerate(dir_params):
            wt = jnp.transpose(p["w_ih"])[:, g * H:(g + 1) * H]         # (H, H)
            blocks = [zH] * n_slots
            blocks[input_slots[d]] = wt
            wih_cols.append(jnp.concatenate(blocks, axis=0))            # (n_slots*H, H)
            ht = jnp.transpose(p["w_hh"])[:, g * H:(g + 1) * H]         # (H, H)
            hblocks = [zH] * n_dir
            hblocks[d] = ht
            whh_cols.append(jnp.concatenate(hblocks, axis=0))           # (n_dir*H, H)
            b_cols.append((p["b_ih"] + p["b_hh"])[g * H:(g + 1) * H])
    return (jnp.concatenate(wih_cols, axis=1),
            jnp.concatenate(whh_cols, axis=1),
            jnp.concatenate(b_cols).reshape(1, -1))


def fuse_params(params):
    """One-time conversion of PyTorch-layout params into three packed kernel slabs."""
    H, L, V, S, B = HIDDEN, LATENT, MAX_VALUE, N_PARAMS, BATCH
    f32, bf16 = jnp.float32, jnp.bfloat16
    GW = 16 * H                                      # 512 gate lanes

    wih_e, whh_e, b_e = _fuse_lstm_dirs(
        [params["enc1_f"], params["enc1_r"], params["enc2_f"], params["enc2_r"]],
        input_slots=[0, 1, 0, 1], n_slots=2, H=H)    # fwd dirs read slot 0, rev dirs slot 1
    zero_lstm = dict(w_ih=jnp.zeros((4 * H, H), f32), w_hh=jnp.zeros((4 * H, H), f32),
                     b_ih=jnp.zeros((4 * H,), f32), b_hh=jnp.zeros((4 * H,), f32))
    # dec1+dec2 padded with two zero "directions" -> 128-lane gate blocks in-kernel.
    wih_d, whh_d, b_d = _fuse_lstm_dirs(
        [params["dec1"], params["dec2"], zero_lstm, zero_lstm],
        input_slots=[0, 0, 0, 0], n_slots=1, H=H)

    # --- big slab: the four fused LSTM weight matrices (bf16, 512 lanes) ---------
    w_big = jnp.concatenate([wih_e, whh_e, wih_d, whh_d], axis=0).astype(bf16)   # (11H, 16H)

    # --- small slab: 128-lane matrices at 16-aligned row offsets (bf16 packing) --
    def blk(w, rows, lanes=128):
        return jnp.pad(w, ((0, rows - w.shape[0]), (0, lanes - w.shape[1])))
    w_small = jnp.concatenate([
        blk(params["emb"], 16),                               # rows [0,16)   (V, H)
        blk(jnp.transpose(params["qz_w"]), 32),               # rows [16,48)  (H, 2L)
        blk(jnp.transpose(params["logits_w"]), 32),           # rows [48,80)  (H, V)
        blk(jnp.transpose(params["z2x_w"]), 48),              # rows [80,128) (H+L, H)
    ], axis=0).astype(bf16)                                   # (128, 128)

    # --- bias + mask slab: f32 (all elementwise math stays f32) ------------------
    def row(v):
        v = v.reshape(1, -1)
        return jnp.pad(v, ((0, 0), (0, GW - v.shape[1])))
    mask_tm = jnp.repeat(params["mask_f"], B, axis=0)         # (S*B, V), row t*B+b -> mask[t]
    b_slab = jnp.concatenate([
        row(b_e), row(b_d),                                   # rows 0, 1
        row(params["qz_b"]), row(params["z2x_b"]), row(params["logits_b"]),   # rows 2, 3, 4
        jnp.zeros((3, GW), f32),                              # rows 5..7 (alignment pad)
        jnp.pad(mask_tm, ((0, 0), (0, GW - V))),              # rows [8, 8+S*B)
    ], axis=0)                                                # (24, 512) f32

    return dict(w_big=w_big, w_small=w_small, b_slab=b_slab)


# ---------------------------------------------------------------------------
# Forward wrapper (one pallas_call; only tiny glue outside).
# ---------------------------------------------------------------------------
def net_forward(fused, x_ids, sample_key):
    """Mirrors Net.forward. Returns (x_hat, (q_z_mu, q_z_sigma), z)."""
    B, S = x_ids.shape
    L, V = LATENT, MAX_VALUE
    # time-major flattened ids (row = t*B + b); tiny op, everything else is in-kernel.
    ids_tm = jnp.transpose(x_ids).reshape(S * B, 1).astype(jnp.int32)
    eps = jax.random.normal(sample_key, (B, L), dtype=jnp.float32)

    out = pl.pallas_call(
        _net_fwd_kernel,
        out_shape=jax.ShapeDtypeStruct((_OUT_ROWS, _OUT_LANES), jnp.float32),
        in_specs=[pl.BlockSpec(memory_space=pltpu.MemorySpace.VMEM)] * 5,
        out_specs=pl.BlockSpec(memory_space=pltpu.MemorySpace.VMEM),
        compiler_params=pltpu.CompilerParams(vmem_limit_bytes=16 * 1024 * 1024),
    )(ids_tm, eps, fused["w_big"], fused["w_small"], fused["b_slab"])

    # unpack the single output slab (all tiny, ~1 KiB of wrapper-side data movement)
    x_hat = out[0:S * B, 0:V].reshape(S, B, V).transpose(1, 0, 2)      # (B, S, V)
    q_mu = out[S * B:S * B + B, 0:L]
    q_sigma = out[S * B + B:S * B + 2 * B, 0:L]
    z = out[S * B + 2 * B:S * B + 3 * B, 0:L]
    # torch returns a Normal distribution object; we return its (mu, sigma).
    return x_hat, (q_mu, q_sigma), z


# ---------------------------------------------------------------------------
# Deterministic parameter construction (shapes as in Net.__init__).
# ---------------------------------------------------------------------------
def init_params(key):
    H, L, V = HIDDEN, LATENT, MAX_VALUE
    ks = iter(jax.random.split(key, 40))
    scale = 1.0 / (H ** 0.5)

    def u(shape):
        return jax.random.uniform(next(ks), shape, jnp.float32, -scale, scale)

    def lstm_p():
        return dict(w_ih=u((4 * H, H)), w_hh=u((4 * H, H)),
                    b_ih=u((4 * H,)), b_hh=u((4 * H,)))

    params = dict(
        emb=jax.random.normal(next(ks), (V, H), dtype=jnp.float32),
        enc1_f=lstm_p(), enc1_r=lstm_p(),        # enc LSTM 1, fwd / reverse dir
        enc2_f=lstm_p(), enc2_r=lstm_p(),        # enc LSTM 2, fwd / reverse dir
        dec1=lstm_p(), dec2=lstm_p(),            # dec LSTMs (unidirectional)
        qz_w=u((2 * L, H)), qz_b=u((2 * L,)),
        z2x_w=u((H, H + L)), z2x_b=u((H,)),
        logits_w=u((V, H)), logits_b=u((V,)),
    )
    # generate_mask(): mask[i, v] = v <= max(range_i)
    mask = jnp.stack([jnp.arange(V) <= max(VOICE_PARAMETER_RANGES[k]) for k in VOICE_KEYS])
    params["mask_f"] = mask.astype(jnp.float32)  # (N_PARAMS, MAX_VALUE)
    return params


if __name__ == "__main__":
    root = jax.random.PRNGKey(0)
    k_param, k_data, k_sample = jax.random.split(root, 3)

    params = init_params(k_param)
    fused = fuse_params(params)                  # one-time weight fusion/packing (outside jit)
    x_ids = jax.random.randint(k_data, (BATCH, N_PARAMS), 0, MAX_VALUE, dtype=jnp.int32)

    fwd = jax.jit(net_forward)
    x_hat, (q_mu, q_sigma), z = fwd(fused, x_ids, k_sample)
    jax.block_until_ready((x_hat, q_mu, q_sigma, z))

    assert x_hat.shape == (BATCH, N_PARAMS, MAX_VALUE)
    assert q_mu.shape == (BATCH, LATENT) and q_sigma.shape == (BATCH, LATENT)
    assert z.shape == (BATCH, LATENT)
    assert bool(jnp.all(jnp.isfinite(z))) and bool(jnp.all(jnp.isfinite(x_hat)))
    print("KERNEL_OK")
</pallas_src>

<mosaic_0001>
module attributes {stable_mosaic.version = 11 : i64} {
  func.func @_net_fwd_kernel(%arg0: memref<16x1xi32, #tpu.memory_space<vmem>>, %arg1: memref<2x8xf32, #tpu.memory_space<vmem>>, %arg2: memref<352x512xbf16, #tpu.memory_space<vmem>>, %arg3: memref<128x128xbf16, #tpu.memory_space<vmem>>, %arg4: memref<24x512xf32, #tpu.memory_space<vmem>>, %arg5: memref<24x128xf32, #tpu.memory_space<vmem>>) attributes {dimension_semantics = [], scalar_prefetch = 0 : i64, scratch_operands = 0 : i64, tpu.core_type = #tpu.core_type<tc>} {
    %c0 = arith.constant 0 : index
    %c0_0 = arith.constant 0 : index
    %0 = vector.load %arg2[%c0, %c0_0] : memref<352x512xbf16, #tpu.memory_space<vmem>>, vector<64x512xbf16>
    %c64 = arith.constant 64 : index
    %c0_1 = arith.constant 0 : index
    %1 = vector.load %arg2[%c64, %c0_1] : memref<352x512xbf16, #tpu.memory_space<vmem>>, vector<128x512xbf16>
    %c192 = arith.constant 192 : index
    %c0_2 = arith.constant 0 : index
    %2 = vector.load %arg2[%c192, %c0_2] : memref<352x512xbf16, #tpu.memory_space<vmem>>, vector<32x512xbf16>
    %c224 = arith.constant 224 : index
    %c0_3 = arith.constant 0 : index
    %3 = vector.load %arg2[%c224, %c0_3] : memref<352x512xbf16, #tpu.memory_space<vmem>>, vector<128x512xbf16>
    %c0_4 = arith.constant 0 : index
    %c0_5 = arith.constant 0 : index
    %4 = vector.load %arg3[%c0_4, %c0_5] : memref<128x128xbf16, #tpu.memory_space<vmem>>, vector<16x32xbf16>
    %c16 = arith.constant 16 : index
    %c0_6 = arith.constant 0 : index
    %5 = vector.load %arg3[%c16, %c0_6] : memref<128x128xbf16, #tpu.memory_space<vmem>>, vector<32x16xbf16>
    %c48 = arith.constant 48 : index
    %c0_7 = arith.constant 0 : index
    %6 = vector.load %arg3[%c48, %c0_7] : memref<128x128xbf16, #tpu.memory_space<vmem>>, vector<32x16xbf16>
    %c80 = arith.constant 80 : index
    %c0_8 = arith.constant 0 : index
    %7 = vector.load %arg3[%c80, %c0_8] : memref<128x128xbf16, #tpu.memory_space<vmem>>, vector<40x32xbf16>
    %c0_9 = arith.constant 0 : index
    %c0_10 = arith.constant 0 : index
    %8 = vector.load %arg4[%c0_9, %c0_10] : memref<24x512xf32, #tpu.memory_space<vmem>>, vector<1x512xf32>
    %c1 = arith.constant 1 : index
    %c0_11 = arith.constant 0 : index
    %9 = vector.load %arg4[%c1, %c0_11] : memref<24x512xf32, #tpu.memory_space<vmem>>, vector<1x512xf32>
    %c2 = arith.constant 2 : index
    %c0_12 = arith.constant 0 : index
    %10 = vector.load %arg4[%c2, %c0_12] : memref<24x512xf32, #tpu.memory_space<vmem>>, vector<1x16xf32>
    %c3 = arith.constant 3 : index
    %c0_13 = arith.constant 0 : index
    %11 = vector.load %arg4[%c3, %c0_13] : memref<24x512xf32, #tpu.memory_space<vmem>>, vector<1x32xf32>
    %c4 = arith.constant 4 : index
    %c0_14 = arith.constant 0 : index
    %12 = vector.load %arg4[%c4, %c0_14] : memref<24x512xf32, #tpu.memory_space<vmem>>, vector<1x16xf32>
    %c8 = arith.constant 8 : index
    %c0_15 = arith.constant 0 : index
    %13 = vector.load %arg4[%c8, %c0_15] : memref<24x512xf32, #tpu.memory_space<vmem>>, vector<16x16xf32>
    %c0_16 = arith.constant 0 : index
    %c0_17 = arith.constant 0 : index
    %14 = vector.load %arg0[%c0_16, %c0_17] : memref<16x1xi32, #tpu.memory_space<vmem>>, vector<16x1xi32>
    %15 = tpu.iota {dimensions = array<i32: 1>} : vector<16x16xi32>
    %16 = vector.broadcast %14 : vector<16x1xi32> to vector<16x16xi32>
    %17 = arith.cmpi eq, %16, %15 : vector<16x16xi32>
    %18 = arith.extui %17 : vector<16x16xi1> to vector<16x16xi32>
    %19 = arith.sitofp %18 : vector<16x16xi32> to vector<16x16xf32>
    %20 = arith.truncf %19 : vector<16x16xf32> to vector<16x16xbf16>
    %cst = arith.constant dense<0.000000e+00> : vector<16x32xf32>
    %21 = tpu.matmul %20, %4, %cst {dimension_numbers = #tpu.dot_dimension_numbers<[1], [0], [0], [1], [0, 0, 1, 1], [], []>} : vector<16x16xbf16>, vector<16x32xbf16>, vector<16x32xf32> -> vector<16x32xf32>
    %22 = vector.extract_strided_slice %21 {offsets = [14, 0], sizes = [2, 32], strides = [1, 1]} : vector<16x32xf32> to vector<2x32xf32>
    %23 = vector.extract_strided_slice %21 {offsets = [12, 0], sizes = [2, 32], strides = [1, 1]} : vector<16x32xf32> to vector<2x32xf32>
    %24 = vector.extract_strided_slice %21 {offsets = [10, 0], sizes = [2, 32], strides = [1, 1]} : vector<16x32xf32> to vector<2x32xf32>
    %25 = vector.extract_strided_slice %21 {offsets = [8, 0], sizes = [2, 32], strides = [1, 1]} : vector<16x32xf32> to vector<2x32xf32>
    %26 = vector.extract_strided_slice %21 {offsets = [6, 0], sizes = [2, 32], strides = [1, 1]} : vector<16x32xf32> to vector<2x32xf32>
    %27 = vector.extract_strided_slice %21 {offsets = [4, 0], sizes = [2, 32], strides = [1, 1]} : vector<16x32xf32> to vector<2x32xf32>
    %28 = vector.extract_strided_slice %21 {offsets = [2, 0], sizes = [2, 32], strides = [1, 1]} : vector<16x32xf32> to vector<2x32xf32>
    %29 = vector.extract_strided_slice %21 {offsets = [0, 0], sizes = [2, 32], strides = [1, 1]} : vector<16x32xf32> to vector<2x32xf32>
    %30 = tpu.concatenate %22, %23, %24, %25, %26, %27, %28, %29 in 0 : vector<2x32xf32>, vector<2x32xf32>, vector<2x32xf32>, vector<2x32xf32>, vector<2x32xf32>, vector<2x32xf32>, vector<2x32xf32>, vector<2x32xf32> -> vector<16x32xf32>
    %31 = tpu.concatenate %21, %30 in 1 : vector<16x32xf32>, vector<16x32xf32> -> vector<16x64xf32>
    %32 = arith.truncf %31 : vector<16x64xf32> to vector<16x64xbf16>
    %cst_18 = arith.constant dense<0.000000e+00> : vector<16x512xf32>
    %33 = tpu.matmul %32, %0, %cst_18 {dimension_numbers = #tpu.dot_dimension_numbers<[1], [0], [0], [1], [0, 0, 1, 1], [], []>} : vector<16x64xbf16>, vector<64x512xbf16>, vector<16x512xf32> -> vector<16x512xf32>
    %34 = vector.broadcast %8 : vector<1x512xf32> to vector<16x512xf32>
    %35 = arith.addf %33, %34 : vector<16x512xf32>
    %cst_19 = arith.constant 0.000000e+00 : f32
    %36 = vector.broadcast %cst_19 : f32 to vector<2x128xf32>
    %cst_20 = arith.constant 0.000000e+00 : f32
    %37 = vector.broadcast %cst_20 : f32 to vector<2x128xf32>
    %38 = vector.extract_strided_slice %35 {offsets = [0, 0], sizes = [2, 512], strides = [1, 1]} : vector<16x512xf32> to vector<2x512xf32>
    %39 = arith.truncf %36 : vector<2x128xf32> to vector<2x128xbf16>
    %cst_21 = arith.constant dense<0.000000e+00> : vector<2x512xf32>
    %40 = tpu.matmul %39, %1, %cst_21 {dimension_numbers = #tpu.dot_dimension_numbers<[1], [0], [0], [1], [0, 0, 1, 1], [], []>} : vector<2x128xbf16>, vector<128x512xbf16>, vector<2x512xf32> -> vector<2x512xf32>
    %41 = arith.addf %38, %40 : vector<2x512xf32>
    %42 = vector.extract_strided_slice %41 {offsets = [0, 0], sizes = [2, 128], strides = [1, 1]} : vector<2x512xf32> to vector<2x128xf32>
    %cst_22 = arith.constant 5.000000e-01 : f32
    %43 = vector.broadcast %cst_22 : f32 to vector<2x128xf32>
    %44 = arith.mulf %43, %42 : vector<2x128xf32>
    %45 = math.tanh %44 : vector<2x128xf32>
    %cst_23 = arith.constant 1.000000e+00 : f32
    %46 = vector.broadcast %cst_23 : f32 to vector<2x128xf32>
    %47 = arith.addf %45, %46 : vector<2x128xf32>
    %cst_24 = arith.constant 5.000000e-01 : f32
    %48 = vector.broadcast %cst_24 : f32 to vector<2x128xf32>
    %49 = arith.mulf %48, %47 : vector<2x128xf32>
    %50 = vector.extract_strided_slice %41 {offsets = [0, 128], sizes = [2, 128], strides = [1, 1]} : vector<2x512xf32> to vector<2x128xf32>
    %cst_25 = arith.constant 5.000000e-01 : f32
    %51 = vector.broadcast %cst_25 : f32 to vector<2x128xf32>
    %52 = arith.mulf %51, %50 : vector<2x128xf32>
    %53 = math.tanh %52 : vector<2x128xf32>
    %cst_26 = arith.constant 1.000000e+00 : f32
    %54 = vector.broadcast %cst_26 : f32 to vector<2x128xf32>
    %55 = arith.addf %53, %54 : vector<2x128xf32>
    %cst_27 = arith.constant 5.000000e-01 : f32
    %56 = vector.broadcast %cst_27 : f32 to vector<2x128xf32>
    %57 = arith.mulf %56, %55 : vector<2x128xf32>
    %58 = vector.extract_strided_slice %41 {offsets = [0, 256], sizes = [2, 128], strides = [1, 1]} : vector<2x512xf32> to vector<2x128xf32>
    %59 = math.tanh %58 : vector<2x128xf32>
    %60 = vector.extract_strided_slice %41 {offsets = [0, 384], sizes = [2, 128], strides = [1, 1]} : vector<2x512xf32> to vector<2x128xf32>
    %cst_28 = arith.constant 5.000000e-01 : f32
    %61 = vector.broadcast %cst_28 : f32 to vector<2x128xf32>
    %62 = arith.mulf %61, %60 : vector<2x128xf32>
    %63 = math.tanh %62 : vector<2x128xf32>
    %cst_29 = arith.constant 1.000000e+00 : f32
    %64 = vector.broadcast %cst_29 : f32 to vector<2x128xf32>
    %65 = arith.addf %63, %64 : vector<2x128xf32>
    %cst_30 = arith.constant 5.000000e-01 : f32
    %66 = vector.broadcast %cst_30 : f32 to vector<2x128xf32>
    %67 = arith.mulf %66, %65 : vector<2x128xf32>
    %68 = arith.mulf %57, %37 : vector<2x128xf32>
    %69 = arith.mulf %49, %59 : vector<2x128xf32>
    %70 = arith.addf %68, %69 : vector<2x128xf32>
    %71 = math.tanh %70 : vector<2x128xf32>
    %72 = arith.mulf %67, %71 : vector<2x128xf32>
    %73 = vector.extract_strided_slice %35 {offsets = [2, 0], sizes = [2, 512], strides = [1, 1]} : vector<16x512xf32> to vector<2x512xf32>
    %74 = arith.truncf %72 : vector<2x128xf32> to vector<2x128xbf16>
    %cst_31 = arith.constant dense<0.000000e+00> : vector<2x512xf32>
    %75 = tpu.matmul %74, %1, %cst_31 {dimension_numbers = #tpu.dot_dimension_numbers<[1], [0], [0], [1], [0, 0, 1, 1], [], []>} : vector<2x128xbf16>, vector<128x512xbf16>, vector<2x512xf32> -> vector<2x512xf32>
    %76 = arith.addf %73, %75 : vector<2x512xf32>
    %77 = vector.extract_strided_slice %76 {offsets = [0, 0], sizes = [2, 128], strides = [1, 1]} : vector<2x512xf32> to vector<2x128xf32>
    %cst_32 = arith.constant 5.000000e-01 : f32
    %78 = vector.broadcast %cst_32 : f32 to vector<2x128xf32>
    %79 = arith.mulf %78, %77 : vector<2x128xf32>
    %80 = math.tanh %79 : vector<2x128xf32>
    %cst_33 = arith.constant 1.000000e+00 : f32
    %81 = vector.broadcast %cst_33 : f32 to vector<2x128xf32>
    %82 = arith.addf %80, %81 : vector<2x128xf32>
    %cst_34 = arith.constant 5.000000e-01 : f32
    %83 = vector.broadcast %cst_34 : f32 to vector<2x128xf32>
    %84 = arith.mulf %83, %82 : vector<2x128xf32>
    %85 = vector.extract_strided_slice %76 {offsets = [0, 128], sizes = [2, 128], strides = [1, 1]} : vector<2x512xf32> to vector<2x128xf32>
    %cst_35 = arith.constant 5.000000e-01 : f32
    %86 = vector.broadcast %cst_35 : f32 to vector<2x128xf32>
    %87 = arith.mulf %86, %85 : vector<2x128xf32>
    %88 = math.tanh %87 : vector<2x128xf32>
    %cst_36 = arith.constant 1.000000e+00 : f32
    %89 = vector.broadcast %cst_36 : f32 to vector<2x128xf32>
    %90 = arith.addf %88, %89 : vector<2x128xf32>
    %cst_37 = arith.constant 5.000000e-01 : f32
    %91 = vector.broadcast %cst_37 : f32 to vector<2x128xf32>
    %92 = arith.mulf %91, %90 : vector<2x128xf32>
    %93 = vector.extract_strided_slice %76 {offsets = [0, 256], sizes = [2, 128], strides = [1, 1]} : vector<2x512xf32> to vector<2x128xf32>
    %94 = math.tanh %93 : vector<2x128xf32>
    %95 = vector.extract_strided_slice %76 {offsets = [0, 384], sizes = [2, 128], strides = [1, 1]} : vector<2x512xf32> to vector<2x128xf32>
    %cst_38 = arith.constant 5.000000e-01 : f32
    %96 = vector.broadcast %cst_38 : f32 to vector<2x128xf32>
    %97 = arith.mulf %96, %95 : vector<2x128xf32>
    %98 = math.tanh %97 : vector<2x128xf32>
    %cst_39 = arith.constant 1.000000e+00 : f32
    %99 = vector.broadcast %cst_39 : f32 to vector<2x128xf32>
    %100 = arith.addf %98, %99 : vector<2x128xf32>
    %cst_40 = arith.constant 5.000000e-01 : f32
    %101 = vector.broadcast %cst_40 : f32 to vector<2x128xf32>
    %102 = arith.mulf %101, %100 : vector<2x128xf32>
    %103 = arith.mulf %92, %70 : vector<2x128xf32>
    %104 = arith.mulf %84, %94 : vector<2x128xf32>
    %105 = arith.addf %103, %104 : vector<2x128xf32>
    %106 = math.tanh %105 : vector<2x128xf32>
    %107 = arith.mulf %102, %106 : vector<2x128xf32>
    %108 = vector.extract_strided_slice %35 {offsets = [4, 0], sizes = [2, 512], strides = [1, 1]} : vector<16x512xf32> to vector<2x512xf32>
    %109 = arith.truncf %107 : vector<2x128xf32> to vector<2x128xbf16>
    %cst_41 = arith.constant dense<0.000000e+00> : vector<2x512xf32>
    %110 = tpu.matmul %109, %1, %cst_41 {dimension_numbers = #tpu.dot_dimension_numbers<[1], [0], [0], [1], [0, 0, 1, 1], [], []>} : vector<2x128xbf16>, vector<128x512xbf16>, vector<2x512xf32> -> vector<2x512xf32>
    %111 = arith.addf %108, %110 : vector<2x512xf32>
    %112 = vector.extract_strided_slice %111 {offsets = [0, 0], sizes = [2, 128], strides = [1, 1]} : vector<2x512xf32> to vector<2x128xf32>
    %cst_42 = arith.constant 5.000000e-01 : f32
    %113 = vector.broadcast %cst_42 : f32 to vector<2x128xf32>
    %114 = arith.mulf %113, %112 : vector<2x128xf32>
    %115 = math.tanh %114 : vector<2x128xf32>
    %cst_43 = arith.constant 1.000000e+00 : f32
    %116 = vector.broadcast %cst_43 : f32 to vector<2x128xf32>
    %117 = arith.addf %115, %116 : vector<2x128xf32>
    %cst_44 = arith.constant 5.000000e-01 : f32
    %118 = vector.broadcast %cst_44 : f32 to vector<2x128xf32>
    %119 = arith.mulf %118, %117 : vector<2x128xf32>
    %120 = vector.extract_strided_slice %111 {offsets = [0, 128], sizes = [2, 128], strides = [1, 1]} : vector<2x512xf32> to vector<2x128xf32>
    %cst_45 = arith.constant 5.000000e-01 : f32
    %121 = vector.broadcast %cst_45 : f32 to vector<2x128xf32>
    %122 = arith.mulf %121, %120 : vector<2x128xf32>
    %123 = math.tanh %122 : vector<2x128xf32>
    %cst_46 = arith.constant 1.000000e+00 : f32
    %124 = vector.broadcast %cst_46 : f32 to vector<2x128xf32>
    %125 = arith.addf %123, %124 : vector<2x128xf32>
    %cst_47 = arith.constant 5.000000e-01 : f32
    %126 = vector.broadcast %cst_47 : f32 to vector<2x128xf32>
    %127 = arith.mulf %126, %125 : vector<2x128xf32>
    %128 = vector.extract_strided_slice %111 {offsets = [0, 256], sizes = [2, 128], strides = [1, 1]} : vector<2x512xf32> to vector<2x128xf32>
    %129 = math.tanh %128 : vector<2x128xf32>
    %130 = vector.extract_strided_slice %111 {offsets = [0, 384], sizes = [2, 128], strides = [1, 1]} : vector<2x512xf32> to vector<2x128xf32>
    %cst_48 = arith.constant 5.000000e-01 : f32
    %131 = vector.broadcast %cst_48 : f32 to vector<2x128xf32>
    %132 = arith.mulf %131, %130 : vector<2x128xf32>
    %133 = math.tanh %132 : vector<2x128xf32>
    %cst_49 = arith.constant 1.000000e+00 : f32
    %134 = vector.broadcast %cst_49 : f32 to vector<2x128xf32>
    %135 = arith.addf %133, %134 : vector<2x128xf32>
    %cst_50 = arith.constant 5.000000e-01 : f32
    %136 = vector.broadcast %cst_50 : f32 to vector<2x128xf32>
    %137 = arith.mulf %136, %135 : vector<2x128xf32>
    %138 = arith.mulf %127, %105 : vector<2x128xf32>
    %139 = arith.mulf %119, %129 : vector<2x128xf32>
    %140 = arith.addf %138, %139 : vector<2x128xf32>
    %141 = math.tanh %140 : vector<2x128xf32>
    %142 = arith.mulf %137, %141 : vector<2x128xf32>
    %143 = vector.extract_strided_slice %35 {offsets = [6, 0], sizes = [2, 512], strides = [1, 1]} : vector<16x512xf32> to vector<2x512xf32>
    %144 = arith.truncf %142 : vector<2x128xf32> to vector<2x128xbf16>
    %cst_51 = arith.constant dense<0.000000e+00> : vector<2x512xf32>
    %145 = tpu.matmul %144, %1, %cst_51 {dimension_numbers = #tpu.dot_dimension_numbers<[1], [0], [0], [1], [0, 0, 1, 1], [], []>} : vector<2x128xbf16>, vector<128x512xbf16>, vector<2x512xf32> -> vector<2x512xf32>
    %146 = arith.addf %143, %145 : vector<2x512xf32>
    %147 = vector.extract_strided_slice %146 {offsets = [0, 0], sizes = [2, 128], strides = [1, 1]} : vector<2x512xf32> to vector<2x128xf32>
    %cst_52 = arith.constant 5.000000e-01 : f32
    %148 = vector.broadcast %cst_52 : f32 to vector<2x128xf32>
    %149 = arith.mulf %148, %147 : vector<2x128xf32>
    %150 = math.tanh %149 : vector<2x128xf32>
    %cst_53 = arith.constant 1.000000e+00 : f32
    %151 = vector.broadcast %cst_53 : f32 to vector<2x128xf32>
    %152 = arith.addf %150, %151 : vector<2x128xf32>
    %cst_54 = arith.constant 5.000000e-01 : f32
    %153 = vector.broadcast %cst_54 : f32 to vector<2x128xf32>
    %154 = arith.mulf %153, %152 : vector<2x128xf32>
    %155 = vector.extract_strided_slice %146 {offsets = [0, 128], sizes = [2, 128], strides = [1, 1]} : vector<2x512xf32> to vector<2x128xf32>
    %cst_55 = arith.constant 5.000000e-01 : f32
    %156 = vector.broadcast %cst_55 : f32 to vector<2x128xf32>
    %157 = arith.mulf %156, %155 : vector<2x128xf32>
    %158 = math.tanh %157 : vector<2x128xf32>
    %cst_56 = arith.constant 1.000000e+00 : f32
    %159 = vector.broadcast %cst_56 : f32 to vector<2x128xf32>
    %160 = arith.addf %158, %159 : vector<2x128xf32>
    %cst_57 = arith.constant 5.000000e-01 : f32
    %161 = vector.broadcast %cst_57 : f32 to vector<2x128xf32>
    %162 = arith.mulf %161, %160 : vector<2x128xf32>
    %163 = vector.extract_strided_slice %146 {offsets = [0, 256], sizes = [2, 128], strides = [1, 1]} : vector<2x512xf32> to vector<2x128xf32>
    %164 = math.tanh %163 : vector<2x128xf32>
    %165 = vector.extract_strided_slice %146 {offsets = [0, 384], sizes = [2, 128], strides = [1, 1]} : vector<2x512xf32> to vector<2x128xf32>
    %cst_58 = arith.constant 5.000000e-01 : f32
    %166 = vector.broadcast %cst_58 : f32 to vector<2x128xf32>
    %167 = arith.mulf %166, %165 : vector<2x128xf32>
    %168 = math.tanh %167 : vector<2x128xf32>
    %cst_59 = arith.constant 1.000000e+00 : f32
    %169 = vector.broadcast %cst_59 : f32 to vector<2x128xf32>
    %170 = arith.addf %168, %169 : vector<2x128xf32>
    %cst_60 = arith.constant 5.000000e-01 : f32
    %171 = vector.broadcast %cst_60 : f32 to vector<2x128xf32>
    %172 = arith.mulf %171, %170 : vector<2x128xf32>
    %173 = arith.mulf %162, %140 : vector<2x128xf32>
    %174 = arith.mulf %154, %164 : vector<2x128xf32>
    %175 = arith.addf %173, %174 : vector<2x128xf32>
    %176 = math.tanh %175 : vector<2x128xf32>
    %177 = arith.mulf %172, %176 : vector<2x128xf32>
    %178 = vector.extract_strided_slice %35 {offsets = [8, 0], sizes = [2, 512], strides = [1, 1]} : vector<16x512xf32> to vector<2x512xf32>
    %179 = arith.truncf %177 : vector<2x128xf32> to vector<2x128xbf16>
    %cst_61 = arith.constant dense<0.000000e+00> : vector<2x512xf32>
    %180 = tpu.matmul %179, %1, %cst_61 {dimension_numbers = #tpu.dot_dimension_numbers<[1], [0], [0], [1], [0, 0, 1, 1], [], []>} : vector<2x128xbf16>, vector<128x512xbf16>, vector<2x512xf32> -> vector<2x512xf32>
    %181 = arith.addf %178, %180 : vector<2x512xf32>
    %182 = vector.extract_strided_slice %181 {offsets = [0, 0], sizes = [2, 128], strides = [1, 1]} : vector<2x512xf32> to vector<2x128xf32>
    %cst_62 = arith.constant 5.000000e-01 : f32
    %183 = vector.broadcast %cst_62 : f32 to vector<2x128xf32>
    %184 = arith.mulf %183, %182 : vector<2x128xf32>
    %185 = math.tanh %184 : vector<2x128xf32>
    %cst_63 = arith.constant 1.000000e+00 : f32
    %186 = vector.broadcast %cst_63 : f32 to vector<2x128xf32>
    %187 = arith.addf %185, %186 : vector<2x128xf32>
    %cst_64 = arith.constant 5.000000e-01 : f32
    %188 = vector.broadcast %cst_64 : f32 to vector<2x128xf32>
    %189 = arith.mulf %188, %187 : vector<2x128xf32>
    %190 = vector.extract_strided_slice %181 {offsets = [0, 128], sizes = [2, 128], strides = [1, 1]} : vector<2x512xf32> to vector<2x128xf32>
    %cst_65 = arith.constant 5.000000e-01 : f32
    %191 = vector.broadcast %cst_65 : f32 to vector<2x128xf32>
    %192 = arith.mulf %191, %190 : vector<2x128xf32>
    %193 = math.tanh %192 : vector<2x128xf32>
    %cst_66 = arith.constant 1.000000e+00 : f32
    %194 = vector.broadcast %cst_66 : f32 to vector<2x128xf32>
    %195 = arith.addf %193, %194 : vector<2x128xf32>
    %cst_67 = arith.constant 5.000000e-01 : f32
    %196 = vector.broadcast %cst_67 : f32 to vector<2x128xf32>
    %197 = arith.mulf %196, %195 : vector<2x128xf32>
    %198 = vector.extract_strided_slice %181 {offsets = [0, 256], sizes = [2, 128], strides = [1, 1]} : vector<2x512xf32> to vector<2x128xf32>
    %199 = math.tanh %198 : vector<2x128xf32>
    %200 = vector.extract_strided_slice %181 {offsets = [0, 384], sizes = [2, 128], strides = [1, 1]} : vector<2x512xf32> to vector<2x128xf32>
    %cst_68 = arith.constant 5.000000e-01 : f32
    %201 = vector.broadcast %cst_68 : f32 to vector<2x128xf32>
    %202 = arith.mulf %201, %200 : vector<2x128xf32>
    %203 = math.tanh %202 : vector<2x128xf32>
    %cst_69 = arith.constant 1.000000e+00 : f32
    %204 = vector.broadcast %cst_69 : f32 to vector<2x128xf32>
    %205 = arith.addf %203, %204 : vector<2x128xf32>
    %cst_70 = arith.constant 5.000000e-01 : f32
    %206 = vector.broadcast %cst_70 : f32 to vector<2x128xf32>
    %207 = arith.mulf %206, %205 : vector<2x128xf32>
    %208 = arith.mulf %197, %175 : vector<2x128xf32>
    %209 = arith.mulf %189, %199 : vector<2x128xf32>
    %210 = arith.addf %208, %209 : vector<2x128xf32>
    %211 = math.tanh %210 : vector<2x128xf32>
    %212 = arith.mulf %207, %211 : vector<2x128xf32>
    %213 = vector.extract_strided_slice %35 {offsets = [10, 0], sizes = [2, 512], strides = [1, 1]} : vector<16x512xf32> to vector<2x512xf32>
    %214 = arith.truncf %212 : vector<2x128xf32> to vector<2x128xbf16>
    %cst_71 = arith.constant dense<0.000000e+00> : vector<2x512xf32>
    %215 = tpu.matmul %214, %1, %cst_71 {dimension_numbers = #tpu.dot_dimension_numbers<[1], [0], [0], [1], [0, 0, 1, 1], [], []>} : vector<2x128xbf16>, vector<128x512xbf16>, vector<2x512xf32> -> vector<2x512xf32>
    %216 = arith.addf %213, %215 : vector<2x512xf32>
    %217 = vector.extract_strided_slice %216 {offsets = [0, 0], sizes = [2, 128], strides = [1, 1]} : vector<2x512xf32> to vector<2x128xf32>
    %cst_72 = arith.constant 5.000000e-01 : f32
    %218 = vector.broadcast %cst_72 : f32 to vector<2x128xf32>
    %219 = arith.mulf %218, %217 : vector<2x128xf32>
    %220 = math.tanh %219 : vector<2x128xf32>
    %cst_73 = arith.constant 1.000000e+00 : f32
    %221 = vector.broadcast %cst_73 : f32 to vector<2x128xf32>
    %222 = arith.addf %220, %221 : vector<2x128xf32>
    %cst_74 = arith.constant 5.000000e-01 : f32
    %223 = vector.broadcast %cst_74 : f32 to vector<2x128xf32>
    %224 = arith.mulf %223, %222 : vector<2x128xf32>
    %225 = vector.extract_strided_slice %216 {offsets = [0, 128], sizes = [2, 128], strides = [1, 1]} : vector<2x512xf32> to vector<2x128xf32>
    %cst_75 = arith.constant 5.000000e-01 : f32
    %226 = vector.broadcast %cst_75 : f32 to vector<2x128xf32>
    %227 = arith.mulf %226, %225 : vector<2x128xf32>
    %228 = math.tanh %227 : vector<2x128xf32>
    %cst_76 = arith.constant 1.000000e+00 : f32
    %229 = vector.broadcast %cst_76 : f32 to vector<2x128xf32>
    %230 = arith.addf %228, %229 : vector<2x128xf32>
    %cst_77 = arith.constant 5.000000e-01 : f32
    %231 = vector.broadcast %cst_77 : f32 to vector<2x128xf32>
    %232 = arith.mulf %231, %230 : vector<2x128xf32>
    %233 = vector.extract_strided_slice %216 {offsets = [0, 256], sizes = [2, 128], strides = [1, 1]} : vector<2x512xf32> to vector<2x128xf32>
    %234 = math.tanh %233 : vector<2x128xf32>
    %235 = vector.extract_strided_slice %216 {offsets = [0, 384], sizes = [2, 128], strides = [1, 1]} : vector<2x512xf32> to vector<2x128xf32>
    %cst_78 = arith.constant 5.000000e-01 : f32
    %236 = vector.broadcast %cst_78 : f32 to vector<2x128xf32>
    %237 = arith.mulf %236, %235 : vector<2x128xf32>
    %238 = math.tanh %237 : vector<2x128xf32>
    %cst_79 = arith.constant 1.000000e+00 : f32
    %239 = vector.broadcast %cst_79 : f32 to vector<2x128xf32>
    %240 = arith.addf %238, %239 : vector<2x128xf32>
    %cst_80 = arith.constant 5.000000e-01 : f32
    %241 = vector.broadcast %cst_80 : f32 to vector<2x128xf32>
    %242 = arith.mulf %241, %240 : vector<2x128xf32>
    %243 = arith.mulf %232, %210 : vector<2x128xf32>
    %244 = arith.mulf %224, %234 : vector<2x128xf32>
    %245 = arith.addf %243, %244 : vector<2x128xf32>
    %246 = math.tanh %245 : vector<2x128xf32>
    %247 = arith.mulf %242, %246 : vector<2x128xf32>
    %248 = vector.extract_strided_slice %35 {offsets = [12, 0], sizes = [2, 512], strides = [1, 1]} : vector<16x512xf32> to vector<2x512xf32>
    %249 = arith.truncf %247 : vector<2x128xf32> to vector<2x128xbf16>
    %cst_81 = arith.constant dense<0.000000e+00> : vector<2x512xf32>
    %250 = tpu.matmul %249, %1, %cst_81 {dimension_numbers = #tpu.dot_dimension_numbers<[1], [0], [0], [1], [0, 0, 1, 1], [], []>} : vector<2x128xbf16>, vector<128x512xbf16>, vector<2x512xf32> -> vector<2x512xf32>
    %251 = arith.addf %248, %250 : vector<2x512xf32>
    %252 = vector.extract_strided_slice %251 {offsets = [0, 0], sizes = [2, 128], strides = [1, 1]} : vector<2x512xf32> to vector<2x128xf32>
    %cst_82 = arith.constant 5.000000e-01 : f32
    %253 = vector.broadcast %cst_82 : f32 to vector<2x128xf32>
    %254 = arith.mulf %253, %252 : vector<2x128xf32>
    %255 = math.tanh %254 : vector<2x128xf32>
    %cst_83 = arith.constant 1.000000e+00 : f32
    %256 = vector.broadcast %cst_83 : f32 to vector<2x128xf32>
    %257 = arith.addf %255, %256 : vector<2x128xf32>
    %cst_84 = arith.constant 5.000000e-01 : f32
    %258 = vector.broadcast %cst_84 : f32 to vector<2x128xf32>
    %259 = arith.mulf %258, %257 : vector<2x128xf32>
    %260 = vector.extract_strided_slice %251 {offsets = [0, 128], sizes = [2, 128], strides = [1, 1]} : vector<2x512xf32> to vector<2x128xf32>
    %cst_85 = arith.constant 5.000000e-01 : f32
    %261 = vector.broadcast %cst_85 : f32 to vector<2x128xf32>
    %262 = arith.mulf %261, %260 : vector<2x128xf32>
    %263 = math.tanh %262 : vector<2x128xf32>
    %cst_86 = arith.constant 1.000000e+00 : f32
    %264 = vector.broadcast %cst_86 : f32 to vector<2x128xf32>
    %265 = arith.addf %263, %264 : vector<2x128xf32>
    %cst_87 = arith.constant 5.000000e-01 : f32
    %266 = vector.broadcast %cst_87 : f32 to vector<2x128xf32>
    %267 = arith.mulf %266, %265 : vector<2x128xf32>
    %268 = vector.extract_strided_slice %251 {offsets = [0, 256], sizes = [2, 128], strides = [1, 1]} : vector<2x512xf32> to vector<2x128xf32>
    %269 = math.tanh %268 : vector<2x128xf32>
    %270 = vector.extract_strided_slice %251 {offsets = [0, 384], sizes = [2, 128], strides = [1, 1]} : vector<2x512xf32> to vector<2x128xf32>
    %cst_88 = arith.constant 5.000000e-01 : f32
    %271 = vector.broadcast %cst_88 : f32 to vector<2x128xf32>
    %272 = arith.mulf %271, %270 : vector<2x128xf32>
    %273 = math.tanh %272 : vector<2x128xf32>
    %cst_89 = arith.constant 1.000000e+00 : f32
    %274 = vector.broadcast %cst_89 : f32 to vector<2x128xf32>
    %275 = arith.addf %273, %274 : vector<2x128xf32>
    %cst_90 = arith.constant 5.000000e-01 : f32
    %276 = vector.broadcast %cst_90 : f32 to vector<2x128xf32>
    %277 = arith.mulf %276, %275 : vector<2x128xf32>
    %278 = arith.mulf %267, %245 : vector<2x128xf32>
    %279 = arith.mulf %259, %269 : vector<2x128xf32>
    %280 = arith.addf %278, %279 : vector<2x128xf32>
    %281 = math.tanh %280 : vector<2x128xf32>
    %282 = arith.mulf %277, %281 : vector<2x128xf32>
    %283 = vector.extract_strided_slice %35 {offsets = [14, 0], sizes = [2, 512], strides = [1, 1]} : vector<16x512xf32> to vector<2x512xf32>
    %284 = arith.truncf %282 : vector<2x128xf32> to vector<2x128xbf16>
    %cst_91 = arith.constant dense<0.000000e+00> : vector<2x512xf32>
    %285 = tpu.matmul %284, %1, %cst_91 {dimension_numbers = #tpu.dot_dimension_numbers<[1], [0], [0], [1], [0, 0, 1, 1], [], []>} : vector<2x128xbf16>, vector<128x512xbf16>, vector<2x512xf32> -> vector<2x512xf32>
    %286 = arith.addf %283, %285 : vector<2x512xf32>
    %287 = vector.extract_strided_slice %286 {offsets = [0, 0], sizes = [2, 128], strides = [1, 1]} : vector<2x512xf32> to vector<2x128xf32>
    %cst_92 = arith.constant 5.000000e-01 : f32
    %288 = vector.broadcast %cst_92 : f32 to vector<2x128xf32>
    %289 = arith.mulf %288, %287 : vector<2x128xf32>
    %290 = math.tanh %289 : vector<2x128xf32>
    %cst_93 = arith.constant 1.000000e+00 : f32
    %291 = vector.broadcast %cst_93 : f32 to vector<2x128xf32>
    %292 = arith.addf %290, %291 : vector<2x128xf32>
    %cst_94 = arith.constant 5.000000e-01 : f32
    %293 = vector.broadcast %cst_94 : f32 to vector<2x128xf32>
    %294 = arith.mulf %293, %292 : vector<2x128xf32>
    %295 = vector.extract_strided_slice %286 {offsets = [0, 128], sizes = [2, 128], strides = [1, 1]} : vector<2x512xf32> to vector<2x128xf32>
    %cst_95 = arith.constant 5.000000e-01 : f32
    %296 = vector.broadcast %cst_95 : f32 to vector<2x128xf32>
    %297 = arith.mulf %296, %295 : vector<2x128xf32>
    %298 = math.tanh %297 : vector<2x128xf32>
    %cst_96 = arith.constant 1.000000e+00 : f32
    %299 = vector.broadcast %cst_96 : f32 to vector<2x128xf32>
    %300 = arith.addf %298, %299 : vector<2x128xf32>
    %cst_97 = arith.constant 5.000000e-01 : f32
    %301 = vector.broadcast %cst_97 : f32 to vector<2x128xf32>
    %302 = arith.mulf %301, %300 : vector<2x128xf32>
    %303 = vector.extract_strided_slice %286 {offsets = [0, 256], sizes = [2, 128], strides = [1, 1]} : vector<2x512xf32> to vector<2x128xf32>
    %304 = math.tanh %303 : vector<2x128xf32>
    %305 = vector.extract_strided_slice %286 {offsets = [0, 384], sizes = [2, 128], strides = [1, 1]} : vector<2x512xf32> to vector<2x128xf32>
    %cst_98 = arith.constant 5.000000e-01 : f32
    %306 = vector.broadcast %cst_98 : f32 to vector<2x128xf32>
    %307 = arith.mulf %306, %305 : vector<2x128xf32>
    %308 = math.tanh %307 : vector<2x128xf32>
    %cst_99 = arith.constant 1.000000e+00 : f32
    %309 = vector.broadcast %cst_99 : f32 to vector<2x128xf32>
    %310 = arith.addf %308, %309 : vector<2x128xf32>
    %cst_100 = arith.constant 5.000000e-01 : f32
    %311 = vector.broadcast %cst_100 : f32 to vector<2x128xf32>
    %312 = arith.mulf %311, %310 : vector<2x128xf32>
    %313 = arith.mulf %302, %280 : vector<2x128xf32>
    %314 = arith.mulf %294, %304 : vector<2x128xf32>
    %315 = arith.addf %313, %314 : vector<2x128xf32>
    %316 = math.tanh %315 : vector<2x128xf32>
    %317 = arith.mulf %312, %316 : vector<2x128xf32>
    %318 = vector.extract_strided_slice %317 {offsets = [0, 0], sizes = [2, 32], strides = [1, 1]} : vector<2x128xf32> to vector<2x32xf32>
    %319 = vector.extract_strided_slice %317 {offsets = [0, 32], sizes = [2, 32], strides = [1, 1]} : vector<2x128xf32> to vector<2x32xf32>
    %320 = arith.addf %318, %319 : vector<2x32xf32>
    %cst_101 = arith.constant 5.000000e-01 : f32
    %321 = vector.broadcast %cst_101 : f32 to vector<2x32xf32>
    %322 = arith.mulf %321, %320 : vector<2x32xf32>
    %cst_102 = arith.constant 5.000000e-01 : f32
    %323 = vector.broadcast %cst_102 : f32 to vector<2x32xf32>
    %324 = arith.mulf %323, %322 : vector<2x32xf32>
    %cst_103 = arith.constant 0.707106769 : f32
    %325 = vector.broadcast %cst_103 : f32 to vector<2x32xf32>
    %326 = arith.mulf %322, %325 : vector<2x32xf32>
    %cst_104 = arith.constant 0.000000e+00 : f32
    %327 = vector.broadcast %cst_104 : f32 to vector<2x32xf32>
    %328 = arith.cmpf oge, %326, %327 : vector<2x32xf32>
    %cst_105 = arith.constant 1.000000e+00 : f32
    %cst_106 = arith.constant -1.000000e+00 : f32
    %329 = vector.broadcast %cst_105 : f32 to vector<2x32xf32>
    %330 = vector.broadcast %cst_106 : f32 to vector<2x32xf32>
    %331 = arith.select %328, %329, %330 : vector<2x32xi1>, vector<2x32xf32>
    %332 = math.absf %326 : vector<2x32xf32>
    %cst_107 = arith.constant 0.327591091 : f32
    %333 = vector.broadcast %cst_107 : f32 to vector<2x32xf32>
    %334 = arith.mulf %333, %332 : vector<2x32xf32>
    %cst_108 = arith.constant 1.000000e+00 : f32
    %335 = vector.broadcast %cst_108 : f32 to vector<2x32xf32>
    %336 = arith.addf %335, %334 : vector<2x32xf32>
    %cst_109 = arith.constant 1.000000e+00 : f32
    %337 = vector.broadcast %cst_109 : f32 to vector<2x32xf32>
    %338 = arith.divf %337, %336 : vector<2x32xf32>
    %cst_110 = arith.constant 1.06140542 : f32
    %339 = vector.broadcast %cst_110 : f32 to vector<2x32xf32>
    %340 = arith.mulf %339, %338 : vector<2x32xf32>
    %cst_111 = arith.constant -1.45315206 : f32
    %341 = vector.broadcast %cst_111 : f32 to vector<2x32xf32>
    %342 = arith.addf %340, %341 : vector<2x32xf32>
    %343 = arith.mulf %342, %338 : vector<2x32xf32>
    %cst_112 = arith.constant 1.42141378 : f32
    %344 = vector.broadcast %cst_112 : f32 to vector<2x32xf32>
    %345 = arith.addf %343, %344 : vector<2x32xf32>
    %346 = arith.mulf %345, %338 : vector<2x32xf32>
    %cst_113 = arith.constant -0.284496725 : f32
    %347 = vector.broadcast %cst_113 : f32 to vector<2x32xf32>
    %348 = arith.addf %346, %347 : vector<2x32xf32>
    %349 = arith.mulf %348, %338 : vector<2x32xf32>
    %cst_114 = arith.constant 0.254829586 : f32
    %350 = vector.broadcast %cst_114 : f32 to vector<2x32xf32>
    %351 = arith.addf %349, %350 : vector<2x32xf32>
    %352 = arith.mulf %351, %338 : vector<2x32xf32>
    %cst_115 = arith.constant 0.000000e+00 : f32
    %353 = vector.broadcast %cst_115 : f32 to vector<2x32xf32>
    %354 = arith.subf %353, %332 : vector<2x32xf32>
    %355 = arith.mulf %354, %332 : vector<2x32xf32>
    %356 = math.exp %355 : vector<2x32xf32>
    %357 = arith.mulf %352, %356 : vector<2x32xf32>
    %cst_116 = arith.constant 1.000000e+00 : f32
    %358 = vector.broadcast %cst_116 : f32 to vector<2x32xf32>
    %359 = arith.subf %358, %357 : vector<2x32xf32>
    %360 = arith.mulf %331, %359 : vector<2x32xf32>
    %cst_117 = arith.constant 1.000000e+00 : f32
    %361 = vector.broadcast %cst_117 : f32 to vector<2x32xf32>
    %362 = arith.addf %361, %360 : vector<2x32xf32>
    %363 = arith.mulf %324, %362 : vector<2x32xf32>
    %364 = vector.extract_strided_slice %317 {offsets = [0, 64], sizes = [2, 32], strides = [1, 1]} : vector<2x128xf32> to vector<2x32xf32>
    %365 = vector.extract_strided_slice %317 {offsets = [0, 96], sizes = [2, 32], strides = [1, 1]} : vector<2x128xf32> to vector<2x32xf32>
    %366 = arith.addf %364, %365 : vector<2x32xf32>
    %cst_118 = arith.constant 5.000000e-01 : f32
    %367 = vector.broadcast %cst_118 : f32 to vector<2x32xf32>
    %368 = arith.mulf %367, %366 : vector<2x32xf32>
    %369 = arith.addf %363, %368 : vector<2x32xf32>
    %370 = arith.truncf %369 : vector<2x32xf32> to vector<2x32xbf16>
    %cst_119 = arith.constant dense<0.000000e+00> : vector<2x16xf32>
    %371 = tpu.matmul %370, %5, %cst_119 {dimension_numbers = #tpu.dot_dimension_numbers<[1], [0], [0], [1], [0, 0, 1, 1], [], []>} : vector<2x32xbf16>, vector<32x16xbf16>, vector<2x16xf32> -> vector<2x16xf32>
    %372 = vector.broadcast %10 : vector<1x16xf32> to vector<2x16xf32>
    %373 = arith.addf %371, %372 : vector<2x16xf32>
    %374 = vector.extract_strided_slice %373 {offsets = [0, 0], sizes = [2, 8], strides = [1, 1]} : vector<2x16xf32> to vector<2x8xf32>
    %375 = vector.extract_strided_slice %373 {offsets = [0, 8], sizes = [2, 8], strides = [1, 1]} : vector<2x16xf32> to vector<2x8xf32>
    %cst_120 = arith.constant -5.000000e+00 : f32
    %cst_121 = arith.constant 3.000000e+00 : f32
    %376 = vector.broadcast %cst_120 : f32 to vector<2x8xf32>
    %377 = arith.maximumf %376, %375 : vector<2x8xf32>
    %378 = vector.broadcast %cst_121 : f32 to vector<2x8xf32>
    %379 = arith.minimumf %378, %377 : vector<2x8xf32>
    %cst_122 = arith.constant 5.000000e-01 : f32
    %380 = vector.broadcast %cst_122 : f32 to vector<2x8xf32>
    %381 = arith.mulf %380, %379 : vector<2x8xf32>
    %382 = math.exp %381 : vector<2x8xf32>
    %c0_123 = arith.constant 0 : index
    %c0_124 = arith.constant 0 : index
    %383 = vector.load %arg1[%c0_123, %c0_124] : memref<2x8xf32, #tpu.memory_space<vmem>>, vector<2x8xf32>
    %384 = arith.mulf %382, %383 : vector<2x8xf32>
    %385 = arith.addf %374, %384 : vector<2x8xf32>
    %cst_125 = arith.constant 0.000000e+00 : f32
    %386 = vector.broadcast %cst_125 : f32 to vector<2x32xf32>
    %387 = vector.extract_strided_slice %21 {offsets = [0, 0], sizes = [14, 32], strides = [1, 1]} : vector<16x32xf32> to vector<14x32xf32>
    %388 = tpu.concatenate %386, %387 in 0 : vector<2x32xf32>, vector<14x32xf32> -> vector<16x32xf32>
    %389 = tpu.concatenate %385, %385, %385, %385, %385, %385, %385, %385 in 0 : vector<2x8xf32>, vector<2x8xf32>, vector<2x8xf32>, vector<2x8xf32>, vector<2x8xf32>, vector<2x8xf32>, vector<2x8xf32>, vector<2x8xf32> -> vector<16x8xf32>
    %390 = tpu.concatenate %388, %389 in 1 : vector<16x32xf32>, vector<16x8xf32> -> vector<16x40xf32>
    %391 = arith.truncf %390 : vector<16x40xf32> to vector<16x40xbf16>
    %cst_126 = arith.constant dense<0.000000e+00> : vector<16x32xf32>
    %392 = tpu.matmul %391, %7, %cst_126 {dimension_numbers = #tpu.dot_dimension_numbers<[1], [0], [0], [1], [0, 0, 1, 1], [], []>} : vector<16x40xbf16>, vector<40x32xbf16>, vector<16x32xf32> -> vector<16x32xf32>
    %393 = vector.broadcast %11 : vector<1x32xf32> to vector<16x32xf32>
    %394 = arith.addf %392, %393 : vector<16x32xf32>
    %395 = arith.truncf %394 : vector<16x32xf32> to vector<16x32xbf16>
    %cst_127 = arith.constant dense<0.000000e+00> : vector<16x512xf32>
    %396 = tpu.matmul %395, %2, %cst_127 {dimension_numbers = #tpu.dot_dimension_numbers<[1], [0], [0], [1], [0, 0, 1, 1], [], []>} : vector<16x32xbf16>, vector<32x512xbf16>, vector<16x512xf32> -> vector<16x512xf32>
    %397 = vector.broadcast %9 : vector<1x512xf32> to vector<16x512xf32>
    %398 = arith.addf %396, %397 : vector<16x512xf32>
    %cst_128 = arith.constant 0.000000e+00 : f32
    %399 = vector.broadcast %cst_128 : f32 to vector<2x128xf32>
    %cst_129 = arith.constant 0.000000e+00 : f32
    %400 = vector.broadcast %cst_129 : f32 to vector<2x128xf32>
    %401 = vector.extract_strided_slice %398 {offsets = [0, 0], sizes = [2, 512], strides = [1, 1]} : vector<16x512xf32> to vector<2x512xf32>
    %402 = arith.truncf %399 : vector<2x128xf32> to vector<2x128xbf16>
    %cst_130 = arith.constant dense<0.000000e+00> : vector<2x512xf32>
    %403 = tpu.matmul %402, %3, %cst_130 {dimension_numbers = #tpu.dot_dimension_numbers<[1], [0], [0], [1], [0, 0, 1, 1], [], []>} : vector<2x128xbf16>, vector<128x512xbf16>, vector<2x512xf32> -> vector<2x512xf32>
    %404 = arith.addf %401, %403 : vector<2x512xf32>
    %405 = vector.extract_strided_slice %404 {offsets = [0, 0], sizes = [2, 128], strides = [1, 1]} : vector<2x512xf32> to vector<2x128xf32>
    %cst_131 = arith.constant 5.000000e-01 : f32
    %406 = vector.broadcast %cst_131 : f32 to vector<2x128xf32>
    %407 = arith.mulf %406, %405 : vector<2x128xf32>
    %408 = math.tanh %407 : vector<2x128xf32>
    %cst_132 = arith.constant 1.000000e+00 : f32
    %409 = vector.broadcast %cst_132 : f32 to vector<2x128xf32>
    %410 = arith.addf %408, %409 : vector<2x128xf32>
    %cst_133 = arith.constant 5.000000e-01 : f32
    %411 = vector.broadcast %cst_133 : f32 to vector<2x128xf32>
    %412 = arith.mulf %411, %410 : vector<2x128xf32>
    %413 = vector.extract_strided_slice %404 {offsets = [0, 128], sizes = [2, 128], strides = [1, 1]} : vector<2x512xf32> to vector<2x128xf32>
    %cst_134 = arith.constant 5.000000e-01 : f32
    %414 = vector.broadcast %cst_134 : f32 to vector<2x128xf32>
    %415 = arith.mulf %414, %413 : vector<2x128xf32>
    %416 = math.tanh %415 : vector<2x128xf32>
    %cst_135 = arith.constant 1.000000e+00 : f32
    %417 = vector.broadcast %cst_135 : f32 to vector<2x128xf32>
    %418 = arith.addf %416, %417 : vector<2x128xf32>
    %cst_136 = arith.constant 5.000000e-01 : f32
    %419 = vector.broadcast %cst_136 : f32 to vector<2x128xf32>
    %420 = arith.mulf %419, %418 : vector<2x128xf32>
    %421 = vector.extract_strided_slice %404 {offsets = [0, 256], sizes = [2, 128], strides = [1, 1]} : vector<2x512xf32> to vector<2x128xf32>
    %422 = math.tanh %421 : vector<2x128xf32>
    %423 = vector.extract_strided_slice %404 {offsets = [0, 384], sizes = [2, 128], strides = [1, 1]} : vector<2x512xf32> to vector<2x128xf32>
    %cst_137 = arith.constant 5.000000e-01 : f32
    %424 = vector.broadcast %cst_137 : f32 to vector<2x128xf32>
    %425 = arith.mulf %424, %423 : vector<2x128xf32>
    %426 = math.tanh %425 : vector<2x128xf32>
    %cst_138 = arith.constant 1.000000e+00 : f32
    %427 = vector.broadcast %cst_138 : f32 to vector<2x128xf32>
    %428 = arith.addf %426, %427 : vector<2x128xf32>
    %cst_139 = arith.constant 5.000000e-01 : f32
    %429 = vector.broadcast %cst_139 : f32 to vector<2x128xf32>
    %430 = arith.mulf %429, %428 : vector<2x128xf32>
    %431 = arith.mulf %420, %400 : vector<2x128xf32>
    %432 = arith.mulf %412, %422 : vector<2x128xf32>
    %433 = arith.addf %431, %432 : vector<2x128xf32>
    %434 = math.tanh %433 : vector<2x128xf32>
    %435 = arith.mulf %430, %434 : vector<2x128xf32>
    %436 = vector.extract_strided_slice %398 {offsets = [2, 0], sizes = [2, 512], strides = [1, 1]} : vector<16x512xf32> to vector<2x512xf32>
    %437 = arith.truncf %435 : vector<2x128xf32> to vector<2x128xbf16>
    %cst_140 = arith.constant dense<0.000000e+00> : vector<2x512xf32>
    %438 = tpu.matmul %437, %3, %cst_140 {dimension_numbers = #tpu.dot_dimension_numbers<[1], [0], [0], [1], [0, 0, 1, 1], [], []>} : vector<2x128xbf16>, vector<128x512xbf16>, vector<2x512xf32> -> vector<2x512xf32>
    %439 = arith.addf %436, %438 : vector<2x512xf32>
    %440 = vector.extract_strided_slice %439 {offsets = [0, 0], sizes = [2, 128], strides = [1, 1]} : vector<2x512xf32> to vector<2x128xf32>
    %cst_141 = arith.constant 5.000000e-01 : f32
    %441 = vector.broadcast %cst_141 : f32 to vector<2x128xf32>
    %442 = arith.mulf %441, %440 : vector<2x128xf32>
    %443 = math.tanh %442 : vector<2x128xf32>
    %cst_142 = arith.constant 1.000000e+00 : f32
    %444 = vector.broadcast %cst_142 : f32 to vector<2x128xf32>
    %445 = arith.addf %443, %444 : vector<2x128xf32>
    %cst_143 = arith.constant 5.000000e-01 : f32
    %446 = vector.broadcast %cst_143 : f32 to vector<2x128xf32>
    %447 = arith.mulf %446, %445 : vector<2x128xf32>
    %448 = vector.extract_strided_slice %439 {offsets = [0, 128], sizes = [2, 128], strides = [1, 1]} : vector<2x512xf32> to vector<2x128xf32>
    %cst_144 = arith.constant 5.000000e-01 : f32
    %449 = vector.broadcast %cst_144 : f32 to vector<2x128xf32>
    %450 = arith.mulf %449, %448 : vector<2x128xf32>
    %451 = math.tanh %450 : vector<2x128xf32>
    %cst_145 = arith.constant 1.000000e+00 : f32
    %452 = vector.broadcast %cst_145 : f32 to vector<2x128xf32>
    %453 = arith.addf %451, %452 : vector<2x128xf32>
    %cst_146 = arith.constant 5.000000e-01 : f32
    %454 = vector.broadcast %cst_146 : f32 to vector<2x128xf32>
    %455 = arith.mulf %454, %453 : vector<2x128xf32>
    %456 = vector.extract_strided_slice %439 {offsets = [0, 256], sizes = [2, 128], strides = [1, 1]} : vector<2x512xf32> to vector<2x128xf32>
    %457 = math.tanh %456 : vector<2x128xf32>
    %458 = vector.extract_strided_slice %439 {offsets = [0, 384], sizes = [2, 128], strides = [1, 1]} : vector<2x512xf32> to vector<2x128xf32>
    %cst_147 = arith.constant 5.000000e-01 : f32
    %459 = vector.broadcast %cst_147 : f32 to vector<2x128xf32>
    %460 = arith.mulf %459, %458 : vector<2x128xf32>
    %461 = math.tanh %460 : vector<2x128xf32>
    %cst_148 = arith.constant 1.000000e+00 : f32
    %462 = vector.broadcast %cst_148 : f32 to vector<2x128xf32>
    %463 = arith.addf %461, %462 : vector<2x128xf32>
    %cst_149 = arith.constant 5.000000e-01 : f32
    %464 = vector.broadcast %cst_149 : f32 to vector<2x128xf32>
    %465 = arith.mulf %464, %463 : vector<2x128xf32>
    %466 = arith.mulf %455, %433 : vector<2x128xf32>
    %467 = arith.mulf %447, %457 : vector<2x128xf32>
    %468 = arith.addf %466, %467 : vector<2x128xf32>
    %469 = math.tanh %468 : vector<2x128xf32>
    %470 = arith.mulf %465, %469 : vector<2x128xf32>
    %471 = vector.extract_strided_slice %398 {offsets = [4, 0], sizes = [2, 512], strides = [1, 1]} : vector<16x512xf32> to vector<2x512xf32>
    %472 = arith.truncf %470 : vector<2x128xf32> to vector<2x128xbf16>
    %cst_150 = arith.constant dense<0.000000e+00> : vector<2x512xf32>
    %473 = tpu.matmul %472, %3, %cst_150 {dimension_numbers = #tpu.dot_dimension_numbers<[1], [0], [0], [1], [0, 0, 1, 1], [], []>} : vector<2x128xbf16>, vector<128x512xbf16>, vector<2x512xf32> -> vector<2x512xf32>
    %474 = arith.addf %471, %473 : vector<2x512xf32>
    %475 = vector.extract_strided_slice %474 {offsets = [0, 0], sizes = [2, 128], strides = [1, 1]} : vector<2x512xf32> to vector<2x128xf32>
    %cst_151 = arith.constant 5.000000e-01 : f32
    %476 = vector.broadcast %cst_151 : f32 to vector<2x128xf32>
    %477 = arith.mulf %476, %475 : vector<2x128xf32>
    %478 = math.tanh %477 : vector<2x128xf32>
    %cst_152 = arith.constant 1.000000e+00 : f32
    %479 = vector.broadcast %cst_152 : f32 to vector<2x128xf32>
    %480 = arith.addf %478, %479 : vector<2x128xf32>
    %cst_153 = arith.constant 5.000000e-01 : f32
    %481 = vector.broadcast %cst_153 : f32 to vector<2x128xf32>
    %482 = arith.mulf %481, %480 : vector<2x128xf32>
    %483 = vector.extract_strided_slice %474 {offsets = [0, 128], sizes = [2, 128], strides = [1, 1]} : vector<2x512xf32> to vector<2x128xf32>
    %cst_154 = arith.constant 5.000000e-01 : f32
    %484 = vector.broadcast %cst_154 : f32 to vector<2x128xf32>
    %485 = arith.mulf %484, %483 : vector<2x128xf32>
    %486 = math.tanh %485 : vector<2x128xf32>
    %cst_155 = arith.constant 1.000000e+00 : f32
    %487 = vector.broadcast %cst_155 : f32 to vector<2x128xf32>
    %488 = arith.addf %486, %487 : vector<2x128xf32>
    %cst_156 = arith.constant 5.000000e-01 : f32
    %489 = vector.broadcast %cst_156 : f32 to vector<2x128xf32>
    %490 = arith.mulf %489, %488 : vector<2x128xf32>
    %491 = vector.extract_strided_slice %474 {offsets = [0, 256], sizes = [2, 128], strides = [1, 1]} : vector<2x512xf32> to vector<2x128xf32>
    %492 = math.tanh %491 : vector<2x128xf32>
    %493 = vector.extract_strided_slice %474 {offsets = [0, 384], sizes = [2, 128], strides = [1, 1]} : vector<2x512xf32> to vector<2x128xf32>
    %cst_157 = arith.constant 5.000000e-01 : f32
    %494 = vector.broadcast %cst_157 : f32 to vector<2x128xf32>
    %495 = arith.mulf %494, %493 : vector<2x128xf32>
    %496 = math.tanh %495 : vector<2x128xf32>
    %cst_158 = arith.constant 1.000000e+00 : f32
    %497 = vector.broadcast %cst_158 : f32 to vector<2x128xf32>
    %498 = arith.addf %496, %497 : vector<2x128xf32>
    %cst_159 = arith.constant 5.000000e-01 : f32
    %499 = vector.broadcast %cst_159 : f32 to vector<2x128xf32>
    %500 = arith.mulf %499, %498 : vector<2x128xf32>
    %501 = arith.mulf %490, %468 : vector<2x128xf32>
    %502 = arith.mulf %482, %492 : vector<2x128xf32>
    %503 = arith.addf %501, %502 : vector<2x128xf32>
    %504 = math.tanh %503 : vector<2x128xf32>
    %505 = arith.mulf %500, %504 : vector<2x128xf32>
    %506 = vector.extract_strided_slice %398 {offsets = [6, 0], sizes = [2, 512], strides = [1, 1]} : vector<16x512xf32> to vector<2x512xf32>
    %507 = arith.truncf %505 : vector<2x128xf32> to vector<2x128xbf16>
    %cst_160 = arith.constant dense<0.000000e+00> : vector<2x512xf32>
    %508 = tpu.matmul %507, %3, %cst_160 {dimension_numbers = #tpu.dot_dimension_numbers<[1], [0], [0], [1], [0, 0, 1, 1], [], []>} : vector<2x128xbf16>, vector<128x512xbf16>, vector<2x512xf32> -> vector<2x512xf32>
    %509 = arith.addf %506, %508 : vector<2x512xf32>
    %510 = vector.extract_strided_slice %509 {offsets = [0, 0], sizes = [2, 128], strides = [1, 1]} : vector<2x512xf32> to vector<2x128xf32>
    %cst_161 = arith.constant 5.000000e-01 : f32
    %511 = vector.broadcast %cst_161 : f32 to vector<2x128xf32>
    %512 = arith.mulf %511, %510 : vector<2x128xf32>
    %513 = math.tanh %512 : vector<2x128xf32>
    %cst_162 = arith.constant 1.000000e+00 : f32
    %514 = vector.broadcast %cst_162 : f32 to vector<2x128xf32>
    %515 = arith.addf %513, %514 : vector<2x128xf32>
    %cst_163 = arith.constant 5.000000e-01 : f32
    %516 = vector.broadcast %cst_163 : f32 to vector<2x128xf32>
    %517 = arith.mulf %516, %515 : vector<2x128xf32>
    %518 = vector.extract_strided_slice %509 {offsets = [0, 128], sizes = [2, 128], strides = [1, 1]} : vector<2x512xf32> to vector<2x128xf32>
    %cst_164 = arith.constant 5.000000e-01 : f32
    %519 = vector.broadcast %cst_164 : f32 to vector<2x128xf32>
    %520 = arith.mulf %519, %518 : vector<2x128xf32>
    %521 = math.tanh %520 : vector<2x128xf32>
    %cst_165 = arith.constant 1.000000e+00 : f32
    %522 = vector.broadcast %cst_165 : f32 to vector<2x128xf32>
    %523 = arith.addf %521, %522 : vector<2x128xf32>
    %cst_166 = arith.constant 5.000000e-01 : f32
    %524 = vector.broadcast %cst_166 : f32 to vector<2x128xf32>
    %525 = arith.mulf %524, %523 : vector<2x128xf32>
    %526 = vector.extract_strided_slice %509 {offsets = [0, 256], sizes = [2, 128], strides = [1, 1]} : vector<2x512xf32> to vector<2x128xf32>
    %527 = math.tanh %526 : vector<2x128xf32>
    %528 = vector.extract_strided_slice %509 {offsets = [0, 384], sizes = [2, 128], strides = [1, 1]} : vector<2x512xf32> to vector<2x128xf32>
    %cst_167 = arith.constant 5.000000e-01 : f32
    %529 = vector.broadcast %cst_167 : f32 to vector<2x128xf32>
    %530 = arith.mulf %529, %528 : vector<2x128xf32>
    %531 = math.tanh %530 : vector<2x128xf32>
    %cst_168 = arith.constant 1.000000e+00 : f32
    %532 = vector.broadcast %cst_168 : f32 to vector<2x128xf32>
    %533 = arith.addf %531, %532 : vector<2x128xf32>
    %cst_169 = arith.constant 5.000000e-01 : f32
    %534 = vector.broadcast %cst_169 : f32 to vector<2x128xf32>
    %535 = arith.mulf %534, %533 : vector<2x128xf32>
    %536 = arith.mulf %525, %503 : vector<2x128xf32>
    %537 = arith.mulf %517, %527 : vector<2x128xf32>
    %538 = arith.addf %536, %537 : vector<2x128xf32>
    %539 = math.tanh %538 : vector<2x128xf32>
    %540 = arith.mulf %535, %539 : vector<2x128xf32>
    %541 = vector.extract_strided_slice %398 {offsets = [8, 0], sizes = [2, 512], strides = [1, 1]} : vector<16x512xf32> to vector<2x512xf32>
    %542 = arith.truncf %540 : vector<2x128xf32> to vector<2x128xbf16>
    %cst_170 = arith.constant dense<0.000000e+00> : vector<2x512xf32>
    %543 = tpu.matmul %542, %3, %cst_170 {dimension_numbers = #tpu.dot_dimension_numbers<[1], [0], [0], [1], [0, 0, 1, 1], [], []>} : vector<2x128xbf16>, vector<128x512xbf16>, vector<2x512xf32> -> vector<2x512xf32>
    %544 = arith.addf %541, %543 : vector<2x512xf32>
    %545 = vector.extract_strided_slice %544 {offsets = [0, 0], sizes = [2, 128], strides = [1, 1]} : vector<2x512xf32> to vector<2x128xf32>
    %cst_171 = arith.constant 5.000000e-01 : f32
    %546 = vector.broadcast %cst_171 : f32 to vector<2x128xf32>
    %547 = arith.mulf %546, %545 : vector<2x128xf32>
    %548 = math.tanh %547 : vector<2x128xf32>
    %cst_172 = arith.constant 1.000000e+00 : f32
    %549 = vector.broadcast %cst_172 : f32 to vector<2x128xf32>
    %550 = arith.addf %548, %549 : vector<2x128xf32>
    %cst_173 = arith.constant 5.000000e-01 : f32
    %551 = vector.broadcast %cst_173 : f32 to vector<2x128xf32>
    %552 = arith.mulf %551, %550 : vector<2x128xf32>
    %553 = vector.extract_strided_slice %544 {offsets = [0, 128], sizes = [2, 128], strides = [1, 1]} : vector<2x512xf32> to vector<2x128xf32>
    %cst_174 = arith.constant 5.000000e-01 : f32
    %554 = vector.broadcast %cst_174 : f32 to vector<2x128xf32>
    %555 = arith.mulf %554, %553 : vector<2x128xf32>
    %556 = math.tanh %555 : vector<2x128xf32>
    %cst_175 = arith.constant 1.000000e+00 : f32
    %557 = vector.broadcast %cst_175 : f32 to vector<2x128xf32>
    %558 = arith.addf %556, %557 : vector<2x128xf32>
    %cst_176 = arith.constant 5.000000e-01 : f32
    %559 = vector.broadcast %cst_176 : f32 to vector<2x128xf32>
    %560 = arith.mulf %559, %558 : vector<2x128xf32>
    %561 = vector.extract_strided_slice %544 {offsets = [0, 256], sizes = [2, 128], strides = [1, 1]} : vector<2x512xf32> to vector<2x128xf32>
    %562 = math.tanh %561 : vector<2x128xf32>
    %563 = vector.extract_strided_slice %544 {offsets = [0, 384], sizes = [2, 128], strides = [1, 1]} : vector<2x512xf32> to vector<2x128xf32>
    %cst_177 = arith.constant 5.000000e-01 : f32
    %564 = vector.broadcast %cst_177 : f32 to vector<2x128xf32>
    %565 = arith.mulf %564, %563 : vector<2x128xf32>
    %566 = math.tanh %565 : vector<2x128xf32>
    %cst_178 = arith.constant 1.000000e+00 : f32
    %567 = vector.broadcast %cst_178 : f32 to vector<2x128xf32>
    %568 = arith.addf %566, %567 : vector<2x128xf32>
    %cst_179 = arith.constant 5.000000e-01 : f32
    %569 = vector.broadcast %cst_179 : f32 to vector<2x128xf32>
    %570 = arith.mulf %569, %568 : vector<2x128xf32>
    %571 = arith.mulf %560, %538 : vector<2x128xf32>
    %572 = arith.mulf %552, %562 : vector<2x128xf32>
    %573 = arith.addf %571, %572 : vector<2x128xf32>
    %574 = math.tanh %573 : vector<2x128xf32>
    %575 = arith.mulf %570, %574 : vector<2x128xf32>
    %576 = vector.extract_strided_slice %398 {offsets = [10, 0], sizes = [2, 512], strides = [1, 1]} : vector<16x512xf32> to vector<2x512xf32>
    %577 = arith.truncf %575 : vector<2x128xf32> to vector<2x128xbf16>
    %cst_180 = arith.constant dense<0.000000e+00> : vector<2x512xf32>
    %578 = tpu.matmul %577, %3, %cst_180 {dimension_numbers = #tpu.dot_dimension_numbers<[1], [0], [0], [1], [0, 0, 1, 1], [], []>} : vector<2x128xbf16>, vector<128x512xbf16>, vector<2x512xf32> -> vector<2x512xf32>
    %579 = arith.addf %576, %578 : vector<2x512xf32>
    %580 = vector.extract_strided_slice %579 {offsets = [0, 0], sizes = [2, 128], strides = [1, 1]} : vector<2x512xf32> to vector<2x128xf32>
    %cst_181 = arith.constant 5.000000e-01 : f32
    %581 = vector.broadcast %cst_181 : f32 to vector<2x128xf32>
    %582 = arith.mulf %581, %580 : vector<2x128xf32>
    %583 = math.tanh %582 : vector<2x128xf32>
    %cst_182 = arith.constant 1.000000e+00 : f32
    %584 = vector.broadcast %cst_182 : f32 to vector<2x128xf32>
    %585 = arith.addf %583, %584 : vector<2x128xf32>
    %cst_183 = arith.constant 5.000000e-01 : f32
    %586 = vector.broadcast %cst_183 : f32 to vector<2x128xf32>
    %587 = arith.mulf %586, %585 : vector<2x128xf32>
    %588 = vector.extract_strided_slice %579 {offsets = [0, 128], sizes = [2, 128], strides = [1, 1]} : vector<2x512xf32> to vector<2x128xf32>
    %cst_184 = arith.constant 5.000000e-01 : f32
    %589 = vector.broadcast %cst_184 : f32 to vector<2x128xf32>
    %590 = arith.mulf %589, %588 : vector<2x128xf32>
    %591 = math.tanh %590 : vector<2x128xf32>
    %cst_185 = arith.constant 1.000000e+00 : f32
    %592 = vector.broadcast %cst_185 : f32 to vector<2x128xf32>
    %593 = arith.addf %591, %592 : vector<2x128xf32>
    %cst_186 = arith.constant 5.000000e-01 : f32
    %594 = vector.broadcast %cst_186 : f32 to vector<2x128xf32>
    %595 = arith.mulf %594, %593 : vector<2x128xf32>
    %596 = vector.extract_strided_slice %579 {offsets = [0, 256], sizes = [2, 128], strides = [1, 1]} : vector<2x512xf32> to vector<2x128xf32>
    %597 = math.tanh %596 : vector<2x128xf32>
    %598 = vector.extract_strided_slice %579 {offsets = [0, 384], sizes = [2, 128], strides = [1, 1]} : vector<2x512xf32> to vector<2x128xf32>
    %cst_187 = arith.constant 5.000000e-01 : f32
    %599 = vector.broadcast %cst_187 : f32 to vector<2x128xf32>
    %600 = arith.mulf %599, %598 : vector<2x128xf32>
    %601 = math.tanh %600 : vector<2x128xf32>
    %cst_188 = arith.constant 1.000000e+00 : f32
    %602 = vector.broadcast %cst_188 : f32 to vector<2x128xf32>
    %603 = arith.addf %601, %602 : vector<2x128xf32>
    %cst_189 = arith.constant 5.000000e-01 : f32
    %604 = vector.broadcast %cst_189 : f32 to vector<2x128xf32>
    %605 = arith.mulf %604, %603 : vector<2x128xf32>
    %606 = arith.mulf %595, %573 : vector<2x128xf32>
    %607 = arith.mulf %587, %597 : vector<2x128xf32>
    %608 = arith.addf %606, %607 : vector<2x128xf32>
    %609 = math.tanh %608 : vector<2x128xf32>
    %610 = arith.mulf %605, %609 : vector<2x128xf32>
    %611 = vector.extract_strided_slice %398 {offsets = [12, 0], sizes = [2, 512], strides = [1, 1]} : vector<16x512xf32> to vector<2x512xf32>
    %612 = arith.truncf %610 : vector<2x128xf32> to vector<2x128xbf16>
    %cst_190 = arith.constant dense<0.000000e+00> : vector<2x512xf32>
    %613 = tpu.matmul %612, %3, %cst_190 {dimension_numbers = #tpu.dot_dimension_numbers<[1], [0], [0], [1], [0, 0, 1, 1], [], []>} : vector<2x128xbf16>, vector<128x512xbf16>, vector<2x512xf32> -> vector<2x512xf32>
    %614 = arith.addf %611, %613 : vector<2x512xf32>
    %615 = vector.extract_strided_slice %614 {offsets = [0, 0], sizes = [2, 128], strides = [1, 1]} : vector<2x512xf32> to vector<2x128xf32>
    %cst_191 = arith.constant 5.000000e-01 : f32
    %616 = vector.broadcast %cst_191 : f32 to vector<2x128xf32>
    %617 = arith.mulf %616, %615 : vector<2x128xf32>
    %618 = math.tanh %617 : vector<2x128xf32>
    %cst_192 = arith.constant 1.000000e+00 : f32
    %619 = vector.broadcast %cst_192 : f32 to vector<2x128xf32>
    %620 = arith.addf %618, %619 : vector<2x128xf32>
    %cst_193 = arith.constant 5.000000e-01 : f32
    %621 = vector.broadcast %cst_193 : f32 to vector<2x128xf32>
    %622 = arith.mulf %621, %620 : vector<2x128xf32>
    %623 = vector.extract_strided_slice %614 {offsets = [0, 128], sizes = [2, 128], strides = [1, 1]} : vector<2x512xf32> to vector<2x128xf32>
    %cst_194 = arith.constant 5.000000e-01 : f32
    %624 = vector.broadcast %cst_194 : f32 to vector<2x128xf32>
    %625 = arith.mulf %624, %623 : vector<2x128xf32>
    %626 = math.tanh %625 : vector<2x128xf32>
    %cst_195 = arith.constant 1.000000e+00 : f32
    %627 = vector.broadcast %cst_195 : f32 to vector<2x128xf32>
    %628 = arith.addf %626, %627 : vector<2x128xf32>
    %cst_196 = arith.constant 5.000000e-01 : f32
    %629 = vector.broadcast %cst_196 : f32 to vector<2x128xf32>
    %630 = arith.mulf %629, %628 : vector<2x128xf32>
    %631 = vector.extract_strided_slice %614 {offsets = [0, 256], sizes = [2, 128], strides = [1, 1]} : vector<2x512xf32> to vector<2x128xf32>
    %632 = math.tanh %631 : vector<2x128xf32>
    %633 = vector.extract_strided_slice %614 {offsets = [0, 384], sizes = [2, 128], strides = [1, 1]} : vector<2x512xf32> to vector<2x128xf32>
    %cst_197 = arith.constant 5.000000e-01 : f32
    %634 = vector.broadcast %cst_197 : f32 to vector<2x128xf32>
    %635 = arith.mulf %634, %633 : vector<2x128xf32>
    %636 = math.tanh %635 : vector<2x128xf32>
    %cst_198 = arith.constant 1.000000e+00 : f32
    %637 = vector.broadcast %cst_198 : f32 to vector<2x128xf32>
    %638 = arith.addf %636, %637 : vector<2x128xf32>
    %cst_199 = arith.constant 5.000000e-01 : f32
    %639 = vector.broadcast %cst_199 : f32 to vector<2x128xf32>
    %640 = arith.mulf %639, %638 : vector<2x128xf32>
    %641 = arith.mulf %630, %608 : vector<2x128xf32>
    %642 = arith.mulf %622, %632 : vector<2x128xf32>
    %643 = arith.addf %641, %642 : vector<2x128xf32>
    %644 = math.tanh %643 : vector<2x128xf32>
    %645 = arith.mulf %640, %644 : vector<2x128xf32>
    %646 = vector.extract_strided_slice %398 {offsets = [14, 0], sizes = [2, 512], strides = [1, 1]} : vector<16x512xf32> to vector<2x512xf32>
    %647 = arith.truncf %645 : vector<2x128xf32> to vector<2x128xbf16>
    %cst_200 = arith.constant dense<0.000000e+00> : vector<2x512xf32>
    %648 = tpu.matmul %647, %3, %cst_200 {dimension_numbers = #tpu.dot_dimension_numbers<[1], [0], [0], [1], [0, 0, 1, 1], [], []>} : vector<2x128xbf16>, vector<128x512xbf16>, vector<2x512xf32> -> vector<2x512xf32>
    %649 = arith.addf %646, %648 : vector<2x512xf32>
    %650 = vector.extract_strided_slice %649 {offsets = [0, 0], sizes = [2, 128], strides = [1, 1]} : vector<2x512xf32> to vector<2x128xf32>
    %cst_201 = arith.constant 5.000000e-01 : f32
    %651 = vector.broadcast %cst_201 : f32 to vector<2x128xf32>
    %652 = arith.mulf %651, %650 : vector<2x128xf32>
    %653 = math.tanh %652 : vector<2x128xf32>
    %cst_202 = arith.constant 1.000000e+00 : f32
    %654 = vector.broadcast %cst_202 : f32 to vector<2x128xf32>
    %655 = arith.addf %653, %654 : vector<2x128xf32>
    %cst_203 = arith.constant 5.000000e-01 : f32
    %656 = vector.broadcast %cst_203 : f32 to vector<2x128xf32>
    %657 = arith.mulf %656, %655 : vector<2x128xf32>
    %658 = vector.extract_strided_slice %649 {offsets = [0, 128], sizes = [2, 128], strides = [1, 1]} : vector<2x512xf32> to vector<2x128xf32>
    %cst_204 = arith.constant 5.000000e-01 : f32
    %659 = vector.broadcast %cst_204 : f32 to vector<2x128xf32>
    %660 = arith.mulf %659, %658 : vector<2x128xf32>
    %661 = math.tanh %660 : vector<2x128xf32>
    %cst_205 = arith.constant 1.000000e+00 : f32
    %662 = vector.broadcast %cst_205 : f32 to vector<2x128xf32>
    %663 = arith.addf %661, %662 : vector<2x128xf32>
    %cst_206 = arith.constant 5.000000e-01 : f32
    %664 = vector.broadcast %cst_206 : f32 to vector<2x128xf32>
    %665 = arith.mulf %664, %663 : vector<2x128xf32>
    %666 = vector.extract_strided_slice %649 {offsets = [0, 256], sizes = [2, 128], strides = [1, 1]} : vector<2x512xf32> to vector<2x128xf32>
    %667 = math.tanh %666 : vector<2x128xf32>
    %668 = vector.extract_strided_slice %649 {offsets = [0, 384], sizes = [2, 128], strides = [1, 1]} : vector<2x512xf32> to vector<2x128xf32>
    %cst_207 = arith.constant 5.000000e-01 : f32
    %669 = vector.broadcast %cst_207 : f32 to vector<2x128xf32>
    %670 = arith.mulf %669, %668 : vector<2x128xf32>
    %671 = math.tanh %670 : vector<2x128xf32>
    %cst_208 = arith.constant 1.000000e+00 : f32
    %672 = vector.broadcast %cst_208 : f32 to vector<2x128xf32>
    %673 = arith.addf %671, %672 : vector<2x128xf32>
    %cst_209 = arith.constant 5.000000e-01 : f32
    %674 = vector.broadcast %cst_209 : f32 to vector<2x128xf32>
    %675 = arith.mulf %674, %673 : vector<2x128xf32>
    %676 = arith.mulf %665, %643 : vector<2x128xf32>
    %677 = arith.mulf %657, %667 : vector<2x128xf32>
    %678 = arith.addf %676, %677 : vector<2x128xf32>
    %679 = math.tanh %678 : vector<2x128xf32>
    %680 = arith.mulf %675, %679 : vector<2x128xf32>
    %681 = tpu.concatenate %435, %470, %505, %540, %575, %610, %645, %680 in 0 : vector<2x128xf32>, vector<2x128xf32>, vector<2x128xf32>, vector<2x128xf32>, vector<2x128xf32>, vector<2x128xf32>, vector<2x128xf32>, vector<2x128xf32> -> vector<16x128xf32>
    %682 = vector.extract_strided_slice %681 {offsets = [0, 0], sizes = [16, 32], strides = [1, 1]} : vector<16x128xf32> to vector<16x32xf32>
    %cst_210 = arith.constant 5.000000e-01 : f32
    %683 = vector.broadcast %cst_210 : f32 to vector<16x32xf32>
    %684 = arith.mulf %683, %682 : vector<16x32xf32>
    %cst_211 = arith.constant 0.707106769 : f32
    %685 = vector.broadcast %cst_211 : f32 to vector<16x32xf32>
    %686 = arith.mulf %682, %685 : vector<16x32xf32>
    %cst_212 = arith.constant 0.000000e+00 : f32
    %687 = vector.broadcast %cst_212 : f32 to vector<16x32xf32>
    %688 = arith.cmpf oge, %686, %687 : vector<16x32xf32>
    %cst_213 = arith.constant 1.000000e+00 : f32
    %cst_214 = arith.constant -1.000000e+00 : f32
    %689 = vector.broadcast %cst_213 : f32 to vector<16x32xf32>
    %690 = vector.broadcast %cst_214 : f32 to vector<16x32xf32>
    %691 = arith.select %688, %689, %690 : vector<16x32xi1>, vector<16x32xf32>
    %692 = math.absf %686 : vector<16x32xf32>
    %cst_215 = arith.constant 0.327591091 : f32
    %693 = vector.broadcast %cst_215 : f32 to vector<16x32xf32>
    %694 = arith.mulf %693, %692 : vector<16x32xf32>
    %cst_216 = arith.constant 1.000000e+00 : f32
    %695 = vector.broadcast %cst_216 : f32 to vector<16x32xf32>
    %696 = arith.addf %695, %694 : vector<16x32xf32>
    %cst_217 = arith.constant 1.000000e+00 : f32
    %697 = vector.broadcast %cst_217 : f32 to vector<16x32xf32>
    %698 = arith.divf %697, %696 : vector<16x32xf32>
    %cst_218 = arith.constant 1.06140542 : f32
    %699 = vector.broadcast %cst_218 : f32 to vector<16x32xf32>
    %700 = arith.mulf %699, %698 : vector<16x32xf32>
    %cst_219 = arith.constant -1.45315206 : f32
    %701 = vector.broadcast %cst_219 : f32 to vector<16x32xf32>
    %702 = arith.addf %700, %701 : vector<16x32xf32>
    %703 = arith.mulf %702, %698 : vector<16x32xf32>
    %cst_220 = arith.constant 1.42141378 : f32
    %704 = vector.broadcast %cst_220 : f32 to vector<16x32xf32>
    %705 = arith.addf %703, %704 : vector<16x32xf32>
    %706 = arith.mulf %705, %698 : vector<16x32xf32>
    %cst_221 = arith.constant -0.284496725 : f32
    %707 = vector.broadcast %cst_221 : f32 to vector<16x32xf32>
    %708 = arith.addf %706, %707 : vector<16x32xf32>
    %709 = arith.mulf %708, %698 : vector<16x32xf32>
    %cst_222 = arith.constant 0.254829586 : f32
    %710 = vector.broadcast %cst_222 : f32 to vector<16x32xf32>
    %711 = arith.addf %709, %710 : vector<16x32xf32>
    %712 = arith.mulf %711, %698 : vector<16x32xf32>
    %cst_223 = arith.constant 0.000000e+00 : f32
    %713 = vector.broadcast %cst_223 : f32 to vector<16x32xf32>
    %714 = arith.subf %713, %692 : vector<16x32xf32>
    %715 = arith.mulf %714, %692 : vector<16x32xf32>
    %716 = math.exp %715 : vector<16x32xf32>
    %717 = arith.mulf %712, %716 : vector<16x32xf32>
    %cst_224 = arith.constant 1.000000e+00 : f32
    %718 = vector.broadcast %cst_224 : f32 to vector<16x32xf32>
    %719 = arith.subf %718, %717 : vector<16x32xf32>
    %720 = arith.mulf %691, %719 : vector<16x32xf32>
    %cst_225 = arith.constant 1.000000e+00 : f32
    %721 = vector.broadcast %cst_225 : f32 to vector<16x32xf32>
    %722 = arith.addf %721, %720 : vector<16x32xf32>
    %723 = arith.mulf %684, %722 : vector<16x32xf32>
    %724 = arith.mulf %723, %394 : vector<16x32xf32>
    %725 = vector.extract_strided_slice %681 {offsets = [0, 32], sizes = [16, 32], strides = [1, 1]} : vector<16x128xf32> to vector<16x32xf32>
    %726 = arith.addf %724, %725 : vector<16x32xf32>
    %727 = arith.truncf %726 : vector<16x32xf32> to vector<16x32xbf16>
    %cst_226 = arith.constant dense<0.000000e+00> : vector<16x16xf32>
    %728 = tpu.matmul %727, %6, %cst_226 {dimension_numbers = #tpu.dot_dimension_numbers<[1], [0], [0], [1], [0, 0, 1, 1], [], []>} : vector<16x32xbf16>, vector<32x16xbf16>, vector<16x16xf32> -> vector<16x16xf32>
    %729 = vector.broadcast %12 : vector<1x16xf32> to vector<16x16xf32>
    %730 = arith.addf %728, %729 : vector<16x16xf32>
    %cst_227 = arith.constant 5.000000e-01 : f32
    %731 = vector.broadcast %cst_227 : f32 to vector<16x16xf32>
    %732 = arith.cmpf ogt, %13, %731 : vector<16x16xf32>
    %cst_228 = arith.constant -1.000000e+09 : f32
    %733 = vector.broadcast %cst_228 : f32 to vector<16x16xf32>
    %734 = arith.select %732, %730, %733 : vector<16x16xi1>, vector<16x16xf32>
    %735 = tpu.concatenate %374, %382, %385 in 0 : vector<2x8xf32>, vector<2x8xf32>, vector<2x8xf32> -> vector<6x8xf32>
    %cst_229 = arith.constant 0.000000e+00 : f32
    %736 = vector.broadcast %cst_229 : f32 to vector<16x112xf32>
    %737 = tpu.concatenate %734, %736 in 1 : vector<16x16xf32>, vector<16x112xf32> -> vector<16x128xf32>
    %cst_230 = arith.constant 0.000000e+00 : f32
    %738 = vector.broadcast %cst_230 : f32 to vector<6x120xf32>
    %739 = tpu.concatenate %735, %738 in 1 : vector<6x8xf32>, vector<6x120xf32> -> vector<6x128xf32>
    %cst_231 = arith.constant 0.000000e+00 : f32
    %740 = vector.broadcast %cst_231 : f32 to vector<2x128xf32>
    %741 = tpu.concatenate %737, %739, %740 in 0 : vector<16x128xf32>, vector<6x128xf32>, vector<2x128xf32> -> vector<24x128xf32>
    %c0_232 = arith.constant 0 : index
    %c0_233 = arith.constant 0 : index
    %742 = vector.load %arg5[%c0_232, %c0_233] : memref<24x128xf32, #tpu.memory_space<vmem>>, vector<24x128xf32>
    tpu.vector_store %arg5[%c0_232, %c0_233], %741 {strides = array<i32>} : memref<24x128xf32, #tpu.memory_space<vmem>>, vector<24x128xf32>,
    return
  }
}

</mosaic_0001>

<bundles_post_ra>
// kernel: net_forward.1
= control target key start
LH: loop header
LB: loop body
LE: loop exit
PB: predicated region body
PF: predicated region fallthrough
CT: control target
= control target key end

     0   :  { %10 = vsyncpa [#allocation3], 0  ;;  %s4795_s0 = inlined_call_operand.vmem [shape: s32[16,1], index: 0, kind: input, shape index: {}]   ;;  %s4796_s1 = inlined_call_operand.vmem [shape: f32[2,8], index: 1, kind: input, shape index: {}]   ;;  %s4797_s2 = inlined_call_operand.hbm [shape: bf16[352,512], index: 2, kind: input, shape index: {}]   ;;  %s4798_s3 = inlined_call_operand.vmem [shape: bf16[128,128], index: 3, kind: input, shape index: {}]   ;;  %s4799_s4 = inlined_call_operand.hbm [shape: f32[24,512], index: 4, kind: input, shape index: {}]   ;;  %s4800_s5 = inlined_call_operand.vmem [shape: f32[24,128], index: 5, kind: output, shape index: {}]  }
   0x1   :  { %11 = vsyncpa [#allocation5], 0  ;;  %s3760_s18 = smov [#allocation2]   ;;  %s3712_s22 = scalar_lea.hbm %s4797_s2, 11264 }
   0x2   :  { %s21_s19 = sshll.u32 %s3760_s18, 4  ;;  %p3713_p0 = scmp.ne.s32.totalorder %s4797_s2, %s3712_s22  ;;  %s22_s19 = int_to_ptr.vmem [resolvable:$true] %s21_s19 }
   0x3   :  { %p3716_p1 = scmp.lt.u32.totalorder %s3712_s22, %s4797_s2 }
   0x5   :  { %p3718_p2 = pnand %p3716_p1, %p3713_p0 }
   0x7   :  { %3721 = shalt.err (!%p3718_p2)
}
   0x8   :  { %s3722_s27 = scalar_lea.vmem %s22_s19, 11264  ;;  %p3727_p4 = scmp.lt.s32.totalorder %s22_s19, %s22_s19 }
   0x9   :  { %p3723_p3 = scmp.ne.s32.totalorder %s22_s19, %s3722_s27  ;;  %p3728_p5 = scmp.lt.s32.totalorder %s3722_s27, %s3722_s27 }
   0xb   :  { %p3729_p6 = por %p3728_p5, %p3727_p4 }
   0xd   :  { %p3730_p7 = pnand %p3729_p6, %p3723_p3 }
   0xf   :  { %3733 = shalt.err (!%p3730_p7)
}
  0x10   :  { %s3761_s28 = smov 256   ;;  %s3762_s29 = smov 16  }
  0x11   :  { %27 = dma.hbm_to_vmem [thread:$0]  %s4797_s2, 11264, %s22_s19, [#allocation3], %s3761_s28, %s3761_s28, %s3762_s29  }
  0x12   :  { %s3763_s7 = smov [#allocation4]   ;;  %s3734_s11 = scalar_lea.hbm %s4799_s4, 1536 }
  0x13   :  { %s35_s8 = sshll.u32 %s3763_s7, 4  ;;  %p3735_p8 = scmp.ne.s32.totalorder %s4799_s4, %s3734_s11  ;;  %s36_s8 = int_to_ptr.vmem [resolvable:$true] %s35_s8 }
  0x14   :  { %p3738_p9 = scmp.lt.u32.totalorder %s3734_s11, %s4799_s4 }
  0x16   :  { %p3740_p10 = pnand %p3738_p9, %p3735_p8 }
  0x18   :  { %3743 = shalt.err (!%p3740_p10)
}
  0x19   :  { %s3744_s16 = scalar_lea.vmem %s36_s8, 1536  ;;  %p3749_p12 = scmp.lt.s32.totalorder %s36_s8, %s36_s8 }
  0x1a   :  { %p3745_p11 = scmp.ne.s32.totalorder %s36_s8, %s3744_s16  ;;  %p3750_p13 = scmp.lt.s32.totalorder %s3744_s16, %s3744_s16 }
  0x1c   :  { %p3751_p0 = por %p3750_p13, %p3749_p12 }
  0x1e   :  { %p3752_p1 = pnand %p3751_p0, %p3745_p11 }
  0x20   :  { %3755 = shalt.err (!%p3752_p1)
}
  0x21   :  { %s3764_s2 = smov 512   ;;  %s3765_s17 = smov 32  }
  0x22   :  { %41 = dma.hbm_to_vmem [thread:$0]  %s4799_s4, 1536, %s36_s8, [#allocation5], %s3764_s2, %s3764_s2, %s3765_s17  }
  0x23   :  { %3756 = dma.done.wait [#allocation3], 11264  }
  0x24   :  { %3757 = vsyncadd [#allocation3], 4294956032 }
  0x25   :  { %3758 = dma.done.wait [#allocation5], 1536  }
  0x26   :  { %3759 = vsyncadd [#allocation5], 4294965760  ;;  %v4810_v0 = vmov 0   ;;  %v4805_v1 = vmov 0.0   ;;  %v160_v2 = vld [vmem:[%s4795_s0] sm:$0xff]  ;;  %v161_v3 = vld [vmem:[%s4795_s0 + $0x8] sm:$0xff]  ;;  %v162_v5 = vlaneseq }
  0x27   :  { %3328 = vset.pattern.permute.xlu0 %v4810_v0  ;;  %3282 = vmatprep.subr.bf16.mxu0 %v4805_v1  ;;  %v3334_v4 = vld [vmem:[%s4798_s3] sm:$0xff]   ;;  %vm3768_vm0 = vmmov 0   ;;  %vm183_vm3 = vcmask 130048   ;;  %v3337_v13 = vld [vmem:[#allocation2 + $0x8] ss:$16 sps:$4 sm:$0xff]   ;;  %vm238_vm4 = vcmask 1041408  }
  0x28   :  { %396 = vmatprep.mubr.bf16.mxu1 %v4810_v0  ;;  %165 = vperm.xlu0 %3328, %v160_v2   ;;  %v163_v6 = vand.u32 127, %v162_v5  ;;  %v3335_v12 = vld [vmem:[#allocation2 + $0x4] ss:$16 sps:$4 sm:$0xff]   ;;  %v3339_v14 = vld [vmem:[#allocation2 + $0xc] ss:$16 sps:$4 sm:$0xff]   ;;  %vm240_vm5 = vcmask 1043456  }
  0x29   :  { %3283 = vmatpush3.bf16.msra.mxu0 %v3334_v4  ;;  %3284 = vmatprep.mubr.msk.bf16.mxu0 %vm3768_vm0, %v4805_v1  ;;  %v3340_v15 = vld [vmem:[#allocation2] ss:$16 sps:$4 sm:$0xff]   ;;  %v3341_v16 = vld [vmem:[#allocation2 + $0x24] ss:$16 sps:$4 sm:$0xff]   ;;  %v3345_v17 = vld [vmem:[#allocation2 + $0x2c] ss:$16 sps:$4 sm:$0xff]  }
  0x2a   :  { %364 = vmatprep.subr.bf16.mxu1 %v3335_v12  ;;  %407 = vmatprep.subr.bf16.mxu0 %v3339_v14  ;;  %v3343_v18 = vld [vmem:[#allocation2 + $0x28] ss:$16 sps:$4 sm:$0xff]   ;;  %v3346_v19 = vld [vmem:[#allocation2 + $0x20] ss:$16 sps:$4 sm:$0xff]   ;;  %v3347_v20 = vld [vmem:[#allocation2 + $0x44] ss:$16 sps:$4 sm:$0xff]  }
  0x2b   :  { %365 = vmatpush1.bf16.msra.mxu1 %v3340_v15  ;;  %v3351_v21 = vld [vmem:[#allocation2 + $0x4c] ss:$16 sps:$4 sm:$0xff]   ;;  %v3349_v22 = vld [vmem:[#allocation2 + $0x48] ss:$16 sps:$4 sm:$0xff]   ;;  %v3352_v23 = vld [vmem:[#allocation2 + $0x40] ss:$16 sps:$4 sm:$0xff]  }
  0x2c   :  { %168 = vperm.xlu0 %3328, %v161_v3   ;;  %366 = vmatprep.subr.bf16.mxu1 %v3341_v16  ;;  %v3353_v24 = vld [vmem:[#allocation2 + $0x64] ss:$16 sps:$4 sm:$0xff]   ;;  %v3357_v25 = vld [vmem:[#allocation2 + $0x6c] ss:$16 sps:$4 sm:$0xff]   ;;  %v3355_v26 = vld [vmem:[#allocation2 + $0x68] ss:$16 sps:$4 sm:$0xff]  }
  0x2d   :  { %v3358_v27 = vld [vmem:[#allocation2 + $0x60] ss:$16 sps:$4 sm:$0xff]   ;;  %v3848_v28 = vld [vmem:[#allocation2 + $0x84] ss:$16 sps:$4 sm:$0xff]   ;;  %v3850_v29 = vld [vmem:[#allocation2 + $0x8c] ss:$16 sps:$4 sm:$0xff]  }
  0x2e   :  { %vm242_vm6 = vcmask 1045504   ;;  %vm255_vm7 = vcmask 261120   ;;  %vm360_vm8 = vcmask 523264   ;;  %v3871_v51 = vld [vmem:[#allocation2 + $0x80] ss:$16 sps:$4 sm:$0xff]   ;;  %s3769_s0 = smov 96  }
  0x2f   :  { %367 = vmatpush1.bf16.msra.mxu1 %v3346_v19  ;;  %v3873_v52 = vld [vmem:[#allocation2 + $0x88] ss:$16 sps:$4 sm:$0xff]   ;;  %v3875_v54 = vld [vmem:[#allocation2 + $0xa4] ss:$16 sps:$4 sm:$0xff]   ;;  %v3877_v55 = vld [vmem:[#allocation2 + $0xac] ss:$16 sps:$4 sm:$0xff]  }
  0x30   :  { %368 = vmatprep.subr.bf16.mxu1 %v3347_v20  ;;  %v3881_v56 = vld [vmem:[#allocation2 + $0xa0] ss:$16 sps:$4 sm:$0xff]   ;;  %v3883_v57 = vld [vmem:[#allocation2 + $0xa8] ss:$16 sps:$4 sm:$0xff]   ;;  %v3887_v58 = vld [vmem:[#allocation2 + $0xc4] ss:$16 sps:$4 sm:$0xff]  }
  0x31   :  { %v3889_v59 = vld [vmem:[#allocation2 + $0xcc] ss:$16 sps:$4 sm:$0xff]   ;;  %v3895_v60 = vld [vmem:[#allocation2 + $0xc0] ss:$16 sps:$4 sm:$0xff]   ;;  %v3897_v61 = vld [vmem:[#allocation2 + $0xc8] ss:$16 sps:$4 sm:$0xff]  }
  0x32   :  { %v3901_v62 = vld [vmem:[#allocation2 + $0xe4] ss:$16 sps:$4 sm:$0xff]   ;;  %v3903_v63 = vld [vmem:[#allocation2 + $0xec] ss:$16 sps:$4 sm:$0xff]   ;;  %v3907_v2 = vld [vmem:[#allocation2 + $0xe0] ss:$16 sps:$4 sm:$0xff]  }
  0x33   :  { %369 = vmatpush1.bf16.msra.mxu1 %v3352_v23  ;;  %v3909_v3 = vld [vmem:[#allocation2 + $0xe8] ss:$16 sps:$4 sm:$0xff]   ;;  %v3913_v4 = vld [vmem:[#allocation2 + $0x104] ss:$16 sps:$4 sm:$0xff]   ;;  %v3939_v14 = vld [vmem:[#allocation2 + $0x14c] ss:$16 sps:$4 sm:$0xff]  }
  0x34   :  { %370 = vmatprep.subr.bf16.mxu1 %v3353_v24  ;;  %v3933_v12 = vld [vmem:[#allocation2 + $0x128] ss:$16 sps:$4 sm:$0xff]   ;;  %v3943_v15 = vld [vmem:[#allocation2 + $0x140] ss:$16 sps:$4 sm:$0xff]   ;;  %s3770_s6 = smov 8   ;;  %s3771_s7 = smov 64  }
  0x35   :  { %v3945_v16 = vld [vmem:[#allocation2 + $0x148] ss:$16 sps:$4 sm:$0xff]   ;;  %v3955_v19 = vld [vmem:[#allocation2 + $0x160] ss:$16 sps:$4 sm:$0xff]   ;;  %s3773_s11 = smov 120   ;;  %vm1704_vm10 = vcmask 326656  }
  0x36   :  { %v3957_v20 = vld [vmem:[#allocation2 + $0x168] ss:$16 sps:$4 sm:$0xff]   ;;  %vm3152_vm12 = vcmask 64512  }
  0x37   :  { %371 = vmatpush1.bf16.msra.mxu1 %v3358_v27  ;;  %v152_v24 = vld [vmem:[#allocation4] ss:$8 sm:$0xf] }
  0x38   :  { %610 = vmatprep.subr.bf16.mxu1 %v3848_v28 }
  0xa7   :  { %v166_v7 = vpop.permute.xlu0 %165 }
  0xa8   :  { %vm170_vm1 = vcmp.eq.s32.totalorder %v166_v7, %v163_v6  ;;  %v3919_v7 = vld [vmem:[#allocation2 + $0x100] ss:$16 sps:$4 sm:$0xff]  }
  0xa9   :  { %v3164_v9 = vsel %vm170_vm1, 1.0, %v4805_v1 }
  0xab   :  { %v169_v8 = vpop.permute.xlu0 %168 }
  0xac   :  { %vm171_vm2 = vcmp.eq.s32.totalorder %v169_v8, %v163_v6  ;;  %v3915_v6 = vld [vmem:[#allocation2 + $0x10c] ss:$16 sps:$4 sm:$0xff]   ;;  %v3921_v8 = vld [vmem:[#allocation2 + $0x108] ss:$16 sps:$4 sm:$0xff]  }
  0xad   :  { %v3165_v10 = vsel %vm171_vm2, 1.0, %v4805_v1 }
  0xae   :  { %v176_v11 = vpack.c.bf16 %v3165_v10, %v3164_v9  ;;  %v3925_v9 = vld [vmem:[#allocation2 + $0x124] ss:$16 sps:$4 sm:$0xff]   ;;  %v3927_v10 = vld [vmem:[#allocation2 + $0x12c] ss:$16 sps:$4 sm:$0xff]  }
  0xb0   :  { %3285 = vmatmul.mubr.msk.bf16.vlgmr.msra.gmra.mrb[0].mxu0 %vm183_vm3, %v176_v11  ;;  %v3931_v11 = vld [vmem:[#allocation2 + $0x120] ss:$16 sps:$4 sm:$0xff]  }
  0xb1   :  { %439 = vmatprep.mubr.bf16.mxu0 %v4810_v0  ;;  %408 = vmatpush1.bf16.msra.mxu0 %v3337_v13  ;;  %v3937_v13 = vld [vmem:[#allocation2 + $0x144] ss:$16 sps:$4 sm:$0xff]  }
  0xb2   :  { %409 = vmatprep.subr.bf16.mxu0 %v3345_v17  ;;  %v3949_v17 = vld [vmem:[#allocation2 + $0x164] ss:$16 sps:$4 sm:$0xff]  }
  0xb5   :  { %410 = vmatpush1.bf16.msra.mxu0 %v3343_v18  ;;  %v3951_v18 = vld [vmem:[#allocation2 + $0x16c] ss:$16 sps:$4 sm:$0xff]  }
  0xb6   :  { %411 = vmatprep.subr.bf16.mxu0 %v3351_v21  ;;  %v4002_v21 = vshrl.u32 %v162_v5, 7 }
  0xb8   :  { %v4803_v23 = vsub.s32 2, %v4002_v21 }
  0xb9   :  { %412 = vmatpush1.bf16.msra.mxu0 %v3349_v22  ;;  %v4804_v22 = vsub.s32 0, %v4002_v21 }
  0xba   :  { %413 = vmatprep.subr.bf16.mxu0 %v3357_v25  ;;  %v4802_v25 = vsub.s32 1, %v4002_v21 }
  0xbd   :  { %414 = vmatpush1.bf16.msra.mxu0 %v3355_v26  ;;  %v4801_v26 = vsub.s32 3, %v4002_v21 }
  0xbe   :  { %651 = vmatprep.subr.bf16.mxu0 %v3850_v29 }
 0x183   :  { %v221_v30 = vpop.f32.mrb[0].mxu0 }
 0x184   :  { %v3852_v31 = vrot.slane %v221_v30, 6  ;;  %v236_v32 = vrot.slane %v221_v30, 2  ;;  %v3286_v33 = vpop.f32.mrb[1].mxu0 }
 0x185   :  { %v224_v34 = vpop.f32.mrb[2].mxu0  ;;  %v271_v33 = vrot.slane %v152_v24, %v4803_v23 }
 0x186   :  { %v229_v35 = vrot.slane %v224_v34, 6  ;;  %v231_v36 = vrot.slane %v224_v34, 2  ;;  %v3287_v37 = vpop.f32.mrb[3].mxu0  ;;  %v244_v38 = vsel %vm238_vm4, %v3852_v31, %v236_v32 }
 0x187   :  { %v245_v39 = vsel %vm240_vm5, %v244_v38, %v3852_v31 }
 0x188   :  { %v239_v40 = vsel %vm238_vm4, %v229_v35, %v231_v36  ;;  %v3863_v41 = vsel %vm238_vm4, %v3852_v31, %v229_v35  ;;  %v246_v44 = vsel %vm242_vm6, %v245_v39, %v236_v32  ;;  %v263_v32 = vrot.slane %v152_v24, %v4804_v22 }
 0x189   :  { %v241_v42 = vsel %vm240_vm5, %v239_v40, %v229_v35  ;;  %v267_v35 = vrot.slane %v152_v24, %v4802_v25 }
 0x18a   :  { %v243_v43 = vsel %vm242_vm6, %v241_v42, %v231_v36  ;;  %v275_v36 = vrot.slane %v152_v24, %v4801_v26 }
 0x18b   :  { %v3329_v45 = vpack.i.bf16 %v246_v44, %v243_v43 }
 0x18d   :  { %3330 = vrot.lane.b32.xlu1 %v3329_v45, %s3765_s17 }
 0x1ff   :  { %v3331_v46 = vpop.permute.xlu1 %3330 }
 0x200   :  { %v3333_v47 = vunpack.i.h.bf16 %v3331_v46  ;;  %v3332_v48 = vunpack.i.l.bf16 %v3331_v46 }
 0x202   :  { %v257_v49 = vsel %vm255_vm7, %v224_v34, %v3333_v47  ;;  %v256_v50 = vsel %vm255_vm7, %v221_v30, %v3332_v48 }
 0x203   :  { %v258_v53 = vpack.c.bf16 %v257_v49, %v256_v50 }
 0x205   :  { %3184 = vmatmul.mubr.msk.bf16.vlgmr.msra.gmra.mrb[0].mxu1 %vm360_vm8, %v258_v53  ;;  %3185 = vmatmul.mubr.msk.bf16.vlgmr.msra.gmra.mrb[4].mxu0 %vm360_vm8, %v258_v53 }
 0x206   :  { %611 = vmatpush1.bf16.msra.mxu1 %v3871_v51  ;;  %652 = vmatpush1.bf16.msra.mxu0 %v3873_v52 }
 0x207   :  { %612 = vmatprep.subr.bf16.mxu1 %v3875_v54  ;;  %653 = vmatprep.subr.bf16.mxu0 %v3877_v55 }
 0x208   :  { %642 = vmatprep.mubr.bf16.mxu1 %v4810_v0  ;;  %683 = vmatprep.mubr.bf16.mxu0 %v4810_v0 }
 0x20a   :  { %613 = vmatpush1.bf16.msra.mxu1 %v3881_v56  ;;  %654 = vmatpush1.bf16.msra.mxu0 %v3883_v57 }
 0x20b   :  { %614 = vmatprep.subr.bf16.mxu1 %v3887_v58  ;;  %655 = vmatprep.subr.bf16.mxu0 %v3889_v59 }
 0x20e   :  { %615 = vmatpush1.bf16.msra.mxu1 %v3895_v60  ;;  %656 = vmatpush1.bf16.msra.mxu0 %v3897_v61 }
 0x20f   :  { %616 = vmatprep.subr.bf16.mxu1 %v3901_v62  ;;  %657 = vmatprep.subr.bf16.mxu0 %v3903_v63 }
 0x212   :  { %617 = vmatpush1.bf16.msra.mxu1 %v3907_v2  ;;  %658 = vmatpush1.bf16.msra.mxu0 %v3909_v3 }
 0x213   :  { %618 = vmatprep.subr.bf16.mxu1 %v3913_v4  ;;  %659 = vmatprep.subr.bf16.mxu0 %v3915_v6 }
 0x216   :  { %619 = vmatpush1.bf16.msra.mxu1 %v3919_v7  ;;  %660 = vmatpush1.bf16.msra.mxu0 %v3921_v8 }
 0x217   :  { %620 = vmatprep.subr.bf16.mxu1 %v3925_v9  ;;  %661 = vmatprep.subr.bf16.mxu0 %v3927_v10 }
 0x21a   :  { %621 = vmatpush1.bf16.msra.mxu1 %v3931_v11  ;;  %662 = vmatpush1.bf16.msra.mxu0 %v3933_v12 }
 0x21b   :  { %622 = vmatprep.subr.bf16.mxu1 %v3937_v13  ;;  %663 = vmatprep.subr.bf16.mxu0 %v3939_v14 }
 0x21e   :  { %623 = vmatpush1.bf16.msra.mxu1 %v3943_v15  ;;  %664 = vmatpush1.bf16.msra.mxu0 %v3945_v16 }
 0x21f   :  { %624 = vmatprep.subr.bf16.mxu1 %v3949_v17  ;;  %665 = vmatprep.subr.bf16.mxu0 %v3951_v18 }
 0x222   :  { %625 = vmatpush1.bf16.msra.mxu1 %v3955_v19  ;;  %666 = vmatpush1.bf16.msra.mxu0 %v3957_v20 }
 0x223   :  { %715 = vmatprep.subr.bf16.mxu1 %v3848_v28  ;;  %756 = vmatprep.subr.bf16.mxu0 %v3850_v29 }
 0x225   :  { %643 = vmatmul.mubr.bf16.vlgmr.msra.gmra.mrb[4].mxu1 %v4810_v0  ;;  %684 = vmatmul.mubr.bf16.vlgmr.msra.gmra.mrb[8].mxu0 %v4810_v0 }
 0x226   :  { %716 = vmatpush1.bf16.msra.mxu1 %v3871_v51  ;;  %757 = vmatpush1.bf16.msra.mxu0 %v3873_v52 }
 0x227   :  { %717 = vmatprep.subr.bf16.mxu1 %v3875_v54  ;;  %758 = vmatprep.subr.bf16.mxu0 %v3877_v55 }
 0x228   :  { %747 = vmatprep.mubr.bf16.mxu1 %v4810_v0  ;;  %788 = vmatprep.mubr.bf16.mxu0 %v4810_v0 }
 0x22a   :  { %718 = vmatpush1.bf16.msra.mxu1 %v3881_v56  ;;  %759 = vmatpush1.bf16.msra.mxu0 %v3883_v57 }
 0x22b   :  { %719 = vmatprep.subr.bf16.mxu1 %v3887_v58  ;;  %760 = vmatprep.subr.bf16.mxu0 %v3889_v59 }
 0x22e   :  { %720 = vmatpush1.bf16.msra.mxu1 %v3895_v60  ;;  %761 = vmatpush1.bf16.msra.mxu0 %v3897_v61 }
 0x22f   :  { %721 = vmatprep.subr.bf16.mxu1 %v3901_v62  ;;  %762 = vmatprep.subr.bf16.mxu0 %v3903_v63 }
 0x232   :  { %722 = vmatpush1.bf16.msra.mxu1 %v3907_v2  ;;  %763 = vmatpush1.bf16.msra.mxu0 %v3909_v3 }
 0x233   :  { %723 = vmatprep.subr.bf16.mxu1 %v3913_v4  ;;  %764 = vmatprep.subr.bf16.mxu0 %v3915_v6 }
 0x236   :  { %724 = vmatpush1.bf16.msra.mxu1 %v3919_v7  ;;  %765 = vmatpush1.bf16.msra.mxu0 %v3921_v8 }
 0x237   :  { %725 = vmatprep.subr.bf16.mxu1 %v3925_v9  ;;  %766 = vmatprep.subr.bf16.mxu0 %v3927_v10 }
 0x23a   :  { %726 = vmatpush1.bf16.msra.mxu1 %v3931_v11  ;;  %767 = vmatpush1.bf16.msra.mxu0 %v3933_v12 }
 0x23b   :  { %727 = vmatprep.subr.bf16.mxu1 %v3937_v13  ;;  %768 = vmatprep.subr.bf16.mxu0 %v3939_v14 }
 0x23e   :  { %728 = vmatpush1.bf16.msra.mxu1 %v3943_v15  ;;  %769 = vmatpush1.bf16.msra.mxu0 %v3945_v16 }
 0x23f   :  { %729 = vmatprep.subr.bf16.mxu1 %v3949_v17  ;;  %770 = vmatprep.subr.bf16.mxu0 %v3951_v18 }
 0x242   :  { %730 = vmatpush1.bf16.msra.mxu1 %v3955_v19  ;;  %771 = vmatpush1.bf16.msra.mxu0 %v3957_v20 }
 0x243   :  { %838 = vmatprep.subr.bf16.mxu1 %v3848_v28  ;;  %879 = vmatprep.subr.bf16.mxu0 %v3850_v29 }
 0x2d8   :  { %v398_v27 = vpop.f32.mrb[0].mxu1  ;;  %v441_v30 = vpop.f32.mrb[4].mxu0 }
 0x2d9   :  { %v400_v34 = vpop.f32.mrb[1].mxu1  ;;  %v443_v5 = vpop.f32.mrb[5].mxu0  ;;  %v4024_v46 = vadd.f32 %v398_v27, %v263_v32  ;;  %v4030_v25 = vadd.f32 %v441_v30, %v271_v33 }
 0x2da   :  { %v402_v37 = vpop.f32.mrb[2].mxu1  ;;  %v445_v38 = vpop.f32.mrb[6].mxu0  ;;  %v4026_v47 = vadd.f32 %v400_v34, %v267_v35 }
 0x2db   :  { %v4016_v39 = vadd.f32 %v402_v37, %v263_v32  ;;  %v4018_v40 = vadd.f32 %v445_v38, %v271_v33  ;;  %v404_v42 = vpop.f32.mrb[3].mxu1  ;;  %v447_v43 = vpop.f32.mrb[7].mxu0  ;;  %v4033_v32 = vadd.f32 %v443_v5, %v275_v36 }
 0x2dc   :  { %v4020_v44 = vadd.f32 %v404_v42, %v267_v35  ;;  %v4022_v45 = vadd.f32 %v447_v43, %v275_v36 }
 0x2f8   :  { %v644_v48 = vpop.f32.mrb[4].mxu1  ;;  %v685_v49 = vpop.f32.mrb[8].mxu0 }
 0x2f9   :  { %v692_v50 = vadd.f32 %v644_v48, %v4024_v46  ;;  %v646_v53 = vpop.f32.mrb[5].mxu1  ;;  %v687_v24 = vpop.f32.mrb[9].mxu0  ;;  %v694_v27 = vadd.f32 %v685_v49, %v4030_v25 }
 0x2fa   :  { %v693_v37 = vadd.f32 %v646_v53, %v4026_v47  ;;  %v648_v38 = vpop.f32.mrb[6].mxu1  ;;  %v689_v26 = vpop.f32.mrb[10].mxu0  ;;  %v695_v34 = vadd.f32 %v687_v24, %v4033_v32 }
 0x2fb   :  { %v696_v42 = vmul.f32 0.5, %v692_v50  ;;  %v649_v23 = vpop.f32.mrb[7].mxu1  ;;  %v690_v43 = vpop.f32.mrb[11].mxu0 }
 0x2fc   :  { %v700_v22 = vmul.f32 0.5, %v693_v37  ;;  %v705_v35 = vmul.f32 0.5, %v695_v34 }
 0x2fd   :  { %3474 = vtanh.f32 %v696_v42 }
 0x2fe   :  { %3476 = vtanh.f32 %v700_v22 }
 0x2ff   :  { %3478 = vtanh.f32 %v694_v27 }
 0x300   :  { %3480 = vtanh.f32 %v705_v35 }
 0x307   :  { %v3475_v48 = vpop.eup %3474 }
 0x308   :  { %v3477_v53 = vpop.eup %3476  ;;  %v698_v38 = vadd.f32 1.0, %v3475_v48 }
 0x309   :  { %v702_v26 = vadd.f32 1.0, %v3477_v53  ;;  %v3479_v33 = vpop.eup %3478 }
 0x30a   :  { %v699_v30 = vmul.f32 0.5, %v698_v38  ;;  %v3481_v22 = vpop.eup %3480 }
 0x30b   :  { %v703_v23 = vmul.f32 0.5, %v702_v26  ;;  %v707_v5 = vadd.f32 1.0, %v3481_v22 }
 0x30c   :  { %v710_v50 = vmul.f32 %v3479_v33, %v699_v30 }
 0x30d   :  { %v709_v37 = vmul.f32 0.0, %v703_v23  ;;  %v708_v36 = vmul.f32 0.5, %v707_v5 }
 0x30f   :  { %v4036_v42 = vadd.f32 %v710_v50, %v709_v37 }
 0x311   :  { %3482 = vtanh.f32 %v4036_v42 }
 0x31b   :  { %v3483_v49 = vpop.eup %3482 }
 0x31c   :  { %v713_v24 = vmul.f32 %v3483_v49, %v708_v36 }
 0x31e   :  { %v714_v43 = vpack.c.bf16 %v713_v24, %v713_v24 }
 0x320   :  { %748 = vmatmul.mubr.bf16.vlgmr.msra.gmra.mrb[8].mxu1 %v714_v43  ;;  %789 = vmatmul.mubr.bf16.vlgmr.msra.gmra.mrb[12].mxu0 %v714_v43 }
 0x321   :  { %839 = vmatpush1.bf16.msra.mxu1 %v3871_v51  ;;  %880 = vmatpush1.bf16.msra.mxu0 %v3873_v52 }
 0x322   :  { %840 = vmatprep.subr.bf16.mxu1 %v3875_v54  ;;  %881 = vmatprep.subr.bf16.mxu0 %v3877_v55 }
 0x323   :  { %870 = vmatprep.mubr.bf16.mxu1 %v4810_v0  ;;  %911 = vmatprep.mubr.bf16.mxu0 %v4810_v0 }
 0x325   :  { %841 = vmatpush1.bf16.msra.mxu1 %v3881_v56  ;;  %882 = vmatpush1.bf16.msra.mxu0 %v3883_v57 }
 0x326   :  { %842 = vmatprep.subr.bf16.mxu1 %v3887_v58  ;;  %883 = vmatprep.subr.bf16.mxu0 %v3889_v59 }
 0x329   :  { %843 = vmatpush1.bf16.msra.mxu1 %v3895_v60  ;;  %884 = vmatpush1.bf16.msra.mxu0 %v3897_v61 }
 0x32a   :  { %844 = vmatprep.subr.bf16.mxu1 %v3901_v62  ;;  %885 = vmatprep.subr.bf16.mxu0 %v3903_v63 }
 0x32d   :  { %845 = vmatpush1.bf16.msra.mxu1 %v3907_v2  ;;  %886 = vmatpush1.bf16.msra.mxu0 %v3909_v3 }
 0x32e   :  { %846 = vmatprep.subr.bf16.mxu1 %v3913_v4  ;;  %887 = vmatprep.subr.bf16.mxu0 %v3915_v6 }
 0x331   :  { %847 = vmatpush1.bf16.msra.mxu1 %v3919_v7  ;;  %888 = vmatpush1.bf16.msra.mxu0 %v3921_v8 }
 0x332   :  { %848 = vmatprep.subr.bf16.mxu1 %v3925_v9  ;;  %889 = vmatprep.subr.bf16.mxu0 %v3927_v10 }
 0x335   :  { %849 = vmatpush1.bf16.msra.mxu1 %v3931_v11  ;;  %890 = vmatpush1.bf16.msra.mxu0 %v3933_v12 }
 0x336   :  { %850 = vmatprep.subr.bf16.mxu1 %v3937_v13  ;;  %891 = vmatprep.subr.bf16.mxu0 %v3939_v14 }
 0x339   :  { %851 = vmatpush1.bf16.msra.mxu1 %v3943_v15  ;;  %892 = vmatpush1.bf16.msra.mxu0 %v3945_v16 }
 0x33a   :  { %852 = vmatprep.subr.bf16.mxu1 %v3949_v17  ;;  %893 = vmatprep.subr.bf16.mxu0 %v3951_v18 }
 0x33d   :  { %853 = vmatpush1.bf16.msra.mxu1 %v3955_v19  ;;  %894 = vmatpush1.bf16.msra.mxu0 %v3957_v20 }
 0x33e   :  { %961 = vmatprep.subr.bf16.mxu1 %v3848_v28  ;;  %1002 = vmatprep.subr.bf16.mxu0 %v3850_v29 }
 0x3f3   :  { %v749_v27 = vpop.f32.mrb[8].mxu1  ;;  %v790_v34 = vpop.f32.mrb[12].mxu0 }
 0x3f4   :  { %v801_v35 = vrot.slane %v749_v27, 6  ;;  %v751_v48 = vpop.f32.mrb[9].mxu1  ;;  %v792_v53 = vpop.f32.mrb[13].mxu0  ;;  %v803_v23 = vrot.slane %v790_v34, 6 }
 0x3f5   :  { %v802_v38 = vrot.slane %v751_v48, 6  ;;  %v753_v26 = vpop.f32.mrb[10].mxu1  ;;  %v794_v30 = vpop.f32.mrb[14].mxu0  ;;  %v804_v24 = vrot.slane %v792_v53, 6 }
 0x3f6   :  { %v809_v33 = vadd.f32 %v801_v35, %v4024_v46  ;;  %v754_v50 = vpop.f32.mrb[11].mxu1  ;;  %v795_v37 = vpop.f32.mrb[15].mxu0  ;;  %v811_v49 = vadd.f32 %v803_v23, %v4030_v25 }
 0x3f7   :  { %v810_v22 = vadd.f32 %v802_v38, %v4026_v47  ;;  %v812_v43 = vadd.f32 %v804_v24, %v4033_v32  ;;  %v827_v38 = vrot.slane %v4036_v42, 6 }
 0x3f8   :  { %v813_v5 = vmul.f32 0.5, %v809_v33 }
 0x3f9   :  { %v817_v36 = vmul.f32 0.5, %v810_v22  ;;  %v822_v27 = vmul.f32 0.5, %v812_v43 }
 0x3fa   :  { %3484 = vtanh.f32 %v813_v5 }
 0x3fb   :  { %3486 = vtanh.f32 %v817_v36 }
 0x3fc   :  { %3488 = vtanh.f32 %v811_v49 }
 0x3fd   :  { %3490 = vtanh.f32 %v822_v27 }
 0x404   :  { %v3485_v48 = vpop.eup %3484 }
 0x405   :  { %v3487_v26 = vpop.eup %3486  ;;  %v815_v30 = vadd.f32 1.0, %v3485_v48 }
 0x406   :  { %v819_v35 = vadd.f32 1.0, %v3487_v26  ;;  %v3489_v50 = vpop.eup %3488 }
 0x407   :  { %v816_v34 = vmul.f32 0.5, %v815_v30  ;;  %v3491_v53 = vpop.eup %3490 }
 0x408   :  { %v820_v33 = vmul.f32 0.5, %v819_v35  ;;  %v824_v23 = vadd.f32 1.0, %v3491_v53 }
 0x409   :  { %v830_v37 = vmul.f32 %v3489_v50, %v816_v34 }
 0x40a   :  { %v829_v22 = vmul.f32 %v827_v38, %v820_v33  ;;  %v825_v36 = vmul.f32 0.5, %v824_v23 }
 0x40c   :  { %v4078_v5 = vadd.f32 %v830_v37, %v829_v22 }
 0x40e   :  { %3492 = vtanh.f32 %v4078_v5 }
 0x418   :  { %v3493_v49 = vpop.eup %3492 }
 0x419   :  { %v833_v24 = vmul.f32 %v3493_v49, %v825_v36 }
 0x41b   :  { %v834_v43 = vpack.c.bf16 %v833_v24, %v833_v24 }
 0x41d   :  { %v836_v48 = vrot.slane %v834_v43, 1 }
 0x41f   :  { %871 = vmatmul.mubr.bf16.vlgmr.msra.gmra.mrb[12].mxu1 %v836_v48  ;;  %912 = vmatmul.mubr.bf16.vlgmr.msra.gmra.mrb[16].mxu0 %v836_v48 }
 0x420   :  { %962 = vmatpush1.bf16.msra.mxu1 %v3871_v51  ;;  %1003 = vmatpush1.bf16.msra.mxu0 %v3873_v52 }
 0x421   :  { %963 = vmatprep.subr.bf16.mxu1 %v3875_v54  ;;  %1004 = vmatprep.subr.bf16.mxu0 %v3877_v55 }
 0x422   :  { %993 = vmatprep.mubr.bf16.mxu1 %v4810_v0  ;;  %1034 = vmatprep.mubr.bf16.mxu0 %v4810_v0 }
 0x424   :  { %964 = vmatpush1.bf16.msra.mxu1 %v3881_v56  ;;  %1005 = vmatpush1.bf16.msra.mxu0 %v3883_v57 }
 0x425   :  { %965 = vmatprep.subr.bf16.mxu1 %v3887_v58  ;;  %1006 = vmatprep.subr.bf16.mxu0 %v3889_v59 }
 0x428   :  { %966 = vmatpush1.bf16.msra.mxu1 %v3895_v60  ;;  %1007 = vmatpush1.bf16.msra.mxu0 %v3897_v61 }
 0x429   :  { %967 = vmatprep.subr.bf16.mxu1 %v3901_v62  ;;  %1008 = vmatprep.subr.bf16.mxu0 %v3903_v63 }
 0x42c   :  { %968 = vmatpush1.bf16.msra.mxu1 %v3907_v2  ;;  %1009 = vmatpush1.bf16.msra.mxu0 %v3909_v3 }
 0x42d   :  { %969 = vmatprep.subr.bf16.mxu1 %v3913_v4  ;;  %1010 = vmatprep.subr.bf16.mxu0 %v3915_v6 }
 0x430   :  { %970 = vmatpush1.bf16.msra.mxu1 %v3919_v7  ;;  %1011 = vmatpush1.bf16.msra.mxu0 %v3921_v8 }
 0x431   :  { %971 = vmatprep.subr.bf16.mxu1 %v3925_v9  ;;  %1012 = vmatprep.subr.bf16.mxu0 %v3927_v10 }
 0x434   :  { %972 = vmatpush1.bf16.msra.mxu1 %v3931_v11  ;;  %1013 = vmatpush1.bf16.msra.mxu0 %v3933_v12 }
 0x435   :  { %973 = vmatprep.subr.bf16.mxu1 %v3937_v13  ;;  %1014 = vmatprep.subr.bf16.mxu0 %v3939_v14 }
 0x438   :  { %974 = vmatpush1.bf16.msra.mxu1 %v3943_v15  ;;  %1015 = vmatpush1.bf16.msra.mxu0 %v3945_v16 }
 0x439   :  { %975 = vmatprep.subr.bf16.mxu1 %v3949_v17  ;;  %1016 = vmatprep.subr.bf16.mxu0 %v3951_v18 }
 0x43c   :  { %976 = vmatpush1.bf16.msra.mxu1 %v3955_v19  ;;  %1017 = vmatpush1.bf16.msra.mxu0 %v3957_v20 }
 0x43d   :  { %1084 = vmatprep.subr.bf16.mxu1 %v3848_v28  ;;  %1125 = vmatprep.subr.bf16.mxu0 %v3850_v29 }
 0x4f2   :  { %v872_v42 = vpop.f32.mrb[12].mxu1  ;;  %v913_v27 = vpop.f32.mrb[16].mxu0 }
 0x4f3   :  { %v924_v26 = vrot.slane %v872_v42, 4  ;;  %v874_v30 = vpop.f32.mrb[13].mxu1  ;;  %v915_v35 = vpop.f32.mrb[17].mxu0  ;;  %v926_v37 = vrot.slane %v913_v27, 4 }
 0x4f4   :  { %v925_v34 = vrot.slane %v874_v30, 4  ;;  %v876_v50 = vpop.f32.mrb[14].mxu1  ;;  %v917_v38 = vpop.f32.mrb[18].mxu0  ;;  %v927_v43 = vrot.slane %v915_v35, 4 }
 0x4f5   :  { %v932_v33 = vadd.f32 %v924_v26, %v4024_v46  ;;  %v877_v22 = vpop.f32.mrb[15].mxu1  ;;  %v918_v53 = vpop.f32.mrb[19].mxu0  ;;  %v934_v24 = vadd.f32 %v926_v37, %v4030_v25 }
 0x4f6   :  { %v933_v23 = vadd.f32 %v925_v34, %v4026_v47  ;;  %v935_v48 = vadd.f32 %v927_v43, %v4033_v32  ;;  %v950_v34 = vrot.slane %v4078_v5, 6 }
 0x4f7   :  { %v936_v36 = vmul.f32 0.5, %v932_v33 }
 0x4f8   :  { %v940_v49 = vmul.f32 0.5, %v933_v23  ;;  %v945_v42 = vmul.f32 0.5, %v935_v48 }
 0x4f9   :  { %3494 = vtanh.f32 %v936_v36 }
 0x4fa   :  { %3496 = vtanh.f32 %v940_v49 }
 0x4fb   :  { %3498 = vtanh.f32 %v934_v24 }
 0x4fc   :  { %3500 = vtanh.f32 %v945_v42 }
 0x503   :  { %v3495_v30 = vpop.eup %3494 }
 0x504   :  { %v3497_v50 = vpop.eup %3496  ;;  %v938_v38 = vadd.f32 1.0, %v3495_v30 }
 0x505   :  { %v942_v26 = vadd.f32 1.0, %v3497_v50  ;;  %v3499_v22 = vpop.eup %3498 }
 0x506   :  { %v939_v27 = vmul.f32 0.5, %v938_v38  ;;  %v3501_v35 = vpop.eup %3500 }
 0x507   :  { %v943_v53 = vmul.f32 0.5, %v942_v26  ;;  %v947_v37 = vadd.f32 1.0, %v3501_v35 }
 0x508   :  { %v953_v33 = vmul.f32 %v3499_v22, %v939_v27 }
 0x509   :  { %v952_v23 = vmul.f32 %v950_v34, %v943_v53  ;;  %v948_v49 = vmul.f32 0.5, %v947_v37 }
 0x50b   :  { %v4120_v36 = vadd.f32 %v953_v33, %v952_v23 }
 0x50d   :  { %3502 = vtanh.f32 %v4120_v36 }
 0x517   :  { %v3503_v24 = vpop.eup %3502 }
 0x518   :  { %v956_v43 = vmul.f32 %v3503_v24, %v948_v49 }
 0x51a   :  { %v957_v48 = vpack.c.bf16 %v956_v43, %v956_v43 }
 0x51c   :  { %v959_v30 = vrot.slane %v957_v48, 2 }
 0x51e   :  { %994 = vmatmul.mubr.bf16.vlgmr.msra.gmra.mrb[16].mxu1 %v959_v30  ;;  %1035 = vmatmul.mubr.bf16.vlgmr.msra.gmra.mrb[20].mxu0 %v959_v30 }
 0x51f   :  { %1085 = vmatpush1.bf16.msra.mxu1 %v3871_v51  ;;  %1126 = vmatpush1.bf16.msra.mxu0 %v3873_v52 }
 0x520   :  { %1086 = vmatprep.subr.bf16.mxu1 %v3875_v54  ;;  %1127 = vmatprep.subr.bf16.mxu0 %v3877_v55 }
 0x521   :  { %1116 = vmatprep.mubr.bf16.mxu1 %v4810_v0  ;;  %1157 = vmatprep.mubr.bf16.mxu0 %v4810_v0 }
 0x523   :  { %1087 = vmatpush1.bf16.msra.mxu1 %v3881_v56  ;;  %1128 = vmatpush1.bf16.msra.mxu0 %v3883_v57 }
 0x524   :  { %1088 = vmatprep.subr.bf16.mxu1 %v3887_v58  ;;  %1129 = vmatprep.subr.bf16.mxu0 %v3889_v59 }
 0x527   :  { %1089 = vmatpush1.bf16.msra.mxu1 %v3895_v60  ;;  %1130 = vmatpush1.bf16.msra.mxu0 %v3897_v61 }
 0x528   :  { %1090 = vmatprep.subr.bf16.mxu1 %v3901_v62  ;;  %1131 = vmatprep.subr.bf16.mxu0 %v3903_v63 }
 0x52b   :  { %1091 = vmatpush1.bf16.msra.mxu1 %v3907_v2  ;;  %1132 = vmatpush1.bf16.msra.mxu0 %v3909_v3 }
 0x52c   :  { %1092 = vmatprep.subr.bf16.mxu1 %v3913_v4  ;;  %1133 = vmatprep.subr.bf16.mxu0 %v3915_v6 }
 0x52f   :  { %1093 = vmatpush1.bf16.msra.mxu1 %v3919_v7  ;;  %1134 = vmatpush1.bf16.msra.mxu0 %v3921_v8 }
 0x530   :  { %1094 = vmatprep.subr.bf16.mxu1 %v3925_v9  ;;  %1135 = vmatprep.subr.bf16.mxu0 %v3927_v10 }
 0x533   :  { %1095 = vmatpush1.bf16.msra.mxu1 %v3931_v11  ;;  %1136 = vmatpush1.bf16.msra.mxu0 %v3933_v12 }
 0x534   :  { %1096 = vmatprep.subr.bf16.mxu1 %v3937_v13  ;;  %1137 = vmatprep.subr.bf16.mxu0 %v3939_v14 }
 0x537   :  { %1097 = vmatpush1.bf16.msra.mxu1 %v3943_v15  ;;  %1138 = vmatpush1.bf16.msra.mxu0 %v3945_v16 }
 0x538   :  { %1098 = vmatprep.subr.bf16.mxu1 %v3949_v17  ;;  %1139 = vmatprep.subr.bf16.mxu0 %v3951_v18 }
 0x53b   :  { %1099 = vmatpush1.bf16.msra.mxu1 %v3955_v19  ;;  %1140 = vmatpush1.bf16.msra.mxu0 %v3957_v20 }
 0x53c   :  { %1192 = vmatprep.subr.bf16.mxu1 %v3848_v28  ;;  %1233 = vmatprep.subr.bf16.mxu0 %v3850_v29 }
 0x5f1   :  { %v995_v5 = vpop.f32.mrb[16].mxu1  ;;  %v1036_v42 = vpop.f32.mrb[20].mxu0 }
 0x5f2   :  { %v1047_v50 = vrot.slane %v995_v5, 2  ;;  %v997_v38 = vpop.f32.mrb[17].mxu1  ;;  %v1038_v26 = vpop.f32.mrb[21].mxu0  ;;  %v1049_v33 = vrot.slane %v1036_v42, 2 }
 0x5f3   :  { %v1048_v27 = vrot.slane %v997_v38, 2  ;;  %v999_v22 = vpop.f32.mrb[18].mxu1  ;;  %v1040_v53 = vpop.f32.mrb[22].mxu0  ;;  %v1050_v48 = vrot.slane %v1038_v26, 2 }
 0x5f4   :  { %v1055_v34 = vadd.f32 %v1047_v50, %v4024_v46  ;;  %v1000_v23 = vpop.f32.mrb[19].mxu1  ;;  %v1041_v35 = vpop.f32.mrb[23].mxu0  ;;  %v1057_v43 = vadd.f32 %v1049_v33, %v4030_v25 }
 0x5f5   :  { %v1056_v37 = vadd.f32 %v1048_v27, %v4026_v47  ;;  %v1058_v30 = vadd.f32 %v1050_v48, %v4033_v32  ;;  %v1073_v47 = vrot.slane %v4120_v36, 6 }
 0x5f6   :  { %v1059_v49 = vmul.f32 0.5, %v1055_v34 }
 0x5f7   :  { %v1063_v24 = vmul.f32 0.5, %v1056_v37  ;;  %v1068_v5 = vmul.f32 0.5, %v1058_v30 }
 0x5f8   :  { %3504 = vtanh.f32 %v1059_v49 }
 0x5f9   :  { %3506 = vtanh.f32 %v1063_v24 }
 0x5fa   :  { %3508 = vtanh.f32 %v1057_v43 }
 0x5fb   :  { %3510 = vtanh.f32 %v1068_v5 }
 0x602   :  { %v3505_v38 = vpop.eup %3504 }
 0x603   :  { %v3507_v22 = vpop.eup %3506  ;;  %v1061_v53 = vadd.f32 1.0, %v3505_v38 }
 0x604   :  { %v1065_v46 = vadd.f32 1.0, %v3507_v22  ;;  %v3509_v50 = vpop.eup %3508 }
 0x605   :  { %v1062_v42 = vmul.f32 0.5, %v1061_v53  ;;  %v3511_v25 = vpop.eup %3510 }
 0x606   :  { %v1066_v23 = vmul.f32 0.5, %v1065_v46  ;;  %v1070_v26 = vadd.f32 1.0, %v3511_v25 }
 0x607   :  { %v1076_v27 = vmul.f32 %v3509_v50, %v1062_v42 }
 0x608   :  { %v1075_v34 = vmul.f32 %v1073_v47, %v1066_v23  ;;  %v1071_v32 = vmul.f32 0.5, %v1070_v26 }
 0x60a   :  { %v4162_v35 = vadd.f32 %v1076_v27, %v1075_v34 }
 0x60c   :  { %3512 = vtanh.f32 %v4162_v35 }
 0x616   :  { %v3513_v33 = vpop.eup %3512 }
 0x617   :  { %v1079_v37 = vmul.f32 %v3513_v33, %v1071_v32 }
 0x619   :  { %v1080_v49 = vpack.c.bf16 %v1079_v37, %v1079_v37 }
 0x61b   :  { %v1082_v24 = vrot.slane %v1080_v49, 3  ;;  %v1184_v49 = vrot.slane %v4162_v35, 6 }
 0x61d   :  { %1117 = vmatmul.mubr.bf16.vlgmr.msra.gmra.mrb[20].mxu1 %v1082_v24  ;;  %1158 = vmatmul.mubr.bf16.vlgmr.msra.gmra.mrb[24].mxu0 %v1082_v24 }
 0x61e   :  { %1193 = vmatpush1.bf16.msra.mxu1 %v3871_v51  ;;  %1234 = vmatpush1.bf16.msra.mxu0 %v3873_v52 }
 0x61f   :  { %1194 = vmatprep.subr.bf16.mxu1 %v3875_v54  ;;  %1235 = vmatprep.subr.bf16.mxu0 %v3877_v55 }
 0x620   :  { %1224 = vmatprep.mubr.bf16.mxu1 %v4810_v0  ;;  %1265 = vmatprep.mubr.bf16.mxu0 %v4810_v0 }
 0x622   :  { %1195 = vmatpush1.bf16.msra.mxu1 %v3881_v56  ;;  %1236 = vmatpush1.bf16.msra.mxu0 %v3883_v57 }
 0x623   :  { %1196 = vmatprep.subr.bf16.mxu1 %v3887_v58  ;;  %1237 = vmatprep.subr.bf16.mxu0 %v3889_v59 }
 0x626   :  { %1197 = vmatpush1.bf16.msra.mxu1 %v3895_v60  ;;  %1238 = vmatpush1.bf16.msra.mxu0 %v3897_v61 }
 0x627   :  { %1198 = vmatprep.subr.bf16.mxu1 %v3901_v62  ;;  %1239 = vmatprep.subr.bf16.mxu0 %v3903_v63 }
 0x62a   :  { %1199 = vmatpush1.bf16.msra.mxu1 %v3907_v2  ;;  %1240 = vmatpush1.bf16.msra.mxu0 %v3909_v3 }
 0x62b   :  { %1200 = vmatprep.subr.bf16.mxu1 %v3913_v4  ;;  %1241 = vmatprep.subr.bf16.mxu0 %v3915_v6 }
 0x62e   :  { %1201 = vmatpush1.bf16.msra.mxu1 %v3919_v7  ;;  %1242 = vmatpush1.bf16.msra.mxu0 %v3921_v8 }
 0x62f   :  { %1202 = vmatprep.subr.bf16.mxu1 %v3925_v9  ;;  %1243 = vmatprep.subr.bf16.mxu0 %v3927_v10 }
 0x632   :  { %1203 = vmatpush1.bf16.msra.mxu1 %v3931_v11  ;;  %1244 = vmatpush1.bf16.msra.mxu0 %v3933_v12 }
 0x633   :  { %1204 = vmatprep.subr.bf16.mxu1 %v3937_v13  ;;  %1245 = vmatprep.subr.bf16.mxu0 %v3939_v14 }
 0x636   :  { %1205 = vmatpush1.bf16.msra.mxu1 %v3943_v15  ;;  %1246 = vmatpush1.bf16.msra.mxu0 %v3945_v16 }
 0x637   :  { %1206 = vmatprep.subr.bf16.mxu1 %v3949_v17  ;;  %1247 = vmatprep.subr.bf16.mxu0 %v3951_v18 }
 0x63a   :  { %1207 = vmatpush1.bf16.msra.mxu1 %v3955_v19  ;;  %1248 = vmatpush1.bf16.msra.mxu0 %v3957_v20 }
 0x63b   :  { %1315 = vmatprep.subr.bf16.mxu1 %v3848_v28  ;;  %1356 = vmatprep.subr.bf16.mxu0 %v3850_v29 }
 0x6f0   :  { %v1118_v36 = vpop.f32.mrb[20].mxu1  ;;  %v1159_v43 = vpop.f32.mrb[24].mxu0 }
 0x6f1   :  { %v1166_v48 = vadd.f32 %v1118_v36, %v4016_v39  ;;  %v1120_v30 = vpop.f32.mrb[21].mxu1  ;;  %v1161_v5 = vpop.f32.mrb[25].mxu0  ;;  %v1168_v47 = vadd.f32 %v1159_v43, %v4018_v40 }
 0x6f2   :  { %v1167_v38 = vadd.f32 %v1120_v30, %v4020_v44  ;;  %v1122_v22 = vpop.f32.mrb[22].mxu1  ;;  %v1163_v53 = vpop.f32.mrb[26].mxu0  ;;  %v1169_v28 = vadd.f32 %v1161_v5, %v4022_v45 }
 0x6f3   :  { %v1170_v46 = vmul.f32 0.5, %v1166_v48  ;;  %v1123_v42 = vpop.f32.mrb[23].mxu1  ;;  %v1164_v50 = vpop.f32.mrb[27].mxu0 }
 0x6f4   :  { %v1174_v23 = vmul.f32 0.5, %v1167_v38  ;;  %v1179_v29 = vmul.f32 0.5, %v1169_v28 }
 0x6f5   :  { %3514 = vtanh.f32 %v1170_v46 }
 0x6f6   :  { %3516 = vtanh.f32 %v1174_v23 }
 0x6f7   :  { %3518 = vtanh.f32 %v1168_v47 }
 0x6f8   :  { %3520 = vtanh.f32 %v1179_v29 }
 0x6ff   :  { %v3515_v27 = vpop.eup %3514 }
 0x700   :  { %v3517_v34 = vpop.eup %3516  ;;  %v1172_v25 = vadd.f32 1.0, %v3515_v27 }
 0x701   :  { %v1176_v26 = vadd.f32 1.0, %v3517_v34  ;;  %v3519_v33 = vpop.eup %3518  ;;  %v3650_v34 = vld [vmem:[#allocation2 + $0x80] ss:$16 sps:$4 sm:$0xff]  }
 0x702   :  { %v1173_v32 = vmul.f32 0.5, %v1172_v25  ;;  %v3521_v43 = vpop.eup %3520  ;;  %v3651_v25 = vld [vmem:[#allocation2 + $0x88] ss:$16 sps:$4 sm:$0xff]  }
 0x703   :  { %v1177_v37 = vmul.f32 0.5, %v1176_v26  ;;  %v1181_v30 = vadd.f32 1.0, %v3521_v43  ;;  %v3652_v26 = vld [vmem:[#allocation2 + $0xa4] ss:$16 sps:$4 sm:$0xff]  }
 0x704   :  { %v1187_v24 = vmul.f32 %v3519_v33, %v1173_v32  ;;  %v3653_v32 = vld [vmem:[#allocation2 + $0xac] ss:$16 sps:$4 sm:$0xff]   ;;  %v3654_v33 = vld [vmem:[#allocation2 + $0xa0] ss:$16 sps:$4 sm:$0xff]   ;;  %v3660_v43 = vld [vmem:[#allocation2 + $0xe4] ss:$16 sps:$4 sm:$0xff]  }
 0x705   :  { %v1186_v36 = vmul.f32 %v1184_v49, %v1177_v37  ;;  %v1182_v5 = vmul.f32 0.5, %v1181_v30  ;;  %v3655_v37 = vld [vmem:[#allocation2 + $0xa8] ss:$16 sps:$4 sm:$0xff]   ;;  %v3656_v49 = vld [vmem:[#allocation2 + $0xc4] ss:$16 sps:$4 sm:$0xff]  }
 0x706   :  { %v3661_v30 = vld [vmem:[#allocation2 + $0xec] ss:$16 sps:$4 sm:$0xff]  }
 0x707   :  { %v4204_v48 = vadd.f32 %v1187_v24, %v1186_v36  ;;  %v3657_v24 = vld [vmem:[#allocation2 + $0xcc] ss:$16 sps:$4 sm:$0xff]   ;;  %v3658_v36 = vld [vmem:[#allocation2 + $0xc0] ss:$16 sps:$4 sm:$0xff]  }
 0x709   :  { %3522 = vtanh.f32 %v4204_v48 }
 0x713   :  { %v3523_v38 = vpop.eup %3522 }
 0x714   :  { %v1190_v22 = vmul.f32 %v3523_v38, %v1182_v5  ;;  %v3662_v5 = vld [vmem:[#allocation2 + $0xe0] ss:$16 sps:$4 sm:$0xff]   ;;  %v3663_v38 = vld [vmem:[#allocation2 + $0xe8] ss:$16 sps:$4 sm:$0xff]  }
 0x716   :  { %v1191_v53 = vpack.c.bf16 %v1190_v22, %v1190_v22  ;;  %v3664_v22 = vld [vmem:[#allocation2 + $0x104] ss:$16 sps:$4 sm:$0xff]  }
 0x718   :  { %1225 = vmatmul.mubr.bf16.vlgmr.msra.gmra.mrb[24].mxu1 %v1191_v53  ;;  %1266 = vmatmul.mubr.bf16.vlgmr.msra.gmra.mrb[28].mxu0 %v1191_v53  ;;  %v3665_v53 = vld [vmem:[#allocation2 + $0x10c] ss:$16 sps:$4 sm:$0xff]  }
 0x719   :  { %1316 = vmatpush1.bf16.msra.mxu1 %v3871_v51  ;;  %1357 = vmatpush1.bf16.msra.mxu0 %v3873_v52  ;;  %v3648_v51 = vld [vmem:[#allocation2 + $0x84] ss:$16 sps:$4 sm:$0xff]   ;;  %v3649_v52 = vld [vmem:[#allocation2 + $0x8c] ss:$16 sps:$4 sm:$0xff]  }
 0x71a   :  { %1317 = vmatprep.subr.bf16.mxu1 %v3875_v54  ;;  %1358 = vmatprep.subr.bf16.mxu0 %v3877_v55 }
 0x71b   :  { %1347 = vmatprep.mubr.bf16.mxu1 %v4810_v0  ;;  %1388 = vmatprep.mubr.bf16.mxu0 %v4810_v0 }
 0x71d   :  { %1318 = vmatpush1.bf16.msra.mxu1 %v3881_v56  ;;  %1359 = vmatpush1.bf16.msra.mxu0 %v3883_v57 }
 0x71e   :  { %1319 = vmatprep.subr.bf16.mxu1 %v3887_v58  ;;  %1360 = vmatprep.subr.bf16.mxu0 %v3889_v59 }
 0x721   :  { %1320 = vmatpush1.bf16.msra.mxu1 %v3895_v60  ;;  %1361 = vmatpush1.bf16.msra.mxu0 %v3897_v61 }
 0x722   :  { %1321 = vmatprep.subr.bf16.mxu1 %v3901_v62  ;;  %1362 = vmatprep.subr.bf16.mxu0 %v3903_v63 }
 0x725   :  { %1322 = vmatpush1.bf16.msra.mxu1 %v3907_v2  ;;  %1363 = vmatpush1.bf16.msra.mxu0 %v3909_v3 }
 0x726   :  { %1323 = vmatprep.subr.bf16.mxu1 %v3913_v4  ;;  %1364 = vmatprep.subr.bf16.mxu0 %v3915_v6 }
 0x729   :  { %1324 = vmatpush1.bf16.msra.mxu1 %v3919_v7  ;;  %1365 = vmatpush1.bf16.msra.mxu0 %v3921_v8 }
 0x72a   :  { %1325 = vmatprep.subr.bf16.mxu1 %v3925_v9  ;;  %1366 = vmatprep.subr.bf16.mxu0 %v3927_v10 }
 0x72d   :  { %1326 = vmatpush1.bf16.msra.mxu1 %v3931_v11  ;;  %1367 = vmatpush1.bf16.msra.mxu0 %v3933_v12 }
 0x72e   :  { %1327 = vmatprep.subr.bf16.mxu1 %v3937_v13  ;;  %1368 = vmatprep.subr.bf16.mxu0 %v3939_v14 }
 0x731   :  { %1328 = vmatpush1.bf16.msra.mxu1 %v3943_v15  ;;  %1369 = vmatpush1.bf16.msra.mxu0 %v3945_v16 }
 0x732   :  { %1329 = vmatprep.subr.bf16.mxu1 %v3949_v17  ;;  %1370 = vmatprep.subr.bf16.mxu0 %v3951_v18 }
 0x735   :  { %1330 = vmatpush1.bf16.msra.mxu1 %v3955_v19  ;;  %1371 = vmatpush1.bf16.msra.mxu0 %v3957_v20  ;;  %v1304_v19 = vrot.slane %v4204_v48, 6  ;;  %v3659_v48 = vld [vmem:[#allocation2 + $0xc8] ss:$16 sps:$4 sm:$0xff]  }
 0x736   :  { %1438 = vmatprep.subr.bf16.mxu1 %v3648_v51  ;;  %1479 = vmatprep.subr.bf16.mxu0 %v3649_v52  ;;  %v3666_v51 = vld [vmem:[#allocation2 + $0x100] ss:$16 sps:$4 sm:$0xff]   ;;  %v3667_v52 = vld [vmem:[#allocation2 + $0x108] ss:$16 sps:$4 sm:$0xff]  }
 0x7eb   :  { %v1226_v54 = vpop.f32.mrb[24].mxu1  ;;  %v1267_v55 = vpop.f32.mrb[28].mxu0 }
 0x7ec   :  { %v1278_v56 = vrot.slane %v1226_v54, 6  ;;  %v1228_v57 = vpop.f32.mrb[25].mxu1  ;;  %v1269_v58 = vpop.f32.mrb[29].mxu0  ;;  %v1280_v63 = vrot.slane %v1267_v55, 6  ;;  %v3668_v54 = vld [vmem:[#allocation2 + $0x124] ss:$16 sps:$4 sm:$0xff]  }
 0x7ed   :  { %v1279_v59 = vrot.slane %v1228_v57, 6  ;;  %v1230_v60 = vpop.f32.mrb[26].mxu1  ;;  %v1271_v61 = vpop.f32.mrb[30].mxu0  ;;  %v1281_v9 = vrot.slane %v1269_v58, 6  ;;  %v3669_v55 = vld [vmem:[#allocation2 + $0x12c] ss:$16 sps:$4 sm:$0xff]  }
 0x7ee   :  { %v1286_v62 = vadd.f32 %v1278_v56, %v4016_v39  ;;  %v1231_v2 = vpop.f32.mrb[27].mxu1  ;;  %v1272_v3 = vpop.f32.mrb[31].mxu0  ;;  %v1288_v8 = vadd.f32 %v1280_v63, %v4018_v40  ;;  %v3670_v56 = vld [vmem:[#allocation2 + $0x120] ss:$16 sps:$4 sm:$0xff]   ;;  %v3671_v57 = vld [vmem:[#allocation2 + $0x128] ss:$16 sps:$4 sm:$0xff]  }
 0x7ef   :  { %v1287_v4 = vadd.f32 %v1279_v59, %v4020_v44  ;;  %v1289_v10 = vadd.f32 %v1281_v9, %v4022_v45  ;;  %v3672_v58 = vld [vmem:[#allocation2 + $0x144] ss:$16 sps:$4 sm:$0xff]   ;;  %v3673_v59 = vld [vmem:[#allocation2 + $0x14c] ss:$16 sps:$4 sm:$0xff]   ;;  %v3674_v60 = vld [vmem:[#allocation2 + $0x140] ss:$16 sps:$4 sm:$0xff]  }
 0x7f0   :  { %v1290_v6 = vmul.f32 0.5, %v1286_v62  ;;  %v3675_v61 = vld [vmem:[#allocation2 + $0x148] ss:$16 sps:$4 sm:$0xff]   ;;  %v3676_v62 = vld [vmem:[#allocation2 + $0x164] ss:$16 sps:$4 sm:$0xff]  }
 0x7f1   :  { %v1294_v7 = vmul.f32 0.5, %v1287_v4  ;;  %v1299_v11 = vmul.f32 0.5, %v1289_v10  ;;  %v3677_v63 = vld [vmem:[#allocation2 + $0x16c] ss:$16 sps:$4 sm:$0xff]   ;;  %v3678_v2 = vld [vmem:[#allocation2 + $0x160] ss:$16 sps:$4 sm:$0xff]  }
 0x7f2   :  { %3524 = vtanh.f32 %v1290_v6  ;;  %v3679_v3 = vld [vmem:[#allocation2 + $0x168] ss:$16 sps:$4 sm:$0xff]  }
 0x7f3   :  { %3526 = vtanh.f32 %v1294_v7 }
 0x7f4   :  { %3528 = vtanh.f32 %v1288_v8 }
 0x7f5   :  { %3530 = vtanh.f32 %v1299_v11 }
 0x7fc   :  { %v3525_v12 = vpop.eup %3524 }
 0x7fd   :  { %v3527_v13 = vpop.eup %3526  ;;  %v1292_v14 = vadd.f32 1.0, %v3525_v12 }
 0x7fe   :  { %v1296_v15 = vadd.f32 1.0, %v3527_v13  ;;  %v3529_v17 = vpop.eup %3528 }
 0x7ff   :  { %v1293_v16 = vmul.f32 0.5, %v1292_v14  ;;  %v3531_v42 = vpop.eup %3530 }
 0x800   :  { %v1297_v18 = vmul.f32 0.5, %v1296_v15  ;;  %v1301_v50 = vadd.f32 1.0, %v3531_v42 }
 0x801   :  { %v1307_v20 = vmul.f32 %v3529_v17, %v1293_v16 }
 0x802   :  { %v1306_v35 = vmul.f32 %v1304_v19, %v1297_v18  ;;  %v1302_v23 = vmul.f32 0.5, %v1301_v50 }
 0x804   :  { %v4244_v46 = vadd.f32 %v1307_v20, %v1306_v35 }
 0x806   :  { %3532 = vtanh.f32 %v4244_v46 }
 0x810   :  { %v3533_v47 = vpop.eup %3532 }
 0x811   :  { %v1310_v28 = vmul.f32 %v3533_v47, %v1302_v23 }
 0x813   :  { %v1311_v29 = vpack.c.bf16 %v1310_v28, %v1310_v28 }
 0x815   :  { %v1313_v27 = vrot.slane %v1311_v29, 1 }
 0x817   :  { %1348 = vmatmul.mubr.bf16.vlgmr.msra.gmra.mrb[28].mxu1 %v1313_v27  ;;  %1389 = vmatmul.mubr.bf16.vlgmr.msra.gmra.mrb[32].mxu0 %v1313_v27 }
 0x818   :  { %1439 = vmatpush1.bf16.msra.mxu1 %v3650_v34  ;;  %1480 = vmatpush1.bf16.msra.mxu0 %v3651_v25 }
 0x819   :  { %1440 = vmatprep.subr.bf16.mxu1 %v3652_v26  ;;  %1481 = vmatprep.subr.bf16.mxu0 %v3653_v32  ;;  %v1427_v26 = vrot.slane %v4244_v46, 6 }
 0x81a   :  { %1470 = vmatprep.mubr.bf16.mxu1 %v4810_v0  ;;  %1511 = vmatprep.mubr.bf16.mxu0 %v4810_v0 }
 0x81c   :  { %1441 = vmatpush1.bf16.msra.mxu1 %v3654_v33  ;;  %1482 = vmatpush1.bf16.msra.mxu0 %v3655_v37 }
 0x81d   :  { %1442 = vmatprep.subr.bf16.mxu1 %v3656_v49  ;;  %1483 = vmatprep.subr.bf16.mxu0 %v3657_v24 }
 0x820   :  { %1443 = vmatpush1.bf16.msra.mxu1 %v3658_v36  ;;  %1484 = vmatpush1.bf16.msra.mxu0 %v3659_v48 }
 0x821   :  { %1444 = vmatprep.subr.bf16.mxu1 %v3660_v43  ;;  %1485 = vmatprep.subr.bf16.mxu0 %v3661_v30 }
 0x824   :  { %1445 = vmatpush1.bf16.msra.mxu1 %v3662_v5  ;;  %1486 = vmatpush1.bf16.msra.mxu0 %v3663_v38 }
 0x825   :  { %1446 = vmatprep.subr.bf16.mxu1 %v3664_v22  ;;  %1487 = vmatprep.subr.bf16.mxu0 %v3665_v53 }
 0x828   :  { %1447 = vmatpush1.bf16.msra.mxu1 %v3666_v51  ;;  %1488 = vmatpush1.bf16.msra.mxu0 %v3667_v52 }
 0x829   :  { %1448 = vmatprep.subr.bf16.mxu1 %v3668_v54  ;;  %1489 = vmatprep.subr.bf16.mxu0 %v3669_v55 }
 0x82c   :  { %1449 = vmatpush1.bf16.msra.mxu1 %v3670_v56  ;;  %1490 = vmatpush1.bf16.msra.mxu0 %v3671_v57 }
 0x82d   :  { %1450 = vmatprep.subr.bf16.mxu1 %v3672_v58  ;;  %1491 = vmatprep.subr.bf16.mxu0 %v3673_v59 }
 0x830   :  { %1451 = vmatpush1.bf16.msra.mxu1 %v3674_v60  ;;  %1492 = vmatpush1.bf16.msra.mxu0 %v3675_v61 }
 0x831   :  { %1452 = vmatprep.subr.bf16.mxu1 %v3676_v62  ;;  %1493 = vmatprep.subr.bf16.mxu0 %v3677_v63 }
 0x834   :  { %1453 = vmatpush1.bf16.msra.mxu1 %v3678_v2  ;;  %1494 = vmatpush1.bf16.msra.mxu0 %v3679_v3 }
 0x835   :  { %3288 = vmatprep.subr.bf16.mxu1 %v4805_v1  ;;  %3296 = vmatprep.subr.bf16.mxu0 %v4805_v1 }
 0x8ea   :  { %v1349_v4 = vpop.f32.mrb[28].mxu1  ;;  %v1390_v6 = vpop.f32.mrb[32].mxu0 }
 0x8eb   :  { %v1401_v7 = vrot.slane %v1349_v4, 4  ;;  %v1351_v8 = vpop.f32.mrb[29].mxu1  ;;  %v1392_v9 = vpop.f32.mrb[33].mxu0  ;;  %v1403_v14 = vrot.slane %v1390_v6, 4 }
 0x8ec   :  { %v1402_v10 = vrot.slane %v1351_v8, 4  ;;  %v1353_v11 = vpop.f32.mrb[30].mxu1  ;;  %v1394_v12 = vpop.f32.mrb[34].mxu0  ;;  %v1404_v35 = vrot.slane %v1392_v9, 4 }
 0x8ed   :  { %v1409_v13 = vadd.f32 %v1401_v7, %v4016_v39  ;;  %v1354_v15 = vpop.f32.mrb[31].mxu1  ;;  %v1395_v16 = vpop.f32.mrb[35].mxu0  ;;  %v1411_v20 = vadd.f32 %v1403_v14, %v4018_v40 }
 0x8ee   :  { %v1410_v17 = vadd.f32 %v1402_v10, %v4020_v44  ;;  %v1412_v42 = vadd.f32 %v1404_v35, %v4022_v45 }
 0x8ef   :  { %v1413_v18 = vmul.f32 0.5, %v1409_v13 }
 0x8f0   :  { %v1417_v19 = vmul.f32 0.5, %v1410_v17  ;;  %v1422_v50 = vmul.f32 0.5, %v1412_v42 }
 0x8f1   :  { %3534 = vtanh.f32 %v1413_v18 }
 0x8f2   :  { %3536 = vtanh.f32 %v1417_v19  ;;  %v3408_v19 = vld [vmem:[%s4798_s3 + $0x10] sm:$0xff]  }
 0x8f3   :  { %3538 = vtanh.f32 %v1411_v20  ;;  %v1658_v20 = vld [vmem:[%s4796_s1] sm:$0x3] }
 0x8f4   :  { %3540 = vtanh.f32 %v1422_v50 }
 0x8fb   :  { %v3535_v23 = vpop.eup %3534 }
 0x8fc   :  { %v3537_v47 = vpop.eup %3536  ;;  %v1415_v28 = vadd.f32 1.0, %v3535_v23 }
 0x8fd   :  { %v1419_v29 = vadd.f32 1.0, %v3537_v47  ;;  %v3539_v34 = vpop.eup %3538 }
 0x8fe   :  { %v1416_v27 = vmul.f32 0.5, %v1415_v28  ;;  %v3541_v49 = vpop.eup %3540 }
 0x8ff   :  { %v1420_v25 = vmul.f32 0.5, %v1419_v29  ;;  %v1424_v24 = vadd.f32 1.0, %v3541_v49 }
 0x900   :  { %v1430_v32 = vmul.f32 %v3539_v34, %v1416_v27 }
 0x901   :  { %v1429_v33 = vmul.f32 %v1427_v26, %v1420_v25  ;;  %v1425_v36 = vmul.f32 0.5, %v1424_v24 }
 0x903   :  { %v1431_v37 = vadd.f32 %v1430_v32, %v1429_v33 }
 0x905   :  { %3542 = vtanh.f32 %v1431_v37 }
 0x90f   :  { %v3543_v48 = vpop.eup %3542 }
 0x910   :  { %v1433_v43 = vmul.f32 %v3543_v48, %v1425_v36 }
 0x912   :  { %v1434_v30 = vpack.c.bf16 %v1433_v43, %v1433_v43 }
 0x914   :  { %v1436_v5 = vrot.slane %v1434_v30, 2 }
 0x916   :  { %1471 = vmatmul.mubr.bf16.vlgmr.msra.gmra.mrb[32].mxu1 %v1436_v5  ;;  %1512 = vmatmul.mubr.bf16.vlgmr.msra.gmra.mrb[36].mxu0 %v1436_v5 }
 0x917   :  { %3292 = vmatprep.mubr.msk.bf16.mxu1 %vm3768_vm0, %v4805_v1  ;;  %3302 = vmatprep.mubr.msk.bf16.mxu0 %vm3768_vm0, %v4805_v1 }
 0x9e9   :  { %v1472_v46 = vpop.f32.mrb[32].mxu1  ;;  %v1513_v38 = vpop.f32.mrb[36].mxu0 }
 0x9ea   :  { %v1524_v22 = vrot.slane %v1472_v46, 2  ;;  %v1474_v53 = vpop.f32.mrb[33].mxu1  ;;  %v1515_v51 = vpop.f32.mrb[37].mxu0  ;;  %v1526_v57 = vrot.slane %v1513_v38, 2 }
 0x9eb   :  { %v1525_v52 = vrot.slane %v1474_v53, 2  ;;  %v1476_v54 = vpop.f32.mrb[34].mxu1  ;;  %v1517_v55 = vpop.f32.mrb[38].mxu0  ;;  %v1527_v2 = vrot.slane %v1515_v51, 2 }
 0x9ec   :  { %v1532_v56 = vadd.f32 %v1524_v22, %v4016_v39  ;;  %v1477_v58 = vpop.f32.mrb[35].mxu1  ;;  %v1518_v59 = vpop.f32.mrb[39].mxu0  ;;  %v1534_v63 = vadd.f32 %v1526_v57, %v4018_v40  ;;  %v4808_v22 = vmov -1.0  }
 0x9ed   :  { %v1533_v60 = vadd.f32 %v1525_v52, %v4020_v44  ;;  %v1535_v3 = vadd.f32 %v1527_v2, %v4022_v45  ;;  %v1550_v44 = vrot.slane %v1431_v37, 6  ;;  %v3407_v45 = vld [vmem:[%s4798_s3 + $0x8] sm:$0xff]  }
 0x9ee   :  { %v1536_v61 = vmul.f32 0.5, %v1532_v56  ;;  %3289 = vmatpush3.bf16.msra.mxu1 %v3407_v45 }
 0x9ef   :  { %v1540_v62 = vmul.f32 0.5, %v1533_v60  ;;  %v1545_v4 = vmul.f32 0.5, %v1535_v3  ;;  %3290 = vmatprep.subr.bf16.mxu1 %v4805_v1  ;;  %v155_v60 = vld [vmem:[#allocation4 + $0x2] ss:$0 sm:$0xff] }
 0x9f0   :  { %3544 = vtanh.f32 %v1536_v61 }
 0x9f1   :  { %3546 = vtanh.f32 %v1540_v62 }
 0x9f2   :  { %3548 = vtanh.f32 %v1534_v63  ;;  %3291 = vmatpush3.bf16.msra.mxu1 %v3408_v19 }
 0x9f3   :  { %3550 = vtanh.f32 %v1545_v4 }
 0x9fa   :  { %v3545_v6 = vpop.eup %3544 }
 0x9fb   :  { %v3547_v7 = vpop.eup %3546  ;;  %v1538_v8 = vadd.f32 1.0, %v3545_v6 }
 0x9fc   :  { %v1542_v39 = vadd.f32 1.0, %v3547_v7  ;;  %v3549_v10 = vpop.eup %3548 }
 0x9fd   :  { %v1539_v9 = vmul.f32 0.5, %v1538_v8  ;;  %v3551_v40 = vpop.eup %3550 }
 0x9fe   :  { %v1543_v11 = vmul.f32 0.5, %v1542_v39  ;;  %v1547_v15 = vadd.f32 1.0, %v3551_v40  ;;  %v3409_v39 = vld [vmem:[%s4798_s3 + $0x28] sm:$0xff]   ;;  %v3414_v40 = vld [vmem:[#allocation2 + $0x184] ss:$16 sps:$4 sm:$0xff]  }
 0x9ff   :  { %v1553_v12 = vmul.f32 %v3549_v10, %v1539_v9  ;;  %3297 = vmatpush3.bf16.msra.mxu0 %v3409_v39  ;;  %v3410_v10 = vld [vmem:[%s4798_s3 + $0x30] sm:$0xff]   ;;  %1817 = vmatprep.subr.bf16.mxu1 %v3414_v40  ;;  %v4392_v39 = vld [vmem:[#allocation2 + $0x268] ss:$16 sps:$4 sm:$0xff]  }
 0xa00   :  { %v1552_v13 = vmul.f32 %v1550_v44, %v1543_v11  ;;  %v1548_v16 = vmul.f32 0.5, %v1547_v15  ;;  %3298 = vmatprep.subr.bf16.mxu0 %v4805_v1  ;;  %v3417_v15 = vld [vmem:[#allocation2 + $0x18c] ss:$16 sps:$4 sm:$0xff]   ;;  %v4414_v40 = vld [vmem:[#allocation2 + $0x2a0] ss:$16 sps:$4 sm:$0xff]  }
 0xa02   :  { %v1554_v14 = vadd.f32 %v1553_v12, %v1552_v13  ;;  %v3411_v12 = vld [vmem:[%s4798_s3 + $0x38] ss:$0 sps:$4 sm:$0xff]  }
 0xa03   :  { %3299 = vmatpush3.bf16.msra.mxu0 %v3410_v10  ;;  %v1709_v13 = vsel %vm240_vm5, %v3411_v12, 0  ;;  %v4398_v10 = vld [vmem:[#allocation2 + $0x28c] ss:$16 sps:$4 sm:$0xff]   ;;  %v4404_v12 = vld [vmem:[#allocation2 + $0x288] ss:$16 sps:$4 sm:$0xff]  }
 0xa04   :  { %3552 = vtanh.f32 %v1554_v14  ;;  %3300 = vmatprep.subr.bf16.mxu0 %v4805_v1  ;;  %v3412_v14 = vld [vmem:[#allocation2 + $0x180] ss:$16 sps:$4 sm:$0xff]  }
 0xa07   :  { %3301 = vmatpush3.bf16.msra.mxu0 %v1709_v13  ;;  %v4408_v13 = vld [vmem:[#allocation2 + $0x2a4] ss:$16 sps:$4 sm:$0xff]  }
 0xa08   :  { %1860 = vmatprep.subr.bf16.mxu0 %v3417_v15  ;;  %v4416_v15 = vld [vmem:[#allocation2 + $0x2a8] ss:$16 sps:$4 sm:$0xff]  }
 0xa0e   :  { %v3553_v17 = vpop.eup %3552 }
 0xa0f   :  { %v1556_v18 = vmul.f32 %v3553_v17, %v1548_v16 }
 0xa11   :  { %1558 = vrot.lane.b32.xlu1 %v1556_v18, %s3769_s0 }
 0xa15   :  { %1660 = vrot.lane.b32.xlu1 %v1658_v20, %s3770_s6 }
 0xa83   :  { %v1559_v35 = vpop.permute.xlu1 %1558 }
 0xa84   :  { %v1561_v42 = vadd.f32 %v1559_v35, %v1556_v18 }
 0xa86   :  { %v1562_v50 = vmul.f32 0.5, %v1561_v42 }
 0xa87   :  { %v1661_v9 = vpop.permute.xlu1 %1660 }
 0xa88   :  { %1591 = vrot.lane.b32.xlu0 %v1562_v50, %s3771_s7  ;;  %v1564_v23 = vmul.f32 0.70710677, %v1562_v50  ;;  %v1563_v54 = vmul.f32 0.5, %v1562_v50  ;;  %v1671_v50 = vsel %vm238_vm4, 0.0, %v3852_v31  ;;  %v4316_v31 = vld [vmem:[#allocation2 + $0x1c4] ss:$16 sps:$4 sm:$0xff]  }
 0xa8a   :  { %v1567_v47 = vand.u32 2147483647, %v1564_v23  ;;  %vm1565_vm9 = vcmp.ge.f32.partialorder %v1564_v23, 0.0 }
 0xa8b   :  { %v1566_v53 = vsel %vm1565_vm9, 1.0, %v4808_v22 }
 0xa8c   :  { %v1568_v28 = vmul.f32 0.3275911, %v1567_v47  ;;  %v1581_v33 = vsub.f32 0.0, %v1567_v47 }
 0xa8e   :  { %v1569_v29 = vadd.f32 1.0, %v1568_v28  ;;  %v1582_v49 = vmul.f32 %v1581_v33, %v1567_v47  ;;  %v4318_v33 = vld [vmem:[#allocation2 + $0x1cc] ss:$16 sps:$4 sm:$0xff]  }
 0xa90   :  { %3554 = vrcp.f32 %v1569_v29  ;;  %v1583_v36 = vmul.f32 1.442695, %v1582_v49  ;;  %v3415_v29 = vld [vmem:[#allocation2 + $0x188] ss:$16 sps:$4 sm:$0xff]  }
 0xa92   :  { %3556 = vpow2.f32 %v1583_v36 }
 0xa9a   :  { %v3555_v27 = vpop.eup %3554 }
 0xa9b   :  { %v1572_v34 = vmul.f32 1.0614054, %v3555_v27 }
 0xa9c   :  { %v3557_v5 = vpop.eup %3556 }
 0xa9d   :  { %v1573_v25 = vadd.f32 -1.4531521, %v1572_v34  ;;  %v3420_v34 = vld [vmem:[#allocation2 + $0x1a4] ss:$16 sps:$4 sm:$0xff]  }
 0xa9f   :  { %v1574_v26 = vmul.f32 %v3555_v27, %v1573_v25  ;;  %v3423_v25 = vld [vmem:[#allocation2 + $0x1ac] ss:$16 sps:$4 sm:$0xff]  }
 0xaa1   :  { %v1575_v32 = vadd.f32 1.4214138, %v1574_v26  ;;  %v3418_v26 = vld [vmem:[#allocation2 + $0x1a0] ss:$16 sps:$4 sm:$0xff]  }
 0xaa3   :  { %v1576_v37 = vmul.f32 %v3555_v27, %v1575_v32  ;;  %v3421_v32 = vld [vmem:[#allocation2 + $0x1a8] ss:$16 sps:$4 sm:$0xff]  }
 0xaa5   :  { %v1577_v24 = vadd.f32 -0.28449672, %v1576_v37 }
 0xaa7   :  { %v1578_v48 = vmul.f32 %v3555_v27, %v1577_v24 }
 0xaa9   :  { %v1579_v43 = vadd.f32 0.2548296, %v1578_v48 }
 0xaab   :  { %v1580_v30 = vmul.f32 %v3555_v27, %v1579_v43 }
 0xaad   :  { %v1585_v46 = vmul.f32 %v3557_v5, %v1580_v30  ;;  %v4326_v30 = vld [vmem:[#allocation2 + $0x1c0] ss:$16 sps:$4 sm:$0xff]   ;;  %v4328_v5 = vld [vmem:[#allocation2 + $0x1c8] ss:$16 sps:$4 sm:$0xff]  }
 0xaaf   :  { %v1586_v38 = vsub.f32 1.0, %v1585_v46 }
 0xab1   :  { %v1587_v51 = vmul.f32 %v1586_v38, %v1566_v53  ;;  %v4332_v38 = vld [vmem:[#allocation2 + $0x1e4] ss:$16 sps:$4 sm:$0xff]   ;;  %v4334_v53 = vld [vmem:[#allocation2 + $0x1ec] ss:$16 sps:$4 sm:$0xff]  }
 0xab3   :  { %v1588_v52 = vadd.f32 1.0, %v1587_v51  ;;  %v4340_v51 = vld [vmem:[#allocation2 + $0x1e0] ss:$16 sps:$4 sm:$0xff]  }
 0xab5   :  { %v1589_v55 = vmul.f32 %v1588_v52, %v1563_v54  ;;  %v4342_v52 = vld [vmem:[#allocation2 + $0x1e8] ss:$16 sps:$4 sm:$0xff]   ;;  %v4346_v54 = vld [vmem:[#allocation2 + $0x204] ss:$16 sps:$4 sm:$0xff]  }
 0xafa   :  { %v1592_v56 = vpop.permute.xlu0 %1591 }
 0xafb   :  { %v1594_v57 = vadd.f32 %v1592_v56, %v1589_v55  ;;  %v4348_v55 = vld [vmem:[#allocation2 + $0x20c] ss:$16 sps:$4 sm:$0xff]   ;;  %v4354_v56 = vld [vmem:[#allocation2 + $0x200] ss:$16 sps:$4 sm:$0xff]  }
 0xafd   :  { %v1595_v58 = vpack.c.bf16 %v1594_v57, %v1594_v57  ;;  %v4356_v57 = vld [vmem:[#allocation2 + $0x208] ss:$16 sps:$4 sm:$0xff]  }
 0xaff   :  { %v1597_v59 = vrot.slane %v1595_v58, 3  ;;  %v4360_v58 = vld [vmem:[#allocation2 + $0x224] ss:$16 sps:$4 sm:$0xff]  }
 0xb01   :  { %3293 = vmatmul.mubr.msk.bf16.vlgmr.msra.gmra.mrb[36].mxu1 %vm255_vm7, %v1597_v59  ;;  %v4362_v59 = vld [vmem:[#allocation2 + $0x22c] ss:$16 sps:$4 sm:$0xff]  }
 0xb02   :  { %1849 = vmatprep.mubr.bf16.mxu1 %v4810_v0  ;;  %1818 = vmatpush1.bf16.msra.mxu1 %v3412_v14  ;;  %v4410_v14 = vld [vmem:[#allocation2 + $0x2ac] ss:$16 sps:$4 sm:$0xff]  }
 0xb03   :  { %1819 = vmatprep.subr.bf16.mxu1 %v3420_v34 }
 0xb06   :  { %1820 = vmatpush1.bf16.msra.mxu1 %v3418_v26 }
 0xb07   :  { %2063 = vmatprep.subr.bf16.mxu1 %v4316_v31 }
 0xbd4   :  { %v1647_v61 = vpop.f32.mrb[36].mxu1 }
 0xbd5   :  { %v4278_v62 = vadd.f32 %v1647_v61, %v155_v60  ;;  %v3294_v63 = vpop.f32.mrb[37].mxu1  ;;  %v4366_v60 = vld [vmem:[#allocation2 + $0x220] ss:$16 sps:$4 sm:$0xff]   ;;  %v4368_v61 = vld [vmem:[#allocation2 + $0x228] ss:$16 sps:$4 sm:$0xff]  }
 0xbd6   :  { %v1650_v2 = vpop.f32.mrb[38].mxu1  ;;  %v4372_v63 = vld [vmem:[#allocation2 + $0x244] ss:$16 sps:$4 sm:$0xff]  }
 0xbd7   :  { %v1653_v3 = vmax.f32 %v4278_v62, -5.0  ;;  %v3295_v4 = vpop.f32.mrb[39].mxu1  ;;  %v4374_v2 = vld [vmem:[#allocation2 + $0x24c] ss:$16 sps:$4 sm:$0xff]  }
 0xbd8   :  { %v4380_v4 = vld [vmem:[#allocation2 + $0x248] ss:$16 sps:$4 sm:$0xff]  }
 0xbd9   :  { %v1654_v6 = vmin.f32 %v1653_v3, 3.0  ;;  %v4378_v3 = vld [vmem:[#allocation2 + $0x240] ss:$16 sps:$4 sm:$0xff]  }
 0xbdb   :  { %v1655_v7 = vmul.f32 0.5, %v1654_v6  ;;  %v4384_v6 = vld [vmem:[#allocation2 + $0x264] ss:$16 sps:$4 sm:$0xff]  }
 0xbdd   :  { %v1656_v8 = vmul.f32 1.442695, %v1655_v7  ;;  %v4386_v7 = vld [vmem:[#allocation2 + $0x26c] ss:$16 sps:$4 sm:$0xff]  }
 0xbdf   :  { %3558 = vpow2.f32 %v1656_v8  ;;  %v4390_v8 = vld [vmem:[#allocation2 + $0x260] ss:$16 sps:$4 sm:$0xff]  }
 0xbe9   :  { %v4287_v11 = vpop.eup %3558 }
 0xbea   :  { %v1663_v44 = vmul.f32 %v4287_v11, %v1661_v9  ;;  %v4396_v9 = vld [vmem:[#allocation2 + $0x284] ss:$16 sps:$4 sm:$0xff]  }
 0xbec   :  { %1665 = vrot.lane.b32.xlu0 %v1663_v44, %s3773_s11  ;;  %v4402_v44 = vld [vmem:[#allocation2 + $0x280] ss:$16 sps:$4 sm:$0xff]  }
 0xc5e   :  { %v1666_v16 = vpop.permute.xlu0 %1665 }
 0xc5f   :  { %v4298_v17 = vadd.f32 %v1666_v16, %v4278_v62  ;;  %v154_v16 = vld [vmem:[#allocation4 + $0x1] ss:$8 sm:$0xf] }
 0xc61   :  { %v1673_v18 = vrot.slane %v4298_v17, 6  ;;  %v4807_v45 = vrot.slane %v4298_v17, 4  ;;  %v1677_v19 = vrot.slane %v4298_v17, 2 }
 0xc63   :  { %v1679_v20 = vsel %vm238_vm4, %v4298_v17, %v1673_v18 }
 0xc64   :  { %v1680_v35 = vsel %vm240_vm5, %v1679_v20, %v4807_v45  ;;  %v4816_v20 = vsub.s32 0, %v4002_v21 }
 0xc65   :  { %v1681_v42 = vsel %vm242_vm6, %v1680_v35, %v1677_v19 }
 0xc66   :  { %1683 = vrot.lane.b32.xlu1 %v1681_v42, %s3765_s17  ;;  %v1757_v35 = vrot.slane %v154_v16, %v4816_v20  ;;  %v4817_v42 = vsub.s32 2, %v4002_v21 }
 0xcd8   :  { %v1684_v23 = vpop.permute.xlu1 %1683 }
 0xcd9   :  { %v1686_v47 = vsel %vm255_vm7, %v1671_v50, %v1684_v23  ;;  %v1687_v28 = vsel %vm255_vm7, %v3863_v41, %v1684_v23  ;;  %v156_v41 = vld [vmem:[#allocation4 + $0x3] ss:$0 sm:$0xff]  ;;  %v1765_v50 = vrot.slane %v154_v16, %v4817_v42 }
 0xcda   :  { %v1688_v27 = vpack.c.bf16 %v1687_v28, %v1686_v47  ;;  %v4818_v28 = vsub.s32 1, %v4002_v21 }
 0xcdc   :  { %3303 = vmatmul.mubr.msk.bf16.vlgmr.msra.gmra.mrb[40].mxu0 %vm1704_vm10, %v1688_v27  ;;  %v4819_v27 = vsub.s32 3, %v4002_v21 }
 0xcdd   :  { %1861 = vmatpush1.bf16.msra.mxu0 %v3415_v29  ;;  %1892 = vmatprep.mubr.bf16.mxu0 %v4810_v0  ;;  %v1761_v29 = vrot.slane %v154_v16, %v4818_v28 }
 0xcde   :  { %1862 = vmatprep.subr.bf16.mxu0 %v3423_v25  ;;  %v1769_v34 = vrot.slane %v154_v16, %v4819_v27 }
 0xce1   :  { %1863 = vmatpush1.bf16.msra.mxu0 %v3421_v32 }
 0xce2   :  { %2104 = vmatprep.subr.bf16.mxu0 %v4318_v33 }
 0xdaf   :  { %v1745_v37 = vpop.f32.mrb[40].mxu0 }
 0xdb0   :  { %v3304_v49 = vpop.f32.mrb[41].mxu0  ;;  %v4322_v36 = vadd.f32 %v1745_v37, %v156_v41 }
 0xdb1   :  { %v1748_v24 = vpop.f32.mrb[42].mxu0 }
 0xdb2   :  { %v4324_v48 = vadd.f32 %v1748_v24, %v156_v41  ;;  %v3305_v43 = vpop.f32.mrb[43].mxu0 }
 0xdb4   :  { %4815 = vst [vmem:[#allocation8_spill] sm:$0xff] %v4324_v48  ;;  %v1752_v46 = vpack.c.bf16 %v4324_v48, %v4322_v36 }
 0xdb6   :  { %3233 = vmatmul.mubr.msk.bf16.vlgmr.msra.gmra.mrb[40].mxu1 %vm255_vm7, %v1752_v46  ;;  %3234 = vmatmul.mubr.msk.bf16.vlgmr.msra.gmra.mrb[44].mxu0 %vm255_vm7, %v1752_v46 }
 0xdb7   :  { %2064 = vmatpush1.bf16.msra.mxu1 %v4326_v30  ;;  %2105 = vmatpush1.bf16.msra.mxu0 %v4328_v5 }
 0xdb8   :  { %2065 = vmatprep.subr.bf16.mxu1 %v4332_v38  ;;  %2106 = vmatprep.subr.bf16.mxu0 %v4334_v53 }
 0xdb9   :  { %2095 = vmatprep.mubr.bf16.mxu1 %v4810_v0  ;;  %2136 = vmatprep.mubr.bf16.mxu0 %v4810_v0 }
 0xdbb   :  { %2066 = vmatpush1.bf16.msra.mxu1 %v4340_v51  ;;  %2107 = vmatpush1.bf16.msra.mxu0 %v4342_v52 }
 0xdbc   :  { %2067 = vmatprep.subr.bf16.mxu1 %v4346_v54  ;;  %2108 = vmatprep.subr.bf16.mxu0 %v4348_v55 }
 0xdbf   :  { %2068 = vmatpush1.bf16.msra.mxu1 %v4354_v56  ;;  %2109 = vmatpush1.bf16.msra.mxu0 %v4356_v57 }
 0xdc0   :  { %2069 = vmatprep.subr.bf16.mxu1 %v4360_v58  ;;  %2110 = vmatprep.subr.bf16.mxu0 %v4362_v59 }
 0xdc3   :  { %2070 = vmatpush1.bf16.msra.mxu1 %v4366_v60  ;;  %2111 = vmatpush1.bf16.msra.mxu0 %v4368_v61 }
 0xdc4   :  { %2071 = vmatprep.subr.bf16.mxu1 %v4372_v63  ;;  %2112 = vmatprep.subr.bf16.mxu0 %v4374_v2 }
 0xdc7   :  { %2072 = vmatpush1.bf16.msra.mxu1 %v4378_v3  ;;  %2113 = vmatpush1.bf16.msra.mxu0 %v4380_v4 }
 0xdc8   :  { %2073 = vmatprep.subr.bf16.mxu1 %v4384_v6  ;;  %2114 = vmatprep.subr.bf16.mxu0 %v4386_v7 }
 0xdcb   :  { %2074 = vmatpush1.bf16.msra.mxu1 %v4390_v8  ;;  %2115 = vmatpush1.bf16.msra.mxu0 %v4392_v39 }
 0xdcc   :  { %2075 = vmatprep.subr.bf16.mxu1 %v4396_v9  ;;  %2116 = vmatprep.subr.bf16.mxu0 %v4398_v10 }
 0xdcf   :  { %2076 = vmatpush1.bf16.msra.mxu1 %v4402_v44  ;;  %2117 = vmatpush1.bf16.msra.mxu0 %v4404_v12 }
 0xdd0   :  { %2077 = vmatprep.subr.bf16.mxu1 %v4408_v13  ;;  %2118 = vmatprep.subr.bf16.mxu0 %v4410_v14 }
 0xdd3   :  { %2078 = vmatpush1.bf16.msra.mxu1 %v4414_v40  ;;  %2119 = vmatpush1.bf16.msra.mxu0 %v4416_v15 }
 0xdd4   :  { %2168 = vmatprep.subr.bf16.mxu1 %v4316_v31  ;;  %2209 = vmatprep.subr.bf16.mxu0 %v4318_v33 }
 0xdd6   :  { %2096 = vmatmul.mubr.bf16.vlgmr.msra.gmra.mrb[44].mxu1 %v4810_v0  ;;  %2137 = vmatmul.mubr.bf16.vlgmr.msra.gmra.mrb[48].mxu0 %v4810_v0 }
 0xdd7   :  { %2169 = vmatpush1.bf16.msra.mxu1 %v4326_v30  ;;  %2210 = vmatpush1.bf16.msra.mxu0 %v4328_v5 }
 0xdd8   :  { %2170 = vmatprep.subr.bf16.mxu1 %v4332_v38  ;;  %2211 = vmatprep.subr.bf16.mxu0 %v4334_v53 }
 0xdd9   :  { %2200 = vmatprep.mubr.bf16.mxu1 %v4810_v0  ;;  %2241 = vmatprep.mubr.bf16.mxu0 %v4810_v0 }
 0xddb   :  { %2171 = vmatpush1.bf16.msra.mxu1 %v4340_v51  ;;  %2212 = vmatpush1.bf16.msra.mxu0 %v4342_v52 }
 0xddc   :  { %2172 = vmatprep.subr.bf16.mxu1 %v4346_v54  ;;  %2213 = vmatprep.subr.bf16.mxu0 %v4348_v55 }
 0xddf   :  { %2173 = vmatpush1.bf16.msra.mxu1 %v4354_v56  ;;  %2214 = vmatpush1.bf16.msra.mxu0 %v4356_v57 }
 0xde0   :  { %2174 = vmatprep.subr.bf16.mxu1 %v4360_v58  ;;  %2215 = vmatprep.subr.bf16.mxu0 %v4362_v59 }
 0xde3   :  { %2175 = vmatpush1.bf16.msra.mxu1 %v4366_v60  ;;  %2216 = vmatpush1.bf16.msra.mxu0 %v4368_v61 }
 0xde4   :  { %2176 = vmatprep.subr.bf16.mxu1 %v4372_v63  ;;  %2217 = vmatprep.subr.bf16.mxu0 %v4374_v2 }
 0xde7   :  { %2177 = vmatpush1.bf16.msra.mxu1 %v4378_v3  ;;  %2218 = vmatpush1.bf16.msra.mxu0 %v4380_v4 }
 0xde8   :  { %2178 = vmatprep.subr.bf16.mxu1 %v4384_v6  ;;  %2219 = vmatprep.subr.bf16.mxu0 %v4386_v7 }
 0xdeb   :  { %2179 = vmatpush1.bf16.msra.mxu1 %v4390_v8  ;;  %2220 = vmatpush1.bf16.msra.mxu0 %v4392_v39 }
 0xdec   :  { %2180 = vmatprep.subr.bf16.mxu1 %v4396_v9  ;;  %2221 = vmatprep.subr.bf16.mxu0 %v4398_v10 }
 0xdef   :  { %2181 = vmatpush1.bf16.msra.mxu1 %v4402_v44  ;;  %2222 = vmatpush1.bf16.msra.mxu0 %v4404_v12 }
 0xdf0   :  { %2182 = vmatprep.subr.bf16.mxu1 %v4408_v13  ;;  %2223 = vmatprep.subr.bf16.mxu0 %v4410_v14 }
 0xdf3   :  { %2183 = vmatpush1.bf16.msra.mxu1 %v4414_v40  ;;  %2224 = vmatpush1.bf16.msra.mxu0 %v4416_v15 }
 0xdf4   :  { %2291 = vmatprep.subr.bf16.mxu1 %v4316_v31  ;;  %2332 = vmatprep.subr.bf16.mxu0 %v4318_v33 }
 0xe89   :  { %v1851_v18 = vpop.f32.mrb[40].mxu1  ;;  %v1894_v19 = vpop.f32.mrb[44].mxu0 }
 0xe8a   :  { %v1853_v23 = vpop.f32.mrb[41].mxu1  ;;  %v1896_v47 = vpop.f32.mrb[45].mxu0  ;;  %v4476_v46 = vadd.f32 %v1851_v18, %v1757_v35  ;;  %v4482_v45 = vadd.f32 %v1894_v19, %v1765_v50 }
 0xe8b   :  { %v1855_v25 = vpop.f32.mrb[42].mxu1  ;;  %v1898_v26 = vpop.f32.mrb[46].mxu0  ;;  %v4478_v20 = vadd.f32 %v1853_v23, %v1761_v29 }
 0xe8c   :  { %v4468_v32 = vadd.f32 %v1855_v25, %v1757_v35  ;;  %v4470_v41 = vadd.f32 %v1898_v26, %v1765_v50  ;;  %v1857_v37 = vpop.f32.mrb[43].mxu1  ;;  %v1900_v49 = vpop.f32.mrb[47].mxu0  ;;  %v4485_v35 = vadd.f32 %v1896_v47, %v1769_v34 }
 0xe8d   :  { %v4472_v24 = vadd.f32 %v1857_v37, %v1761_v29  ;;  %v4474_v43 = vadd.f32 %v1900_v49, %v1769_v34 }
 0xe8e   :  { %4820 = vst [vmem:[#allocation9_spill] sm:$0xff] %v4470_v41 }
 0xe8f   :  { %4821 = vst [vmem:[#allocation10_spill] sm:$0xff] %v4474_v43 }
 0xea9   :  { %v2097_v42 = vpop.f32.mrb[44].mxu1  ;;  %v2138_v28 = vpop.f32.mrb[48].mxu0 }
 0xeaa   :  { %v2145_v21 = vadd.f32 %v2097_v42, %v4476_v46  ;;  %v2099_v16 = vpop.f32.mrb[45].mxu1  ;;  %v2140_v27 = vpop.f32.mrb[49].mxu0  ;;  %v2147_v18 = vadd.f32 %v2138_v28, %v4482_v45 }
 0xeab   :  { %v2146_v25 = vadd.f32 %v2099_v16, %v4478_v20  ;;  %v2101_v26 = vpop.f32.mrb[46].mxu1  ;;  %v2142_v1 = vpop.f32.mrb[50].mxu0  ;;  %v2148_v23 = vadd.f32 %v2140_v27, %v4485_v35 }
 0xeac   :  { %v2149_v37 = vmul.f32 0.5, %v2145_v21  ;;  %v2102_v22 = vpop.f32.mrb[47].mxu1  ;;  %v2143_v49 = vpop.f32.mrb[51].mxu0 }
 0xead   :  { %v2153_v0 = vmul.f32 0.5, %v2146_v25  ;;  %v2158_v29 = vmul.f32 0.5, %v2148_v23 }
 0xeae   :  { %3560 = vtanh.f32 %v2149_v37 }
 0xeaf   :  { %3562 = vtanh.f32 %v2153_v0 }
 0xeb0   :  { %3564 = vtanh.f32 %v2147_v18  ;;  %v4822_v18 = vmov 0  }
 0xeb1   :  { %3566 = vtanh.f32 %v2158_v29 }
 0xeb8   :  { %v3561_v42 = vpop.eup %3560 }
 0xeb9   :  { %v3563_v16 = vpop.eup %3562  ;;  %v2151_v26 = vadd.f32 1.0, %v3561_v42 }
 0xeba   :  { %v2155_v1 = vadd.f32 1.0, %v3563_v16  ;;  %v3565_v50 = vpop.eup %3564 }
 0xebb   :  { %v2152_v19 = vmul.f32 0.5, %v2151_v26  ;;  %v3567_v0 = vpop.eup %3566 }
 0xebc   :  { %v2156_v22 = vmul.f32 0.5, %v2155_v1  ;;  %v2160_v47 = vadd.f32 1.0, %v3567_v0 }
 0xebd   :  { %v2163_v21 = vmul.f32 %v3565_v50, %v2152_v19 }
 0xebe   :  { %v2162_v25 = vmul.f32 0.0, %v2156_v22  ;;  %v2161_v34 = vmul.f32 0.5, %v2160_v47 }
 0xec0   :  { %v4488_v37 = vadd.f32 %v2163_v21, %v2162_v25 }
 0xec2   :  { %3568 = vtanh.f32 %v4488_v37 }
 0xecc   :  { %v3569_v28 = vpop.eup %3568 }
 0xecd   :  { %v4491_v27 = vmul.f32 %v3569_v28, %v2161_v34 }
 0xecf   :  { %v2167_v49 = vpack.c.bf16 %v4491_v27, %v4491_v27 }
 0xed1   :  { %2201 = vmatmul.mubr.bf16.vlgmr.msra.gmra.mrb[48].mxu1 %v2167_v49  ;;  %2242 = vmatmul.mubr.bf16.vlgmr.msra.gmra.mrb[52].mxu0 %v2167_v49 }
 0xed2   :  { %2292 = vmatpush1.bf16.msra.mxu1 %v4326_v30  ;;  %2333 = vmatpush1.bf16.msra.mxu0 %v4328_v5 }
 0xed3   :  { %2293 = vmatprep.subr.bf16.mxu1 %v4332_v38  ;;  %2334 = vmatprep.subr.bf16.mxu0 %v4334_v53 }
 0xed4   :  { %2323 = vmatprep.mubr.bf16.mxu1 %v4822_v18  ;;  %2364 = vmatprep.mubr.bf16.mxu0 %v4822_v18 }
 0xed6   :  { %2294 = vmatpush1.bf16.msra.mxu1 %v4340_v51  ;;  %2335 = vmatpush1.bf16.msra.mxu0 %v4342_v52 }
 0xed7   :  { %2295 = vmatprep.subr.bf16.mxu1 %v4346_v54  ;;  %2336 = vmatprep.subr.bf16.mxu0 %v4348_v55 }
 0xeda   :  { %2296 = vmatpush1.bf16.msra.mxu1 %v4354_v56  ;;  %2337 = vmatpush1.bf16.msra.mxu0 %v4356_v57 }
 0xedb   :  { %2297 = vmatprep.subr.bf16.mxu1 %v4360_v58  ;;  %2338 = vmatprep.subr.bf16.mxu0 %v4362_v59 }
 0xede   :  { %2298 = vmatpush1.bf16.msra.mxu1 %v4366_v60  ;;  %2339 = vmatpush1.bf16.msra.mxu0 %v4368_v61 }
 0xedf   :  { %2299 = vmatprep.subr.bf16.mxu1 %v4372_v63  ;;  %2340 = vmatprep.subr.bf16.mxu0 %v4374_v2 }
 0xee2   :  { %2300 = vmatpush1.bf16.msra.mxu1 %v4378_v3  ;;  %2341 = vmatpush1.bf16.msra.mxu0 %v4380_v4 }
 0xee3   :  { %2301 = vmatprep.subr.bf16.mxu1 %v4384_v6  ;;  %2342 = vmatprep.subr.bf16.mxu0 %v4386_v7 }
 0xee6   :  { %2302 = vmatpush1.bf16.msra.mxu1 %v4390_v8  ;;  %2343 = vmatpush1.bf16.msra.mxu0 %v4392_v39 }
 0xee7   :  { %2303 = vmatprep.subr.bf16.mxu1 %v4396_v9  ;;  %2344 = vmatprep.subr.bf16.mxu0 %v4398_v10 }
 0xeea   :  { %2304 = vmatpush1.bf16.msra.mxu1 %v4402_v44  ;;  %2345 = vmatpush1.bf16.msra.mxu0 %v4404_v12 }
 0xeeb   :  { %2305 = vmatprep.subr.bf16.mxu1 %v4408_v13  ;;  %2346 = vmatprep.subr.bf16.mxu0 %v4410_v14 }
 0xeee   :  { %2306 = vmatpush1.bf16.msra.mxu1 %v4414_v40  ;;  %2347 = vmatpush1.bf16.msra.mxu0 %v4416_v15 }
 0xeef   :  { %2414 = vmatprep.subr.bf16.mxu1 %v4316_v31  ;;  %2455 = vmatprep.subr.bf16.mxu0 %v4318_v33 }
 0xfa4   :  { %v2202_v23 = vpop.f32.mrb[48].mxu1  ;;  %v2243_v29 = vpop.f32.mrb[52].mxu0 }
 0xfa5   :  { %v2254_v42 = vrot.slane %v2202_v23, 6  ;;  %v2204_v16 = vpop.f32.mrb[49].mxu1  ;;  %v2245_v26 = vpop.f32.mrb[53].mxu0  ;;  %v2256_v21 = vrot.slane %v2243_v29, 6 }
 0xfa6   :  { %v2255_v1 = vrot.slane %v2204_v16, 6  ;;  %v2206_v19 = vpop.f32.mrb[50].mxu1  ;;  %v2247_v50 = vpop.f32.mrb[54].mxu0  ;;  %v2257_v48 = vrot.slane %v2245_v26, 6 }
 0xfa7   :  { %v2262_v22 = vadd.f32 %v2254_v42, %v4476_v46  ;;  %v2207_v25 = vpop.f32.mrb[51].mxu1  ;;  %v2248_v0 = vpop.f32.mrb[55].mxu0  ;;  %v2264_v49 = vadd.f32 %v2256_v21, %v4482_v45 }
 0xfa8   :  { %v2263_v47 = vadd.f32 %v2255_v1, %v4478_v20  ;;  %v2265_v23 = vadd.f32 %v2257_v48, %v4485_v35  ;;  %v2280_v1 = vrot.slane %v4488_v37, 6 }
 0xfa9   :  { %v2266_v34 = vmul.f32 0.5, %v2262_v22 }
 0xfaa   :  { %v2270_v28 = vmul.f32 0.5, %v2263_v47  ;;  %v2275_v16 = vmul.f32 0.5, %v2265_v23 }
 0xfab   :  { %3570 = vtanh.f32 %v2266_v34 }
 0xfac   :  { %3572 = vtanh.f32 %v2270_v28 }
 0xfad   :  { %3574 = vtanh.f32 %v2264_v49 }
 0xfae   :  { %3576 = vtanh.f32 %v2275_v16 }
 0xfb5   :  { %v3571_v19 = vpop.eup %3570 }
 0xfb6   :  { %v3573_v50 = vpop.eup %3572  ;;  %v2268_v43 = vadd.f32 1.0, %v3571_v19 }
 0xfb7   :  { %v2272_v42 = vadd.f32 1.0, %v3573_v50  ;;  %v3575_v25 = vpop.eup %3574 }
 0xfb8   :  { %v2269_v29 = vmul.f32 0.5, %v2268_v43  ;;  %v3577_v26 = vpop.eup %3576 }
 0xfb9   :  { %v2273_v22 = vmul.f32 0.5, %v2272_v42  ;;  %v2277_v21 = vadd.f32 1.0, %v3577_v26 }
 0xfba   :  { %v2283_v0 = vmul.f32 %v3575_v25, %v2269_v29 }
 0xfbb   :  { %v2282_v47 = vmul.f32 %v2280_v1, %v2273_v22  ;;  %v2278_v48 = vmul.f32 0.5, %v2277_v21 }
 0xfbd   :  { %v4534_v34 = vadd.f32 %v2283_v0, %v2282_v47 }
 0xfbf   :  { %3578 = vtanh.f32 %v4534_v34 }
 0xfc9   :  { %v3579_v28 = vpop.eup %3578 }
 0xfca   :  { %v4537_v49 = vmul.f32 %v3579_v28, %v2278_v48 }
 0xfcc   :  { %v2287_v23 = vpack.c.bf16 %v4537_v49, %v4537_v49 }
 0xfce   :  { %v2289_v43 = vrot.slane %v2287_v23, 1 }
 0xfd0   :  { %2324 = vmatmul.mubr.bf16.vlgmr.msra.gmra.mrb[52].mxu1 %v2289_v43  ;;  %2365 = vmatmul.mubr.bf16.vlgmr.msra.gmra.mrb[56].mxu0 %v2289_v43 }
 0xfd1   :  { %2415 = vmatpush1.bf16.msra.mxu1 %v4326_v30  ;;  %2456 = vmatpush1.bf16.msra.mxu0 %v4328_v5 }
 0xfd2   :  { %2416 = vmatprep.subr.bf16.mxu1 %v4332_v38  ;;  %2457 = vmatprep.subr.bf16.mxu0 %v4334_v53 }
 0xfd3   :  { %2446 = vmatprep.mubr.bf16.mxu1 %v4822_v18  ;;  %2487 = vmatprep.mubr.bf16.mxu0 %v4822_v18 }
 0xfd5   :  { %2417 = vmatpush1.bf16.msra.mxu1 %v4340_v51  ;;  %2458 = vmatpush1.bf16.msra.mxu0 %v4342_v52 }
 0xfd6   :  { %2418 = vmatprep.subr.bf16.mxu1 %v4346_v54  ;;  %2459 = vmatprep.subr.bf16.mxu0 %v4348_v55 }
 0xfd9   :  { %2419 = vmatpush1.bf16.msra.mxu1 %v4354_v56  ;;  %2460 = vmatpush1.bf16.msra.mxu0 %v4356_v57 }
 0xfda   :  { %2420 = vmatprep.subr.bf16.mxu1 %v4360_v58  ;;  %2461 = vmatprep.subr.bf16.mxu0 %v4362_v59 }
 0xfdd   :  { %2421 = vmatpush1.bf16.msra.mxu1 %v4366_v60  ;;  %2462 = vmatpush1.bf16.msra.mxu0 %v4368_v61 }
 0xfde   :  { %2422 = vmatprep.subr.bf16.mxu1 %v4372_v63  ;;  %2463 = vmatprep.subr.bf16.mxu0 %v4374_v2 }
 0xfe1   :  { %2423 = vmatpush1.bf16.msra.mxu1 %v4378_v3  ;;  %2464 = vmatpush1.bf16.msra.mxu0 %v4380_v4 }
 0xfe2   :  { %2424 = vmatprep.subr.bf16.mxu1 %v4384_v6  ;;  %2465 = vmatprep.subr.bf16.mxu0 %v4386_v7 }
 0xfe5   :  { %2425 = vmatpush1.bf16.msra.mxu1 %v4390_v8  ;;  %2466 = vmatpush1.bf16.msra.mxu0 %v4392_v39 }
 0xfe6   :  { %2426 = vmatprep.subr.bf16.mxu1 %v4396_v9  ;;  %2467 = vmatprep.subr.bf16.mxu0 %v4398_v10 }
 0xfe9   :  { %2427 = vmatpush1.bf16.msra.mxu1 %v4402_v44  ;;  %2468 = vmatpush1.bf16.msra.mxu0 %v4404_v12 }
 0xfea   :  { %2428 = vmatprep.subr.bf16.mxu1 %v4408_v13  ;;  %2469 = vmatprep.subr.bf16.mxu0 %v4410_v14 }
 0xfed   :  { %2429 = vmatpush1.bf16.msra.mxu1 %v4414_v40  ;;  %2470 = vmatpush1.bf16.msra.mxu0 %v4416_v15 }
 0xfee   :  { %2537 = vmatprep.subr.bf16.mxu1 %v4316_v31  ;;  %2578 = vmatprep.subr.bf16.mxu0 %v4318_v33 }
0x10a3   :  { %v2325_v37 = vpop.f32.mrb[52].mxu1  ;;  %v2366_v16 = vpop.f32.mrb[56].mxu0 }
0x10a4   :  { %v2377_v19 = vrot.slane %v2325_v37, 4  ;;  %v2327_v50 = vpop.f32.mrb[53].mxu1  ;;  %v2368_v42 = vpop.f32.mrb[57].mxu0  ;;  %v2379_v0 = vrot.slane %v2366_v16, 4 }
0x10a5   :  { %v2378_v29 = vrot.slane %v2327_v50, 4  ;;  %v2329_v25 = vpop.f32.mrb[54].mxu1  ;;  %v2370_v1 = vpop.f32.mrb[58].mxu0  ;;  %v2380_v43 = vrot.slane %v2368_v42, 4 }
0x10a6   :  { %v2385_v22 = vadd.f32 %v2377_v19, %v4476_v46  ;;  %v2330_v47 = vpop.f32.mrb[55].mxu1  ;;  %v2371_v26 = vpop.f32.mrb[59].mxu0  ;;  %v2387_v23 = vadd.f32 %v2379_v0, %v4482_v45 }
0x10a7   :  { %v2386_v21 = vadd.f32 %v2378_v29, %v4478_v20  ;;  %v2388_v37 = vadd.f32 %v2380_v43, %v4485_v35  ;;  %v2403_v29 = vrot.slane %v4534_v34, 6 }
0x10a8   :  { %v2389_v48 = vmul.f32 0.5, %v2385_v22 }
0x10a9   :  { %v2393_v28 = vmul.f32 0.5, %v2386_v21  ;;  %v2398_v50 = vmul.f32 0.5, %v2388_v37  ;;  %v3010_v37 = vsel %vm238_vm4, %v4491_v27, %v4537_v49 }
0x10aa   :  { %3580 = vtanh.f32 %v2389_v48 }
0x10ab   :  { %3582 = vtanh.f32 %v2393_v28 }
0x10ac   :  { %3584 = vtanh.f32 %v2387_v23 }
0x10ad   :  { %3586 = vtanh.f32 %v2398_v50 }
0x10b4   :  { %v3581_v25 = vpop.eup %3580 }
0x10b5   :  { %v3583_v1 = vpop.eup %3582  ;;  %v2391_v41 = vadd.f32 1.0, %v3581_v25 }
0x10b6   :  { %v2395_v19 = vadd.f32 1.0, %v3583_v1  ;;  %v3585_v47 = vpop.eup %3584 }
0x10b7   :  { %v2392_v16 = vmul.f32 0.5, %v2391_v41  ;;  %v3587_v42 = vpop.eup %3586 }
0x10b8   :  { %v2396_v26 = vmul.f32 0.5, %v2395_v19  ;;  %v2400_v0 = vadd.f32 1.0, %v3587_v42 }
0x10b9   :  { %v2406_v22 = vmul.f32 %v3585_v47, %v2392_v16 }
0x10ba   :  { %v2405_v21 = vmul.f32 %v2403_v29, %v2396_v26  ;;  %v2401_v28 = vmul.f32 0.5, %v2400_v0 }
0x10bc   :  { %v4580_v48 = vadd.f32 %v2406_v22, %v2405_v21 }
0x10be   :  { %3588 = vtanh.f32 %v4580_v48 }
0x10c8   :  { %v3589_v23 = vpop.eup %3588 }
0x10c9   :  { %v2409_v43 = vmul.f32 %v3589_v23, %v2401_v28 }
0x10cb   :  { %v2410_v41 = vpack.c.bf16 %v2409_v43, %v2409_v43  ;;  %v4587_v50 = vsel %vm240_vm5, %v3010_v37, %v2409_v43 }
0x10cd   :  { %v2412_v34 = vrot.slane %v2410_v41, 2 }
0x10cf   :  { %2447 = vmatmul.mubr.bf16.vlgmr.msra.gmra.mrb[56].mxu1 %v2412_v34  ;;  %2488 = vmatmul.mubr.bf16.vlgmr.msra.gmra.mrb[60].mxu0 %v2412_v34 }
0x10d0   :  { %2538 = vmatpush1.bf16.msra.mxu1 %v4326_v30  ;;  %2579 = vmatpush1.bf16.msra.mxu0 %v4328_v5 }
0x10d1   :  { %2539 = vmatprep.subr.bf16.mxu1 %v4332_v38  ;;  %2580 = vmatprep.subr.bf16.mxu0 %v4334_v53 }
0x10d2   :  { %2569 = vmatprep.mubr.bf16.mxu1 %v4822_v18  ;;  %2610 = vmatprep.mubr.bf16.mxu0 %v4822_v18 }
0x10d4   :  { %2540 = vmatpush1.bf16.msra.mxu1 %v4340_v51  ;;  %2581 = vmatpush1.bf16.msra.mxu0 %v4342_v52 }
0x10d5   :  { %2541 = vmatprep.subr.bf16.mxu1 %v4346_v54  ;;  %2582 = vmatprep.subr.bf16.mxu0 %v4348_v55 }
0x10d8   :  { %2542 = vmatpush1.bf16.msra.mxu1 %v4354_v56  ;;  %2583 = vmatpush1.bf16.msra.mxu0 %v4356_v57 }
0x10d9   :  { %2543 = vmatprep.subr.bf16.mxu1 %v4360_v58  ;;  %2584 = vmatprep.subr.bf16.mxu0 %v4362_v59 }
0x10dc   :  { %2544 = vmatpush1.bf16.msra.mxu1 %v4366_v60  ;;  %2585 = vmatpush1.bf16.msra.mxu0 %v4368_v61 }
0x10dd   :  { %2545 = vmatprep.subr.bf16.mxu1 %v4372_v63  ;;  %2586 = vmatprep.subr.bf16.mxu0 %v4374_v2 }
0x10e0   :  { %2546 = vmatpush1.bf16.msra.mxu1 %v4378_v3  ;;  %2587 = vmatpush1.bf16.msra.mxu0 %v4380_v4 }
0x10e1   :  { %2547 = vmatprep.subr.bf16.mxu1 %v4384_v6  ;;  %2588 = vmatprep.subr.bf16.mxu0 %v4386_v7 }
0x10e4   :  { %2548 = vmatpush1.bf16.msra.mxu1 %v4390_v8  ;;  %2589 = vmatpush1.bf16.msra.mxu0 %v4392_v39 }
0x10e5   :  { %2549 = vmatprep.subr.bf16.mxu1 %v4396_v9  ;;  %2590 = vmatprep.subr.bf16.mxu0 %v4398_v10 }
0x10e8   :  { %2550 = vmatpush1.bf16.msra.mxu1 %v4402_v44  ;;  %2591 = vmatpush1.bf16.msra.mxu0 %v4404_v12 }
0x10e9   :  { %2551 = vmatprep.subr.bf16.mxu1 %v4408_v13  ;;  %2592 = vmatprep.subr.bf16.mxu0 %v4410_v14 }
0x10ec   :  { %2552 = vmatpush1.bf16.msra.mxu1 %v4414_v40  ;;  %2593 = vmatpush1.bf16.msra.mxu0 %v4416_v15 }
0x10ed   :  { %2645 = vmatprep.subr.bf16.mxu1 %v4316_v31  ;;  %2686 = vmatprep.subr.bf16.mxu0 %v4318_v33 }
0x11a2   :  { %v2448_v27 = vpop.f32.mrb[56].mxu1  ;;  %v2489_v49 = vpop.f32.mrb[60].mxu0 }
0x11a3   :  { %v2500_v25 = vrot.slane %v2448_v27, 2  ;;  %v2450_v1 = vpop.f32.mrb[57].mxu1  ;;  %v2491_v19 = vpop.f32.mrb[61].mxu0  ;;  %v2502_v22 = vrot.slane %v2489_v49, 2 }
0x11a4   :  { %v2501_v16 = vrot.slane %v2450_v1, 2  ;;  %v2452_v47 = vpop.f32.mrb[58].mxu1  ;;  %v2493_v26 = vpop.f32.mrb[62].mxu0  ;;  %v2503_v37 = vrot.slane %v2491_v19, 2 }
0x11a5   :  { %v2508_v29 = vadd.f32 %v2500_v25, %v4476_v46  ;;  %v2453_v21 = vpop.f32.mrb[59].mxu1  ;;  %v2494_v42 = vpop.f32.mrb[63].mxu0  ;;  %v2510_v43 = vadd.f32 %v2502_v22, %v4482_v45 }
0x11a6   :  { %v2509_v0 = vadd.f32 %v2501_v16, %v4478_v20  ;;  %v2511_v41 = vadd.f32 %v2503_v37, %v4485_v35  ;;  %v2526_v20 = vrot.slane %v4580_v48, 6 }
0x11a7   :  { %v2512_v28 = vmul.f32 0.5, %v2508_v29 }
0x11a8   :  { %v2516_v23 = vmul.f32 0.5, %v2509_v0  ;;  %v2521_v34 = vmul.f32 0.5, %v2511_v41 }
0x11a9   :  { %3590 = vtanh.f32 %v2512_v28 }
0x11aa   :  { %3592 = vtanh.f32 %v2516_v23  ;;  %v3144_v23 = vrot.slane %v4287_v11, 6 }
0x11ab   :  { %3594 = vtanh.f32 %v2510_v43 }
0x11ac   :  { %3596 = vtanh.f32 %v2521_v34 }
0x11b3   :  { %v3591_v27 = vpop.eup %3590 }
0x11b4   :  { %v3593_v1 = vpop.eup %3592  ;;  %v2514_v47 = vadd.f32 1.0, %v3591_v27 }
0x11b5   :  { %v2518_v46 = vadd.f32 1.0, %v3593_v1  ;;  %v3595_v25 = vpop.eup %3594 }
0x11b6   :  { %v2515_v49 = vmul.f32 0.5, %v2514_v47  ;;  %v3597_v45 = vpop.eup %3596 }
0x11b7   :  { %v2519_v26 = vmul.f32 0.5, %v2518_v46  ;;  %v2523_v19 = vadd.f32 1.0, %v3597_v45 }
0x11b8   :  { %v2529_v16 = vmul.f32 %v3595_v25, %v2515_v49 }
0x11b9   :  { %v2528_v29 = vmul.f32 %v2526_v20, %v2519_v26  ;;  %v2524_v35 = vmul.f32 0.5, %v2523_v19 }
0x11bb   :  { %v4628_v21 = vadd.f32 %v2529_v16, %v2528_v29  ;;  %v4823_v16 = vmov -1.0  }
0x11bd   :  { %3598 = vtanh.f32 %v4628_v21 }
0x11c7   :  { %v3599_v22 = vpop.eup %3598 }
0x11c8   :  { %v2532_v42 = vmul.f32 %v3599_v22, %v2524_v35 }
0x11ca   :  { %v4633_v0 = vsel %vm242_vm6, %v4587_v50, %v2532_v42  ;;  %v2533_v28 = vpack.c.bf16 %v2532_v42, %v2532_v42 }
0x11cb   :  { %3074 = vrot.lane.b32.xlu0 %v4633_v0, %s3769_s0  ;;  %v3018_v11 = vmul.f32 0.70710677, %v4633_v0  ;;  %v3016_v35 = vmul.f32 0.5, %v4633_v0 }
0x11cc   :  { %v2535_v48 = vrot.slane %v2533_v28, 3 }
0x11cd   :  { %vm3020_vm11 = vcmp.ge.f32.partialorder %v3018_v11, 0.0 }
0x11ce   :  { %2570 = vmatmul.mubr.bf16.vlgmr.msra.gmra.mrb[60].mxu1 %v2535_v48  ;;  %2611 = vmatmul.mubr.bf16.vlgmr.msra.gmra.mrb[64].mxu0 %v2535_v48  ;;  %v3022_v29 = vsel %vm3020_vm11, 1.0, %v4823_v16 }
0x11cf   :  { %3145 = vrot.lane.b32.xlu0 %v3144_v23, %s3773_s11  ;;  %2646 = vmatpush1.bf16.msra.mxu1 %v4326_v30  ;;  %v3024_v30 = vand.u32 2147483647, %v3018_v11  ;;  %v4824_v11 = vrot.slane %v4298_v17, 4 }
0x11d0   :  { %2687 = vmatpush1.bf16.msra.mxu0 %v4328_v5  ;;  %2647 = vmatprep.subr.bf16.mxu1 %v4332_v38 }
0x11d1   :  { %2688 = vmatprep.subr.bf16.mxu0 %v4334_v53  ;;  %2677 = vmatprep.mubr.bf16.mxu1 %v4822_v18  ;;  %v3026_v5 = vmul.f32 0.3275911, %v3024_v30  ;;  %v3052_v34 = vsub.f32 0.0, %v3024_v30 }
0x11d2   :  { %2718 = vmatprep.mubr.bf16.mxu0 %v4822_v18 }
0x11d3   :  { %2648 = vmatpush1.bf16.msra.mxu1 %v4340_v51  ;;  %v3028_v38 = vadd.f32 1.0, %v3026_v5  ;;  %v3054_v1 = vmul.f32 %v3052_v34, %v3024_v30 }
0x11d4   :  { %2689 = vmatpush1.bf16.msra.mxu0 %v4342_v52  ;;  %2649 = vmatprep.subr.bf16.mxu1 %v4346_v54 }
0x11d5   :  { %2690 = vmatprep.subr.bf16.mxu0 %v4348_v55  ;;  %3600 = vrcp.f32 %v3028_v38  ;;  %v3056_v46 = vmul.f32 1.442695, %v3054_v1 }
0x11d7   :  { %2650 = vmatpush1.bf16.msra.mxu1 %v4354_v56  ;;  %3602 = vpow2.f32 %v3056_v46  ;;  %v4825_v46 = vld [vmem:[#allocation9_spill] sm:$0xff] }
0x11d8   :  { %2691 = vmatpush1.bf16.msra.mxu0 %v4356_v57  ;;  %2651 = vmatprep.subr.bf16.mxu1 %v4360_v58 }
0x11d9   :  { %2692 = vmatprep.subr.bf16.mxu0 %v4362_v59 }
0x11db   :  { %2652 = vmatpush1.bf16.msra.mxu1 %v4366_v60 }
0x11dc   :  { %2693 = vmatpush1.bf16.msra.mxu0 %v4368_v61  ;;  %2653 = vmatprep.subr.bf16.mxu1 %v4372_v63 }
0x11dd   :  { %2694 = vmatprep.subr.bf16.mxu0 %v4374_v2 }
0x11df   :  { %2654 = vmatpush1.bf16.msra.mxu1 %v4378_v3  ;;  %v3601_v53 = vpop.eup %3600 }
0x11e0   :  { %2695 = vmatpush1.bf16.msra.mxu0 %v4380_v4  ;;  %2655 = vmatprep.subr.bf16.mxu1 %v4384_v6  ;;  %v3034_v50 = vmul.f32 1.0614054, %v3601_v53 }
0x11e1   :  { %2696 = vmatprep.subr.bf16.mxu0 %v4386_v7 }
0x11e2   :  { %v3036_v43 = vadd.f32 -1.4531521, %v3034_v50 }
0x11e3   :  { %2656 = vmatpush1.bf16.msra.mxu1 %v4390_v8 }
0x11e4   :  { %2697 = vmatpush1.bf16.msra.mxu0 %v4392_v39  ;;  %2657 = vmatprep.subr.bf16.mxu1 %v4396_v9  ;;  %v3038_v37 = vmul.f32 %v3601_v53, %v3036_v43 }
0x11e5   :  { %2698 = vmatprep.subr.bf16.mxu0 %v4398_v10 }
0x11e6   :  { %v3040_v41 = vadd.f32 1.4214138, %v3038_v37 }
0x11e7   :  { %2658 = vmatpush1.bf16.msra.mxu1 %v4402_v44 }
0x11e8   :  { %2699 = vmatpush1.bf16.msra.mxu0 %v4404_v12  ;;  %2659 = vmatprep.subr.bf16.mxu1 %v4408_v13  ;;  %v3042_v27 = vmul.f32 %v3601_v53, %v3040_v41 }
0x11e9   :  { %2700 = vmatprep.subr.bf16.mxu0 %v4410_v14 }
0x11ea   :  { %v3044_v47 = vadd.f32 -0.28449672, %v3042_v27 }
0x11eb   :  { %2660 = vmatpush1.bf16.msra.mxu1 %v4414_v40 }
0x11ec   :  { %2701 = vmatpush1.bf16.msra.mxu0 %v4416_v15  ;;  %2768 = vmatprep.subr.bf16.mxu1 %v4316_v31  ;;  %v3046_v49 = vmul.f32 %v3601_v53, %v3044_v47  ;;  %v3603_v31 = vpop.eup %3602 }
0x11ed   :  { %2809 = vmatprep.subr.bf16.mxu0 %v4318_v33 }
0x11ee   :  { %v3048_v25 = vadd.f32 0.2548296, %v3046_v49 }
0x11f0   :  { %v3050_v26 = vmul.f32 %v3601_v53, %v3048_v25  ;;  %v4826_v25 = vld [vmem:[#allocation10_spill] sm:$0xff] }
0x11f2   :  { %v3060_v20 = vmul.f32 %v3603_v31, %v3050_v26 }
0x11f4   :  { %v3062_v33 = vsub.f32 1.0, %v3060_v20 }
0x11f6   :  { %v3064_v45 = vmul.f32 %v3062_v33, %v3022_v29 }
0x11f8   :  { %v3066_v19 = vadd.f32 1.0, %v3064_v45 }
0x11fa   :  { %v3068_v22 = vmul.f32 %v3066_v19, %v3016_v35 }
0x11fc   :  { %v3070_v42 = vmul.f32 %v3068_v22, %v4322_v36 }
0x123d   :  { %v3075_v28 = vpop.permute.xlu0 %3074 }
0x123e   :  { %v4677_v48 = vadd.f32 %v3075_v28, %v3070_v42  ;;  %v2637_v42 = vrot.slane %v4628_v21, 6  ;;  %v4703_v21 = vld [vmem:[#allocation2 + $0x1c8] ss:$16 sps:$4 sm:$0xff]  }
0x1241   :  { %v3146_v23 = vpop.permute.xlu0 %3145 }
0x1242   :  { %v3148_v30 = vsel %vm238_vm4, %v4278_v62, %v3146_v23 }
0x1243   :  { %v3149_v5 = vsel %vm240_vm5, %v3148_v30, %v4824_v11 }
0x1244   :  { %v3153_v38 = vsel %vm3152_vm12, %v3149_v5, 0.0 }
0x1245   :  { %v3154_v53 = vsel %vm242_vm6, %v3153_v38, 0.0 }
0x1246   :  { %3157 = vst [vmem:[%s4800_s5 + $0x10] sm:$0xff] %v3154_v53 }
0x12a1   :  { %v2571_v36 = vpop.f32.mrb[60].mxu1  ;;  %v2612_v0 = vpop.f32.mrb[64].mxu0 }
0x12a2   :  { %v2619_v50 = vadd.f32 %v2571_v36, %v4468_v32  ;;  %v2573_v43 = vpop.f32.mrb[61].mxu1  ;;  %v2614_v37 = vpop.f32.mrb[65].mxu0  ;;  %v2621_v49 = vadd.f32 %v2612_v0, %v4825_v46 }
0x12a3   :  { %v2620_v41 = vadd.f32 %v2573_v43, %v4472_v24  ;;  %v2575_v62 = vpop.f32.mrb[62].mxu1  ;;  %v2616_v34 = vpop.f32.mrb[66].mxu0  ;;  %v2622_v26 = vadd.f32 %v2614_v37, %v4826_v25  ;;  %v4706_v43 = vld [vmem:[#allocation2 + $0x1e4] ss:$16 sps:$4 sm:$0xff]   ;;  %v4709_v37 = vld [vmem:[#allocation2 + $0x1ec] ss:$16 sps:$4 sm:$0xff]  }
0x12a4   :  { %v2623_v17 = vmul.f32 0.5, %v2619_v50  ;;  %v2576_v27 = vpop.f32.mrb[63].mxu1  ;;  %v2617_v1 = vpop.f32.mrb[67].mxu0  ;;  %v4700_v50 = vld [vmem:[#allocation2 + $0x1c0] ss:$16 sps:$4 sm:$0xff]  }
0x12a5   :  { %v2627_v47 = vmul.f32 0.5, %v2620_v41  ;;  %v2632_v31 = vmul.f32 0.5, %v2622_v26 }
0x12a6   :  { %3604 = vtanh.f32 %v2623_v17 }
0x12a7   :  { %3606 = vtanh.f32 %v2627_v47 }
0x12a8   :  { %3608 = vtanh.f32 %v2621_v49 }
0x12a9   :  { %3610 = vtanh.f32 %v2632_v31 }
0x12b0   :  { %v3605_v20 = vpop.eup %3604 }
0x12b1   :  { %v3607_v33 = vpop.eup %3606  ;;  %v2625_v29 = vadd.f32 1.0, %v3605_v20 }
0x12b2   :  { %v2629_v45 = vadd.f32 1.0, %v3607_v33  ;;  %v3609_v35 = vpop.eup %3608 }
0x12b3   :  { %v2626_v19 = vmul.f32 0.5, %v2625_v29  ;;  %v3611_v11 = vpop.eup %3610 }
0x12b4   :  { %v2630_v22 = vmul.f32 0.5, %v2629_v45  ;;  %v2634_v5 = vadd.f32 1.0, %v3611_v11  ;;  %v3686_v45 = vld [vmem:[#allocation2 + $0x1e0] ss:$16 sps:$4 sm:$0xff]  }
0x12b5   :  { %v2640_v28 = vmul.f32 %v3609_v35, %v2626_v19  ;;  %v3687_v19 = vld [vmem:[#allocation2 + $0x1e8] ss:$16 sps:$4 sm:$0xff]   ;;  %v3688_v35 = vld [vmem:[#allocation2 + $0x204] ss:$16 sps:$4 sm:$0xff]   ;;  %v3694_v11 = vld [vmem:[#allocation2 + $0x220] ss:$16 sps:$4 sm:$0xff]  }
0x12b6   :  { %v2639_v23 = vmul.f32 %v2637_v42, %v2630_v22  ;;  %v2635_v38 = vmul.f32 0.5, %v2634_v5  ;;  %v3689_v22 = vld [vmem:[#allocation2 + $0x20c] ss:$16 sps:$4 sm:$0xff]   ;;  %v3690_v42 = vld [vmem:[#allocation2 + $0x200] ss:$16 sps:$4 sm:$0xff]  }
0x12b7   :  { %v3695_v5 = vld [vmem:[#allocation2 + $0x228] ss:$16 sps:$4 sm:$0xff]  }
0x12b8   :  { %v4693_v30 = vadd.f32 %v2640_v28, %v2639_v23  ;;  %v3691_v28 = vld [vmem:[#allocation2 + $0x208] ss:$16 sps:$4 sm:$0xff]   ;;  %v3692_v23 = vld [vmem:[#allocation2 + $0x224] ss:$16 sps:$4 sm:$0xff]  }
0x12ba   :  { %3612 = vtanh.f32 %v4693_v30  ;;  %v2757_v34 = vrot.slane %v4693_v30, 6  ;;  %v3693_v30 = vld [vmem:[#allocation2 + $0x22c] ss:$16 sps:$4 sm:$0xff]  }
0x12c4   :  { %v3613_v53 = vpop.eup %3612 }
0x12c5   :  { %v4696_v36 = vmul.f32 %v3613_v53, %v2635_v38  ;;  %v3697_v38 = vld [vmem:[#allocation2 + $0x24c] ss:$16 sps:$4 sm:$0xff]   ;;  %v3698_v53 = vld [vmem:[#allocation2 + $0x240] ss:$16 sps:$4 sm:$0xff]  }
0x12c7   :  { %v2644_v0 = vpack.c.bf16 %v4696_v36, %v4696_v36 }
0x12c9   :  { %2678 = vmatmul.mubr.bf16.vlgmr.msra.gmra.mrb[64].mxu1 %v2644_v0  ;;  %2719 = vmatmul.mubr.bf16.vlgmr.msra.gmra.mrb[68].mxu0 %v2644_v0  ;;  %v3699_v0 = vld [vmem:[#allocation2 + $0x248] ss:$16 sps:$4 sm:$0xff]  }
0x12ca   :  { %2769 = vmatpush1.bf16.msra.mxu1 %v4700_v50  ;;  %2810 = vmatpush1.bf16.msra.mxu0 %v4703_v21 }
0x12cb   :  { %2770 = vmatprep.subr.bf16.mxu1 %v4706_v43  ;;  %2811 = vmatprep.subr.bf16.mxu0 %v4709_v37 }
0x12cc   :  { %2800 = vmatprep.mubr.bf16.mxu1 %v4822_v18  ;;  %2841 = vmatprep.mubr.bf16.mxu0 %v4822_v18 }
0x12ce   :  { %2771 = vmatpush1.bf16.msra.mxu1 %v4340_v51  ;;  %2812 = vmatpush1.bf16.msra.mxu0 %v4342_v52  ;;  %v3684_v51 = vld [vmem:[#allocation2 + $0x1c4] ss:$16 sps:$4 sm:$0xff]   ;;  %v3685_v52 = vld [vmem:[#allocation2 + $0x1cc] ss:$16 sps:$4 sm:$0xff]  }
0x12cf   :  { %2772 = vmatprep.subr.bf16.mxu1 %v4346_v54  ;;  %2813 = vmatprep.subr.bf16.mxu0 %v4348_v55 }
0x12d2   :  { %2773 = vmatpush1.bf16.msra.mxu1 %v4354_v56  ;;  %2814 = vmatpush1.bf16.msra.mxu0 %v4356_v57 }
0x12d3   :  { %2774 = vmatprep.subr.bf16.mxu1 %v4360_v58  ;;  %2815 = vmatprep.subr.bf16.mxu0 %v4362_v59 }
0x12d6   :  { %2775 = vmatpush1.bf16.msra.mxu1 %v4366_v60  ;;  %2816 = vmatpush1.bf16.msra.mxu0 %v4368_v61 }
0x12d7   :  { %2776 = vmatprep.subr.bf16.mxu1 %v4372_v63  ;;  %2817 = vmatprep.subr.bf16.mxu0 %v4374_v2 }
0x12da   :  { %2777 = vmatpush1.bf16.msra.mxu1 %v4378_v3  ;;  %2818 = vmatpush1.bf16.msra.mxu0 %v4380_v4 }
0x12db   :  { %2778 = vmatprep.subr.bf16.mxu1 %v4384_v6  ;;  %2819 = vmatprep.subr.bf16.mxu0 %v4386_v7 }
0x12de   :  { %2779 = vmatpush1.bf16.msra.mxu1 %v4390_v8  ;;  %2820 = vmatpush1.bf16.msra.mxu0 %v4392_v39 }
0x12df   :  { %2780 = vmatprep.subr.bf16.mxu1 %v4396_v9  ;;  %2821 = vmatprep.subr.bf16.mxu0 %v4398_v10 }
0x12e2   :  { %2781 = vmatpush1.bf16.msra.mxu1 %v4402_v44  ;;  %2822 = vmatpush1.bf16.msra.mxu0 %v4404_v12 }
0x12e3   :  { %2782 = vmatprep.subr.bf16.mxu1 %v4408_v13  ;;  %2823 = vmatprep.subr.bf16.mxu0 %v4410_v14 }
0x12e6   :  { %2783 = vmatpush1.bf16.msra.mxu1 %v4414_v40  ;;  %2824 = vmatpush1.bf16.msra.mxu0 %v4416_v15 }
0x12e7   :  { %2891 = vmatprep.subr.bf16.mxu1 %v3684_v51  ;;  %2932 = vmatprep.subr.bf16.mxu0 %v3685_v52  ;;  %v3704_v51 = vld [vmem:[#allocation2 + $0x284] ss:$16 sps:$4 sm:$0xff]   ;;  %v3705_v52 = vld [vmem:[#allocation2 + $0x28c] ss:$16 sps:$4 sm:$0xff]  }
0x139c   :  { %v2679_v54 = vpop.f32.mrb[64].mxu1  ;;  %v2720_v55 = vpop.f32.mrb[68].mxu0 }
0x139d   :  { %v2731_v56 = vrot.slane %v2679_v54, 6  ;;  %v2681_v57 = vpop.f32.mrb[65].mxu1  ;;  %v2722_v58 = vpop.f32.mrb[69].mxu0  ;;  %v2733_v2 = vrot.slane %v2720_v55, 6  ;;  %v3706_v54 = vld [vmem:[#allocation2 + $0x280] ss:$16 sps:$4 sm:$0xff]  }
0x139e   :  { %v2732_v59 = vrot.slane %v2681_v57, 6  ;;  %v2683_v60 = vpop.f32.mrb[66].mxu1  ;;  %v2724_v61 = vpop.f32.mrb[70].mxu0  ;;  %v2734_v9 = vrot.slane %v2722_v58, 6  ;;  %v3707_v55 = vld [vmem:[#allocation2 + $0x288] ss:$16 sps:$4 sm:$0xff]  }
0x139f   :  { %v2739_v63 = vadd.f32 %v2731_v56, %v4468_v32  ;;  %v2684_v3 = vpop.f32.mrb[67].mxu1  ;;  %v2725_v4 = vpop.f32.mrb[71].mxu0  ;;  %v2741_v39 = vadd.f32 %v2733_v2, %v4825_v46  ;;  %v3708_v56 = vld [vmem:[#allocation2 + $0x2a4] ss:$16 sps:$4 sm:$0xff]   ;;  %v3709_v57 = vld [vmem:[#allocation2 + $0x2ac] ss:$16 sps:$4 sm:$0xff]  }
0x13a0   :  { %v2740_v6 = vadd.f32 %v2732_v59, %v4472_v24  ;;  %v2742_v10 = vadd.f32 %v2734_v9, %v4826_v25  ;;  %v3710_v58 = vld [vmem:[#allocation2 + $0x2a0] ss:$16 sps:$4 sm:$0xff]   ;;  %v3711_v59 = vld [vmem:[#allocation2 + $0x2a8] ss:$16 sps:$4 sm:$0xff]   ;;  %v4827_v60 = vmov 0.0  }
0x13a1   :  { %v2743_v7 = vmul.f32 0.5, %v2739_v63 }
0x13a2   :  { %v2747_v8 = vmul.f32 0.5, %v2740_v6  ;;  %v2752_v44 = vmul.f32 0.5, %v2742_v10 }
0x13a3   :  { %3614 = vtanh.f32 %v2743_v7 }
0x13a4   :  { %3616 = vtanh.f32 %v2747_v8 }
0x13a5   :  { %3618 = vtanh.f32 %v2741_v39 }
0x13a6   :  { %3620 = vtanh.f32 %v2752_v44 }
0x13ad   :  { %v3615_v12 = vpop.eup %3614 }
0x13ae   :  { %v3617_v13 = vpop.eup %3616  ;;  %v2745_v14 = vadd.f32 1.0, %v3615_v12 }
0x13af   :  { %v2749_v40 = vadd.f32 1.0, %v3617_v13  ;;  %v3619_v41 = vpop.eup %3618 }
0x13b0   :  { %v2746_v15 = vmul.f32 0.5, %v2745_v14  ;;  %v3621_v47 = vpop.eup %3620 }
0x13b1   :  { %v2750_v62 = vmul.f32 0.5, %v2749_v40  ;;  %v2754_v49 = vadd.f32 1.0, %v3621_v47 }
0x13b2   :  { %v2760_v17 = vmul.f32 %v3619_v41, %v2746_v15 }
0x13b3   :  { %v2759_v27 = vmul.f32 %v2757_v34, %v2750_v62  ;;  %v2755_v26 = vmul.f32 0.5, %v2754_v49 }
0x13b5   :  { %v4745_v1 = vadd.f32 %v2760_v17, %v2759_v27 }
0x13b7   :  { %3622 = vtanh.f32 %v4745_v1 }
0x13c1   :  { %v3623_v31 = vpop.eup %3622 }
0x13c2   :  { %v4748_v20 = vmul.f32 %v3623_v31, %v2755_v26 }
0x13c4   :  { %v2764_v33 = vpack.c.bf16 %v4748_v20, %v4748_v20 }
0x13c6   :  { %v2766_v29 = vrot.slane %v2764_v33, 1  ;;  %v2880_v33 = vrot.slane %v4745_v1, 6  ;;  %v3472_v1 = vld [vmem:[%s4798_s3 + $0x18] sm:$0xff]  }
0x13c8   :  { %2801 = vmatmul.mubr.bf16.vlgmr.msra.gmra.mrb[68].mxu1 %v2766_v29  ;;  %2842 = vmatmul.mubr.bf16.vlgmr.msra.gmra.mrb[72].mxu0 %v2766_v29 }
0x13c9   :  { %2892 = vmatpush1.bf16.msra.mxu1 %v4700_v50  ;;  %2933 = vmatpush1.bf16.msra.mxu0 %v4703_v21  ;;  %v3700_v50 = vld [vmem:[#allocation2 + $0x264] ss:$16 sps:$4 sm:$0xff]   ;;  %v3701_v21 = vld [vmem:[#allocation2 + $0x26c] ss:$16 sps:$4 sm:$0xff]  }
0x13ca   :  { %2893 = vmatprep.subr.bf16.mxu1 %v4706_v43  ;;  %2934 = vmatprep.subr.bf16.mxu0 %v4709_v37  ;;  %v3702_v43 = vld [vmem:[#allocation2 + $0x260] ss:$16 sps:$4 sm:$0xff]   ;;  %v3703_v37 = vld [vmem:[#allocation2 + $0x268] ss:$16 sps:$4 sm:$0xff]  }
0x13cb   :  { %2923 = vmatprep.mubr.bf16.mxu1 %v4822_v18  ;;  %2964 = vmatprep.mubr.bf16.mxu0 %v4822_v18  ;;  %v3696_v18 = vld [vmem:[#allocation2 + $0x244] ss:$16 sps:$4 sm:$0xff]  }
0x13cd   :  { %2894 = vmatpush1.bf16.msra.mxu1 %v3686_v45  ;;  %2935 = vmatpush1.bf16.msra.mxu0 %v3687_v19 }
0x13ce   :  { %2895 = vmatprep.subr.bf16.mxu1 %v3688_v35  ;;  %2936 = vmatprep.subr.bf16.mxu0 %v3689_v22 }
0x13d1   :  { %2896 = vmatpush1.bf16.msra.mxu1 %v3690_v42  ;;  %2937 = vmatpush1.bf16.msra.mxu0 %v3691_v28 }
0x13d2   :  { %2897 = vmatprep.subr.bf16.mxu1 %v3692_v23  ;;  %2938 = vmatprep.subr.bf16.mxu0 %v3693_v30  ;;  %v3013_v30 = vsel %vm238_vm4, %v4696_v36, %v4748_v20 }
0x13d5   :  { %2898 = vmatpush1.bf16.msra.mxu1 %v3694_v11  ;;  %2939 = vmatpush1.bf16.msra.mxu0 %v3695_v5 }
0x13d6   :  { %2899 = vmatprep.subr.bf16.mxu1 %v3696_v18  ;;  %2940 = vmatprep.subr.bf16.mxu0 %v3697_v38 }
0x13d9   :  { %2900 = vmatpush1.bf16.msra.mxu1 %v3698_v53  ;;  %2941 = vmatpush1.bf16.msra.mxu0 %v3699_v0 }
0x13da   :  { %2901 = vmatprep.subr.bf16.mxu1 %v3700_v50  ;;  %2942 = vmatprep.subr.bf16.mxu0 %v3701_v21 }
0x13dd   :  { %2902 = vmatpush1.bf16.msra.mxu1 %v3702_v43  ;;  %2943 = vmatpush1.bf16.msra.mxu0 %v3703_v37 }
0x13de   :  { %2903 = vmatprep.subr.bf16.mxu1 %v3704_v51  ;;  %2944 = vmatprep.subr.bf16.mxu0 %v3705_v52 }
0x13e1   :  { %2904 = vmatpush1.bf16.msra.mxu1 %v3706_v54  ;;  %2945 = vmatpush1.bf16.msra.mxu0 %v3707_v55 }
0x13e2   :  { %2905 = vmatprep.subr.bf16.mxu1 %v3708_v56  ;;  %2946 = vmatprep.subr.bf16.mxu0 %v3709_v57 }
0x13e5   :  { %2906 = vmatpush1.bf16.msra.mxu1 %v3710_v58  ;;  %2947 = vmatpush1.bf16.msra.mxu0 %v3711_v59 }
0x13e6   :  { %3306 = vmatprep.subr.bf16.mxu1 %v4827_v60 }
0x149b   :  { %v2802_v61 = vpop.f32.mrb[68].mxu1  ;;  %v2843_v63 = vpop.f32.mrb[72].mxu0 }
0x149c   :  { %v2854_v2 = vrot.slane %v2802_v61, 4  ;;  %v2804_v3 = vpop.f32.mrb[69].mxu1  ;;  %v2845_v4 = vpop.f32.mrb[73].mxu0  ;;  %v2856_v9 = vrot.slane %v2843_v63, 4 }
0x149d   :  { %v2855_v6 = vrot.slane %v2804_v3, 4  ;;  %v2806_v7 = vpop.f32.mrb[70].mxu1  ;;  %v2847_v8 = vpop.f32.mrb[74].mxu0  ;;  %v2857_v15 = vrot.slane %v2845_v4, 4 }
0x149e   :  { %v2862_v39 = vadd.f32 %v2854_v2, %v4468_v32  ;;  %v2807_v10 = vpop.f32.mrb[71].mxu1  ;;  %v2848_v44 = vpop.f32.mrb[75].mxu0  ;;  %v2864_v40 = vadd.f32 %v2856_v9, %v4825_v46 }
0x149f   :  { %v2863_v12 = vadd.f32 %v2855_v6, %v4472_v24  ;;  %v2865_v41 = vadd.f32 %v2857_v15, %v4826_v25 }
0x14a0   :  { %v2866_v13 = vmul.f32 0.5, %v2862_v39 }
0x14a1   :  { %v2870_v14 = vmul.f32 0.5, %v2863_v12  ;;  %v2875_v62 = vmul.f32 0.5, %v2865_v41 }
0x14a2   :  { %3624 = vtanh.f32 %v2866_v13 }
0x14a3   :  { %3626 = vtanh.f32 %v2870_v14 }
0x14a4   :  { %3628 = vtanh.f32 %v2864_v40 }
0x14a5   :  { %3630 = vtanh.f32 %v2875_v62 }
0x14ac   :  { %v3625_v34 = vpop.eup %3624 }
0x14ad   :  { %v3627_v17 = vpop.eup %3626  ;;  %v2868_v27 = vadd.f32 1.0, %v3625_v34 }
0x14ae   :  { %v2872_v47 = vadd.f32 1.0, %v3627_v17  ;;  %v3629_v26 = vpop.eup %3628 }
0x14af   :  { %v2869_v49 = vmul.f32 0.5, %v2868_v27  ;;  %v3631_v35 = vpop.eup %3630 }
0x14b0   :  { %v2873_v31 = vmul.f32 0.5, %v2872_v47  ;;  %v2877_v22 = vadd.f32 1.0, %v3631_v35 }
0x14b1   :  { %v2883_v29 = vmul.f32 %v3629_v26, %v2869_v49 }
0x14b2   :  { %v2882_v45 = vmul.f32 %v2880_v33, %v2873_v31  ;;  %v2878_v42 = vmul.f32 0.5, %v2877_v22 }
0x14b4   :  { %v2884_v19 = vadd.f32 %v2883_v29, %v2882_v45 }
0x14b6   :  { %3632 = vtanh.f32 %v2884_v19 }
0x14c0   :  { %v3633_v28 = vpop.eup %3632 }
0x14c1   :  { %v2886_v23 = vmul.f32 %v3633_v28, %v2878_v42 }
0x14c3   :  { %v2887_v11 = vpack.c.bf16 %v2886_v23, %v2886_v23  ;;  %v3014_v5 = vsel %vm240_vm5, %v3013_v30, %v2886_v23 }
0x14c5   :  { %v2889_v18 = vrot.slane %v2887_v11, 2 }
0x14c7   :  { %2924 = vmatmul.mubr.bf16.vlgmr.msra.gmra.mrb[72].mxu1 %v2889_v18  ;;  %2965 = vmatmul.mubr.bf16.vlgmr.msra.gmra.mrb[76].mxu0 %v2889_v18 }
0x14c8   :  { %3310 = vmatprep.mubr.msk.bf16.mxu1 %vm3768_vm0, %v4827_v60  ;;  %3307 = vmatpush3.bf16.msra.mxu1 %v3472_v1 }
0x14c9   :  { %3308 = vmatprep.subr.bf16.mxu1 %v4827_v60 }
0x159a   :  { %v2925_v38 = vpop.f32.mrb[72].mxu1  ;;  %v2966_v53 = vpop.f32.mrb[76].mxu0 }
0x159b   :  { %v2977_v0 = vrot.slane %v2925_v38, 2  ;;  %v2927_v36 = vpop.f32.mrb[73].mxu1  ;;  %v2968_v20 = vpop.f32.mrb[77].mxu0  ;;  %v2979_v51 = vrot.slane %v2966_v53, 2  ;;  %v4828_v38 = vld [vmem:[#allocation8_spill] sm:$0xff] }
0x159c   :  { %v2978_v50 = vrot.slane %v2927_v36, 2  ;;  %v2929_v21 = vpop.f32.mrb[74].mxu1  ;;  %v2970_v43 = vpop.f32.mrb[78].mxu0  ;;  %v2980_v59 = vrot.slane %v2968_v20, 2 }
0x159d   :  { %v2985_v37 = vadd.f32 %v2977_v0, %v4468_v32  ;;  %v2930_v52 = vpop.f32.mrb[75].mxu1  ;;  %v2971_v54 = vpop.f32.mrb[79].mxu0  ;;  %v2987_v58 = vadd.f32 %v2979_v51, %v4825_v46  ;;  %v3473_v46 = vld [vmem:[%s4798_s3 + $0x20] sm:$0xff]  }
0x159e   :  { %v2986_v55 = vadd.f32 %v2978_v50, %v4472_v24  ;;  %v2988_v60 = vadd.f32 %v2980_v59, %v4826_v25  ;;  %v3003_v24 = vrot.slane %v2884_v19, 6  ;;  %3309 = vmatpush3.bf16.msra.mxu1 %v3473_v46  ;;  %v158_v50 = vld [vmem:[#allocation4 + $0x20] sm:$0xff] }
0x159f   :  { %v2989_v56 = vmul.f32 0.5, %v2985_v37  ;;  %v157_v21 = vld [vmem:[#allocation4 + $0x4] ss:$0 sm:$0xff]  ;;  %vm3139_vm14 = vcmp.gt.f32.partialorder %v158_v50, 0.5 }
0x15a0   :  { %v2993_v57 = vmul.f32 0.5, %v2986_v55  ;;  %v2998_v61 = vmul.f32 0.5, %v2988_v60  ;;  %v159_v43 = vld [vmem:[#allocation4 + $0x40] sm:$0xff] }
0x15a1   :  { %3634 = vtanh.f32 %v2989_v56  ;;  %vm3140_vm15 = vcmp.gt.f32.partialorder %v159_v43, 0.5 }
0x15a2   :  { %3636 = vtanh.f32 %v2993_v57 }
0x15a3   :  { %3638 = vtanh.f32 %v2987_v58 }
0x15a4   :  { %3640 = vtanh.f32 %v2998_v61 }
0x15ab   :  { %v3635_v63 = vpop.eup %3634 }
0x15ac   :  { %v3637_v2 = vpop.eup %3636  ;;  %v2991_v3 = vadd.f32 1.0, %v3635_v63 }
0x15ad   :  { %v2995_v32 = vadd.f32 1.0, %v3637_v2  ;;  %v3639_v6 = vpop.eup %3638 }
0x15ae   :  { %v2992_v4 = vmul.f32 0.5, %v2991_v3  ;;  %v3641_v10 = vpop.eup %3640 }
0x15af   :  { %v2996_v7 = vmul.f32 0.5, %v2995_v32  ;;  %v3000_v25 = vadd.f32 1.0, %v3641_v10 }
0x15b0   :  { %v3006_v8 = vmul.f32 %v3639_v6, %v2992_v4 }
0x15b1   :  { %v3005_v39 = vmul.f32 %v3003_v24, %v2996_v7  ;;  %v3001_v44 = vmul.f32 0.5, %v3000_v25 }
0x15b3   :  { %v3007_v9 = vadd.f32 %v3006_v8, %v3005_v39 }
0x15b5   :  { %3642 = vtanh.f32 %v3007_v9 }
0x15bf   :  { %v3643_v12 = vpop.eup %3642 }
0x15c0   :  { %v3009_v13 = vmul.f32 %v3643_v12, %v3001_v44 }
0x15c2   :  { %v3015_v14 = vsel %vm242_vm6, %v3014_v5, %v3009_v13 }
0x15c3   :  { %3076 = vrot.lane.b32.xlu1 %v3015_v14, %s3769_s0  ;;  %v3019_v40 = vmul.f32 0.70710677, %v3015_v14  ;;  %v3017_v18 = vmul.f32 0.5, %v3015_v14 }
0x15c5   :  { %v3025_v15 = vand.u32 2147483647, %v3019_v40  ;;  %vm3021_vm13 = vcmp.ge.f32.partialorder %v3019_v40, 0.0 }
0x15c6   :  { %v3023_v30 = vsel %vm3021_vm13, 1.0, %v4823_v16 }
0x15c7   :  { %v3027_v41 = vmul.f32 0.3275911, %v3025_v15  ;;  %v3053_v26 = vsub.f32 0.0, %v3025_v15 }
0x15c9   :  { %v3029_v62 = vadd.f32 1.0, %v3027_v41  ;;  %v3055_v33 = vmul.f32 %v3053_v26, %v3025_v15 }
0x15cb   :  { %3644 = vrcp.f32 %v3029_v62  ;;  %v3058_v45 = vmul.f32 1.442695, %v3055_v33 }
0x15cd   :  { %3646 = vpow2.f32 %v3058_v45 }
0x15d5   :  { %v3645_v34 = vpop.eup %3644 }
0x15d6   :  { %v3035_v17 = vmul.f32 1.0614054, %v3645_v34 }
0x15d7   :  { %v3647_v42 = vpop.eup %3646 }
0x15d8   :  { %v3037_v27 = vadd.f32 -1.4531521, %v3035_v17 }
0x15da   :  { %v3039_v47 = vmul.f32 %v3645_v34, %v3037_v27 }
0x15dc   :  { %v3041_v49 = vadd.f32 1.4214138, %v3039_v47 }
0x15de   :  { %v3043_v31 = vmul.f32 %v3645_v34, %v3041_v49 }
0x15e0   :  { %v3045_v29 = vadd.f32 -0.28449672, %v3043_v31 }
0x15e2   :  { %v3047_v19 = vmul.f32 %v3645_v34, %v3045_v29 }
0x15e4   :  { %v3049_v35 = vadd.f32 0.2548296, %v3047_v19 }
0x15e6   :  { %v3051_v22 = vmul.f32 %v3645_v34, %v3049_v35 }
0x15e8   :  { %v3061_v28 = vmul.f32 %v3647_v42, %v3051_v22 }
0x15ea   :  { %v3063_v23 = vsub.f32 1.0, %v3061_v28 }
0x15ec   :  { %v3065_v11 = vmul.f32 %v3063_v23, %v3023_v30 }
0x15ee   :  { %v3067_v5 = vadd.f32 1.0, %v3065_v11 }
0x15f0   :  { %v3069_v1 = vmul.f32 %v3067_v5, %v3017_v18 }
0x15f2   :  { %v3071_v53 = vmul.f32 %v3069_v1, %v4828_v38 }
0x1635   :  { %v3077_v0 = vpop.permute.xlu1 %3076 }
0x1636   :  { %v3081_v36 = vadd.f32 %v3077_v0, %v3071_v53 }
0x1638   :  { %v3082_v20 = vpack.c.bf16 %v3081_v36, %v4677_v48 }
0x163a   :  { %3311 = vmatmul.mubr.msk.bf16.vlgmr.msra.gmra.mrb[76].mxu1 %vm255_vm7, %v3082_v20 }
0x170d   :  { %v3132_v37 = vpop.f32.mrb[76].mxu1 }
0x170e   :  { %v3133_v51 = vadd.f32 %v3132_v37, %v157_v21  ;;  %v3312_v52 = vpop.f32.mrb[77].mxu1 }
0x170f   :  { %v3135_v16 = vpop.f32.mrb[78].mxu1 }
0x1710   :  { %v3141_v54 = vsel %vm3139_vm14, %v3133_v51, -1e+09  ;;  %v3136_v55 = vadd.f32 %v3135_v16, %v157_v21  ;;  %v3313_v56 = vpop.f32.mrb[79].mxu1 }
0x1711   :  { %v3150_v57 = vsel %vm183_vm3, %v3141_v54, 0.0 }
0x1712   :  { %3155 = vst [vmem:[%s4800_s5] sm:$0xff] %v3150_v57  ;;  %v3142_v48 = vsel %vm3140_vm15, %v3136_v55, -1e+09 }
0x1713   :  { %v3151_v58 = vsel %vm183_vm3, %v3142_v48, 0.0 }
0x1714   :  { %3156 = vst [vmem:[%s4800_s5 + $0x8] sm:$0xff] %v3151_v58 }
0x1715   :  { %3162 = vsyncpa [#allocation3], 1 }
0x1716   :  { %3163 = vsyncpa [#allocation5], 1 }

</bundles_post_ra>
